<compile_context>
chip_gen: v7x
topology: tpu7x:2x2x1
jax: 0.10.0
libtpu: 0.0.40
codegen_flags: <defaults>
</compile_context>

<pallas_src>
import functools

import jax
import jax.numpy as jnp
from jax.experimental import pallas as pl
from jax.experimental.pallas import tpu as pltpu


def _round_up(x, m):
    return ((x + m - 1) // m) * m


# ---------------------------------------------------------------------------
# Pallas kernels
# ---------------------------------------------------------------------------
def _conv_mm_kernel(a_ref, b_ref, o_ref, acc_ref, *, act):
    """Tiled matmul with fused activation. Grid = (M/tm, N/tn, K/tk)."""
    k = pl.program_id(2)

    @pl.when(k == 0)
    def _init():
        acc_ref[...] = jnp.zeros_like(acc_ref)

    acc_ref[...] += jnp.dot(a_ref[...], b_ref[...],
                            preferred_element_type=jnp.float32)

    @pl.when(k == pl.num_programs(2) - 1)
    def _finalize():
        y = acc_ref[...]
        if act == "leaky":
            y = jnp.where(y > 0, y, 0.2 * y)
        elif act == "sigmoid":
            y = jax.nn.sigmoid(y)
        o_ref[...] = y.astype(o_ref.dtype)


def _conv_mm_stats_kernel(a_ref, b_ref, o_ref, sum_ref, ssq_ref, acc_ref):
    """Tiled matmul that also emits per-(m-tile) per-channel sum / sum-sq of
    the raw conv output (for BatchNorm), fused into the epilogue."""
    k = pl.program_id(2)

    @pl.when(k == 0)
    def _init():
        acc_ref[...] = jnp.zeros_like(acc_ref)

    acc_ref[...] += jnp.dot(a_ref[...], b_ref[...],
                            preferred_element_type=jnp.float32)

    @pl.when(k == pl.num_programs(2) - 1)
    def _finalize():
        y = acc_ref[...]
        o_ref[...] = y.astype(o_ref.dtype)
        s = jnp.sum(y, axis=0, keepdims=True)        # (1, tn)
        sq = jnp.sum(y * y, axis=0, keepdims=True)   # (1, tn)
        sum_ref[...] = jnp.broadcast_to(s, sum_ref.shape)
        ssq_ref[...] = jnp.broadcast_to(sq, ssq_ref.shape)


def _bn_lrelu_kernel(x_ref, scale_ref, shift_ref, o_ref):
    """y = LeakyReLU(x * scale + shift), tiled over M. scale/shift: (8, C)."""
    x = x_ref[...].astype(jnp.float32)
    y = x * scale_ref[0:1, :] + shift_ref[0:1, :]
    o_ref[...] = jnp.where(y > 0, y, 0.2 * y).astype(o_ref.dtype)


# ---------------------------------------------------------------------------
# Pallas wrappers
# ---------------------------------------------------------------------------
def conv_matmul(patches, w_mat, *, act="none", with_stats=False,
                out_dtype=jnp.float32):
    """y = act(patches @ w_mat), tiled, bf16 operands / f32 accumulation.

    Returns (y_pad[Mpad, Npad], tm) or (y_pad, psum, pssq, tm) where psum/pssq
    are per-m-tile partial per-channel sums (shape [gm*8, Npad], row-replicated
    inside each 8-row block).
    """
    M, K = patches.shape
    K2, N = w_mat.shape
    assert K == K2

    Npad = _round_up(N, 128)
    tn = 256 if Npad % 256 == 0 else 128
    Kpad = _round_up(K, 128)
    tk = 512 if Kpad % 512 == 0 else (256 if Kpad % 256 == 0 else 128)
    tm = min(512, _round_up(M, 16))
    Mpad = _round_up(M, tm)
    gm, gn, gk = Mpad // tm, Npad // tn, Kpad // tk

    a = jnp.pad(patches.astype(jnp.bfloat16), ((0, Mpad - M), (0, Kpad - K)))
    b = jnp.pad(w_mat.astype(jnp.bfloat16), ((0, Kpad - K), (0, Npad - N)))

    in_specs = [
        pl.BlockSpec((tm, tk), lambda i, j, k: (i, k)),
        pl.BlockSpec((tk, tn), lambda i, j, k: (k, j)),
    ]
    cparams = pltpu.CompilerParams(
        dimension_semantics=("parallel", "parallel", "arbitrary"))
    cost = pl.CostEstimate(
        flops=2 * Mpad * Npad * Kpad,
        transcendentals=Mpad * Npad if act == "sigmoid" else 0,
        bytes_accessed=2 * (Mpad * Kpad + Kpad * Npad) + 4 * Mpad * Npad)

    if with_stats:
        y, psum, pssq = pl.pallas_call(
            _conv_mm_stats_kernel,
            out_shape=(
                jax.ShapeDtypeStruct((Mpad, Npad), out_dtype),
                jax.ShapeDtypeStruct((gm * 8, Npad), jnp.float32),
                jax.ShapeDtypeStruct((gm * 8, Npad), jnp.float32),
            ),
            grid=(gm, gn, gk),
            in_specs=in_specs,
            out_specs=(
                pl.BlockSpec((tm, tn), lambda i, j, k: (i, j)),
                pl.BlockSpec((8, tn), lambda i, j, k: (i, j)),
                pl.BlockSpec((8, tn), lambda i, j, k: (i, j)),
            ),
            scratch_shapes=[pltpu.VMEM((tm, tn), jnp.float32)],
            compiler_params=cparams,
            cost_estimate=cost,
        )(a, b)
        return y, psum, pssq, tm

    y = pl.pallas_call(
        functools.partial(_conv_mm_kernel, act=act),
        out_shape=jax.ShapeDtypeStruct((Mpad, Npad), out_dtype),
        grid=(gm, gn, gk),
        in_specs=in_specs,
        out_specs=pl.BlockSpec((tm, tn), lambda i, j, k: (i, j)),
        scratch_shapes=[pltpu.VMEM((tm, tn), jnp.float32)],
        compiler_params=cparams,
        cost_estimate=cost,
    )(a, b)
    return y, tm


def bn_lrelu(y_pad, scale, shift, tm, out_dtype=jnp.bfloat16):
    """Tiled BatchNorm-normalize + LeakyReLU(0.2). y_pad: [Mpad, Npad]."""
    Mpad, Npad = y_pad.shape
    gm = Mpad // tm
    scale8 = jnp.broadcast_to(scale[None, :], (8, Npad)).astype(jnp.float32)
    shift8 = jnp.broadcast_to(shift[None, :], (8, Npad)).astype(jnp.float32)
    return pl.pallas_call(
        _bn_lrelu_kernel,
        out_shape=jax.ShapeDtypeStruct((Mpad, Npad), out_dtype),
        grid=(gm,),
        in_specs=[
            pl.BlockSpec((tm, Npad), lambda i: (i, 0)),
            pl.BlockSpec((8, Npad), lambda i: (0, 0)),
            pl.BlockSpec((8, Npad), lambda i: (0, 0)),
        ],
        out_specs=pl.BlockSpec((tm, Npad), lambda i: (i, 0)),
        compiler_params=pltpu.CompilerParams(
            dimension_semantics=("parallel",)),
    )(y_pad, scale8, shift8)


# ---------------------------------------------------------------------------
# Plain-JAX glue: patch construction + weight reshaping
# ---------------------------------------------------------------------------
def im2col(x_nhwc, kh, kw, stride, pad):
    """Generic im2col: [N*OH*OW, kh*kw*C] with (ki, kj, c) column ordering."""
    N, H, W, C = x_nhwc.shape
    if pad:
        x_nhwc = jnp.pad(x_nhwc, ((0, 0), (pad, pad), (pad, pad), (0, 0)))
    Hp, Wp = H + 2 * pad, W + 2 * pad
    OH = (Hp - kh) // stride + 1
    OW = (Wp - kw) // stride + 1
    cols = []
    for i in range(kh):
        for j in range(kw):
            cols.append(
                x_nhwc[:, i:i + stride * (OH - 1) + 1:stride,
                       j:j + stride * (OW - 1) + 1:stride, :])
    patches = jnp.stack(cols, axis=3).reshape(N * OH * OW, kh * kw * C)
    return patches, (N, OH, OW)


def weight_to_mat(w_oihw):
    """w[Cout, Cin, KH, KW] -> [KH*KW*Cin, Cout] matching im2col ordering."""
    Cout, Cin, KH, KW = w_oihw.shape
    return jnp.transpose(w_oihw, (2, 3, 1, 0)).reshape(KH * KW * Cin, Cout)


def im2col_s2d(x_nhwc, pad):
    """im2col for a 4x4 / stride-2 conv via space-to-depth: the conv becomes a
    2x2 / stride-1 conv on [N, Hp/2, Wp/2, 4C], so the materialized patch
    tensor is only 4x the input (vs 16x). Column order: (di, dj, pi, pj, c)."""
    N, H, W, C = x_nhwc.shape
    xp = jnp.pad(x_nhwc, ((0, 0), (pad, pad), (pad, pad), (0, 0)))
    Hp, Wp = H + 2 * pad, W + 2 * pad
    H2, W2 = Hp // 2, Wp // 2
    z = xp.reshape(N, H2, 2, W2, 2, C).transpose(0, 1, 3, 2, 4, 5)
    z = z.reshape(N, H2, W2, 4 * C)
    OH, OW = H2 - 1, W2 - 1
    cols = [z[:, di:di + OH, dj:dj + OW, :] for di in (0, 1) for dj in (0, 1)]
    patches = jnp.stack(cols, axis=3).reshape(N * OH * OW, 16 * C)
    return patches, (N, OH, OW)


def weight_to_mat_s2d(w_oihw):
    """w[Cout, Cin, 4, 4] -> [16*Cin, Cout] matching im2col_s2d ordering
    (ki = 2*di + pi, kj = 2*dj + pj)."""
    Cout, Cin, KH, KW = w_oihw.shape
    wt = w_oihw.reshape(Cout, Cin, 2, 2, 2, 2)   # (o, c, di, pi, dj, pj)
    wt = wt.transpose(2, 4, 3, 5, 1, 0)          # (di, dj, pi, pj, c, o)
    return wt.reshape(KH * KW * Cin, Cout)


# ---------------------------------------------------------------------------
# Layer wrapper
# ---------------------------------------------------------------------------
def conv_layer(x_nhwc, w, *, stride, pad, act="none", bn=False,
               out_dtype=jnp.bfloat16):
    Cout, Cin, KH, KW = w.shape
    N, H, W, _ = x_nhwc.shape
    use_s2d = (stride == 2 and KH == 4 and KW == 4
               and (H + 2 * pad) % 2 == 0 and (W + 2 * pad) % 2 == 0)
    if use_s2d:
        patches, (Nb, OH, OW) = im2col_s2d(x_nhwc, pad)
        w_mat = weight_to_mat_s2d(w)
    else:
        patches, (Nb, OH, OW) = im2col(x_nhwc, KH, KW, stride, pad)
        w_mat = weight_to_mat(w)
    M = Nb * OH * OW

    if bn:
        # Conv (raw, f32) with fused per-channel sum / sum-sq partials.
        y_pad, psum, pssq, tm = conv_matmul(
            patches, w_mat, act="none", with_stats=True,
            out_dtype=jnp.float32)
        Npad = y_pad.shape[1]
        gm = psum.shape[0] // 8
        s = psum.reshape(gm, 8, Npad)[:, 0, :].sum(axis=0)    # (Npad,)
        sq = pssq.reshape(gm, 8, Npad)[:, 0, :].sum(axis=0)   # (Npad,)
        mean = s / M                                          # padded rows = 0
        var = jnp.maximum(sq / M - mean * mean, 0.0)          # biased variance
        scale = jax.lax.rsqrt(var + 1e-5)                     # gamma = 1
        shift = -mean * scale                                 # beta  = 0
        a_pad = bn_lrelu(y_pad, scale, shift, tm, out_dtype=out_dtype)
        out = a_pad[:M, :Cout].reshape(Nb, OH, OW, Cout)
    else:
        y_pad, _ = conv_matmul(patches, w_mat, act=act, with_stats=False,
                               out_dtype=out_dtype)
        out = y_pad[:M, :Cout].reshape(Nb, OH, OW, Cout)
    return out


# ---------------------------------------------------------------------------
# The D module forward
# ---------------------------------------------------------------------------
def init_params(key, inputsize, hiddensize):
    """DCGAN-style N(0, 0.02) init for all conv weights (bias=False)."""
    ks = jax.random.split(key, 5)
    shapes = [
        (hiddensize, inputsize, 4, 4),
        (hiddensize * 2, hiddensize, 4, 4),
        (hiddensize * 4, hiddensize * 2, 4, 4),
        (hiddensize * 8, hiddensize * 4, 4, 4),
        (1, hiddensize * 8, 4, 4),
    ]
    return [0.02 * jax.random.normal(k, s, dtype=jnp.float32)
            for k, s in zip(ks, shapes)]


@jax.jit
def d_forward(x_nchw, params):
    w1, w2, w3, w4, w5 = params
    x = jnp.transpose(x_nchw, (0, 2, 3, 1)).astype(jnp.float32)  # NCHW->NHWC

    # conv1 + LeakyReLU (fused epilogue), bf16 activations between layers
    x = conv_layer(x, w1, stride=2, pad=1, act="leaky", bn=False,
                   out_dtype=jnp.bfloat16)
    # conv2/3/4 -> BatchNorm (training-mode batch stats, gamma=1/beta=0)
    #            -> LeakyReLU  (stats fused in conv epilogue, tiled normalize)
    x = conv_layer(x, w2, stride=2, pad=1, bn=True)
    x = conv_layer(x, w3, stride=2, pad=1, bn=True)
    x = conv_layer(x, w4, stride=2, pad=1, bn=True)
    # conv5 (4x4, stride 1, pad 0) + Sigmoid (fused epilogue)
    x = conv_layer(x, w5, stride=1, pad=0, act="sigmoid", bn=False,
                   out_dtype=jnp.float32)

    return jnp.transpose(x, (0, 3, 1, 2))  # back to NCHW: [N, 1, 1, 1]


if __name__ == "__main__":
    # DCGAN-compatible shapes: 64x64 spatial so the final 4x4/stride-1/pad-0
    # conv produces a 1x1 map. Small batch/hiddensize for the sanity run.
    batch, inputsize, hiddensize, spatial = 2, 3, 8, 64

    key = jax.random.PRNGKey(0)
    k_x, k_p = jax.random.split(key)
    x = jax.random.normal(k_x, (batch, inputsize, spatial, spatial),
                          dtype=jnp.float32)
    params = init_params(k_p, inputsize, hiddensize)

    out = d_forward(x, params)
    jax.block_until_ready(out)
    assert out.shape == (batch, 1, 1, 1), out.shape
    assert bool(jnp.all(jnp.isfinite(out)))
    assert bool(jnp.all((out >= 0.0) & (out <= 1.0)))  # sigmoid range
    print("KERNEL_OK")
</pallas_src>

<mosaic_0001>
module attributes {stable_mosaic.version = 11 : i64} {
  func.func @_conv_mm_kernel(%arg0: i32, %arg1: i32, %arg2: i32, %arg3: memref<512x128xbf16, #tpu.memory_space<vmem>>, %arg4: memref<128x128xbf16, #tpu.memory_space<vmem>>, %arg5: memref<512x128xbf16, #tpu.memory_space<vmem>>, %arg6: memref<512x128xf32, #tpu.memory_space<vmem>>) attributes {dimension_semantics = [#tpu.dimension_semantics<parallel>, #tpu.dimension_semantics<parallel>, #tpu.dimension_semantics<arbitrary>], iteration_bounds = array<i64: 4, 1, 1>, scalar_prefetch = 0 : i64, scratch_operands = 1 : i64, tpu.core_type = #tpu.core_type<tc>, window_params = [{transform_indices = @transform_0, window_bounds = array<i64: 512, 128>}, {transform_indices = @transform_1, window_bounds = array<i64: 128, 128>}, {transform_indices = @transform_2, window_bounds = array<i64: 512, 128>}]} {
    %c0_i32 = arith.constant 0 : i32
    %0 = arith.cmpi eq, %arg2, %c0_i32 : i32
    %1 = arith.extui %0 : i1 to i32
    %c0_i32_0 = arith.constant 0 : i32
    %2 = arith.cmpi ne, %1, %c0_i32_0 : i32
    scf.if %2 {
      %cst_10 = arith.constant 0.000000e+00 : f32
      %12 = vector.broadcast %cst_10 : f32 to vector<512x128xf32>
      %c0_11 = arith.constant 0 : index
      %c0_12 = arith.constant 0 : index
      %13 = vector.load %arg6[%c0_11, %c0_12] : memref<512x128xf32, #tpu.memory_space<vmem>>, vector<512x128xf32>
      tpu.vector_store %arg6[%c0_11, %c0_12], %12 {strides = array<i32>} : memref<512x128xf32, #tpu.memory_space<vmem>>, vector<512x128xf32>,
    } else {
    }
    %c0 = arith.constant 0 : index
    %c0_1 = arith.constant 0 : index
    %3 = vector.load %arg6[%c0, %c0_1] : memref<512x128xf32, #tpu.memory_space<vmem>>, vector<512x128xf32>
    %c0_2 = arith.constant 0 : index
    %c0_3 = arith.constant 0 : index
    %4 = vector.load %arg3[%c0_2, %c0_3] : memref<512x128xbf16, #tpu.memory_space<vmem>>, vector<512x128xbf16>
    %c0_4 = arith.constant 0 : index
    %c0_5 = arith.constant 0 : index
    %5 = vector.load %arg4[%c0_4, %c0_5] : memref<128x128xbf16, #tpu.memory_space<vmem>>, vector<128x128xbf16>
    %cst = arith.constant dense<0.000000e+00> : vector<512x128xf32>
    %6 = tpu.matmul %4, %5, %cst {dimension_numbers = #tpu.dot_dimension_numbers<[1], [0], [0], [1], [0, 0, 1, 1], [], []>} : vector<512x128xbf16>, vector<128x128xbf16>, vector<512x128xf32> -> vector<512x128xf32>
    %7 = arith.addf %3, %6 : vector<512x128xf32>
    %c0_6 = arith.constant 0 : index
    %c0_7 = arith.constant 0 : index
    %8 = vector.load %arg6[%c0_6, %c0_7] : memref<512x128xf32, #tpu.memory_space<vmem>>, vector<512x128xf32>
    tpu.vector_store %arg6[%c0_6, %c0_7], %7 {strides = array<i32>} : memref<512x128xf32, #tpu.memory_space<vmem>>, vector<512x128xf32>,
    %c0_i32_8 = arith.constant 0 : i32
    %9 = arith.cmpi eq, %arg2, %c0_i32_8 : i32
    %10 = arith.extui %9 : i1 to i32
    %c0_i32_9 = arith.constant 0 : i32
    %11 = arith.cmpi ne, %10, %c0_i32_9 : i32
    scf.if %11 {
      %c0_10 = arith.constant 0 : index
      %c0_11 = arith.constant 0 : index
      %12 = vector.load %arg6[%c0_10, %c0_11] : memref<512x128xf32, #tpu.memory_space<vmem>>, vector<512x128xf32>
      %cst_12 = arith.constant 0.000000e+00 : f32
      %13 = vector.broadcast %cst_12 : f32 to vector<512x128xf32>
      %14 = arith.cmpf ogt, %12, %13 : vector<512x128xf32>
      %cst_13 = arith.constant 2.000000e-01 : f32
      %15 = vector.broadcast %cst_13 : f32 to vector<512x128xf32>
      %16 = arith.mulf %15, %12 : vector<512x128xf32>
      %17 = arith.select %14, %12, %16 : vector<512x128xi1>, vector<512x128xf32>
      %18 = arith.truncf %17 : vector<512x128xf32> to vector<512x128xbf16>
      %c0_14 = arith.constant 0 : index
      %c0_15 = arith.constant 0 : index
      %19 = vector.load %arg5[%c0_14, %c0_15] : memref<512x128xbf16, #tpu.memory_space<vmem>>, vector<512x128xbf16>
      tpu.vector_store %arg5[%c0_14, %c0_15], %18 {strides = array<i32>} : memref<512x128xbf16, #tpu.memory_space<vmem>>, vector<512x128xbf16>,
    } else {
    }
    return
  }
  func.func @transform_0(%arg0: i32, %arg1: i32, %arg2: i32) -> (i32, i32) {
    %c0_i32 = arith.constant 0 : i32
    return %arg0, %arg2 : i32, i32
  }
  func.func @transform_1(%arg0: i32, %arg1: i32, %arg2: i32) -> (i32, i32) {
    %c0_i32 = arith.constant 0 : i32
    return %arg2, %arg1 : i32, i32
  }
  func.func @transform_2(%arg0: i32, %arg1: i32, %arg2: i32) -> (i32, i32) {
    %c0_i32 = arith.constant 0 : i32
    return %arg0, %arg1 : i32, i32
  }
}

module attributes {stable_mosaic.version = 11 : i64} {
  func.func @_conv_mm_stats_kernel(%arg0: i32, %arg1: i32, %arg2: i32, %arg3: memref<512x128xbf16, #tpu.memory_space<vmem>>, %arg4: memref<128x128xbf16, #tpu.memory_space<vmem>>, %arg5: memref<512x128xf32, #tpu.memory_space<vmem>>, %arg6: memref<8x128xf32, #tpu.memory_space<vmem>>, %arg7: memref<8x128xf32, #tpu.memory_space<vmem>>, %arg8: memref<512x128xf32, #tpu.memory_space<vmem>>) attributes {dimension_semantics = [#tpu.dimension_semantics<parallel>, #tpu.dimension_semantics<parallel>, #tpu.dimension_semantics<arbitrary>], iteration_bounds = array<i64: 1, 1, 1>, scalar_prefetch = 0 : i64, scratch_operands = 1 : i64, tpu.core_type = #tpu.core_type<tc>, window_params = [{transform_indices = @transform_0, window_bounds = array<i64: 512, 128>}, {transform_indices = @transform_1, window_bounds = array<i64: 128, 128>}, {transform_indices = @transform_2, window_bounds = array<i64: 512, 128>}, {transform_indices = @transform_3, window_bounds = array<i64: 8, 128>}, {transform_indices = @transform_4, window_bounds = array<i64: 8, 128>}]} {
    %c0_i32 = arith.constant 0 : i32
    %0 = arith.cmpi eq, %arg2, %c0_i32 : i32
    %1 = arith.extui %0 : i1 to i32
    %c0_i32_0 = arith.constant 0 : i32
    %2 = arith.cmpi ne, %1, %c0_i32_0 : i32
    scf.if %2 {
      %cst_10 = arith.constant 0.000000e+00 : f32
      %12 = vector.broadcast %cst_10 : f32 to vector<512x128xf32>
      %c0_11 = arith.constant 0 : index
      %c0_12 = arith.constant 0 : index
      %13 = vector.load %arg8[%c0_11, %c0_12] : memref<512x128xf32, #tpu.memory_space<vmem>>, vector<512x128xf32>
      tpu.vector_store %arg8[%c0_11, %c0_12], %12 {strides = array<i32>} : memref<512x128xf32, #tpu.memory_space<vmem>>, vector<512x128xf32>,
    } else {
    }
    %c0 = arith.constant 0 : index
    %c0_1 = arith.constant 0 : index
    %3 = vector.load %arg8[%c0, %c0_1] : memref<512x128xf32, #tpu.memory_space<vmem>>, vector<512x128xf32>
    %c0_2 = arith.constant 0 : index
    %c0_3 = arith.constant 0 : index
    %4 = vector.load %arg3[%c0_2, %c0_3] : memref<512x128xbf16, #tpu.memory_space<vmem>>, vector<512x128xbf16>
    %c0_4 = arith.constant 0 : index
    %c0_5 = arith.constant 0 : index
    %5 = vector.load %arg4[%c0_4, %c0_5] : memref<128x128xbf16, #tpu.memory_space<vmem>>, vector<128x128xbf16>
    %cst = arith.constant dense<0.000000e+00> : vector<512x128xf32>
    %6 = tpu.matmul %4, %5, %cst {dimension_numbers = #tpu.dot_dimension_numbers<[1], [0], [0], [1], [0, 0, 1, 1], [], []>} : vector<512x128xbf16>, vector<128x128xbf16>, vector<512x128xf32> -> vector<512x128xf32>
    %7 = arith.addf %3, %6 : vector<512x128xf32>
    %c0_6 = arith.constant 0 : index
    %c0_7 = arith.constant 0 : index
    %8 = vector.load %arg8[%c0_6, %c0_7] : memref<512x128xf32, #tpu.memory_space<vmem>>, vector<512x128xf32>
    tpu.vector_store %arg8[%c0_6, %c0_7], %7 {strides = array<i32>} : memref<512x128xf32, #tpu.memory_space<vmem>>, vector<512x128xf32>,
    %c0_i32_8 = arith.constant 0 : i32
    %9 = arith.cmpi eq, %arg2, %c0_i32_8 : i32
    %10 = arith.extui %9 : i1 to i32
    %c0_i32_9 = arith.constant 0 : i32
    %11 = arith.cmpi ne, %10, %c0_i32_9 : i32
    scf.if %11 {
      %c0_10 = arith.constant 0 : index
      %c0_11 = arith.constant 0 : index
      %12 = vector.load %arg8[%c0_10, %c0_11] : memref<512x128xf32, #tpu.memory_space<vmem>>, vector<512x128xf32>
      %c0_12 = arith.constant 0 : index
      %c0_13 = arith.constant 0 : index
      %13 = vector.load %arg5[%c0_12, %c0_13] : memref<512x128xf32, #tpu.memory_space<vmem>>, vector<512x128xf32>
      tpu.vector_store %arg5[%c0_12, %c0_13], %12 {strides = array<i32>} : memref<512x128xf32, #tpu.memory_space<vmem>>, vector<512x128xf32>,
      %cst_14 = arith.constant dense<0.000000e+00> : vector<128xf32>
      %14 = vector.multi_reduction <add>, %12, %cst_14 [0] : vector<512x128xf32> to vector<128xf32>
      %15 = vector.shape_cast %14 : vector<128xf32> to vector<1x128xf32>
      %16 = arith.mulf %12, %12 : vector<512x128xf32>
      %cst_15 = arith.constant dense<0.000000e+00> : vector<128xf32>
      %17 = vector.multi_reduction <add>, %16, %cst_15 [0] : vector<512x128xf32> to vector<128xf32>
      %18 = vector.shape_cast %17 : vector<128xf32> to vector<1x128xf32>
      %19 = vector.shape_cast %15 : vector<1x128xf32> to vector<1x128xf32>
      %20 = vector.broadcast %19 : vector<1x128xf32> to vector<8x128xf32>
      %c0_16 = arith.constant 0 : index
      %c0_17 = arith.constant 0 : index
      %21 = vector.load %arg6[%c0_16, %c0_17] : memref<8x128xf32, #tpu.memory_space<vmem>>, vector<8x128xf32>
      tpu.vector_store %arg6[%c0_16, %c0_17], %20 {strides = array<i32>} : memref<8x128xf32, #tpu.memory_space<vmem>>, vector<8x128xf32>,
      %22 = vector.shape_cast %18 : vector<1x128xf32> to vector<1x128xf32>
      %23 = vector.broadcast %22 : vector<1x128xf32> to vector<8x128xf32>
      %c0_18 = arith.constant 0 : index
      %c0_19 = arith.constant 0 : index
      %24 = vector.load %arg7[%c0_18, %c0_19] : memref<8x128xf32, #tpu.memory_space<vmem>>, vector<8x128xf32>
      tpu.vector_store %arg7[%c0_18, %c0_19], %23 {strides = array<i32>} : memref<8x128xf32, #tpu.memory_space<vmem>>, vector<8x128xf32>,
    } else {
    }
    return
  }
  func.func @transform_0(%arg0: i32, %arg1: i32, %arg2: i32) -> (i32, i32) {
    %c0_i32 = arith.constant 0 : i32
    return %arg0, %arg2 : i32, i32
  }
  func.func @transform_1(%arg0: i32, %arg1: i32, %arg2: i32) -> (i32, i32) {
    %c0_i32 = arith.constant 0 : i32
    return %arg2, %arg1 : i32, i32
  }
  func.func @transform_2(%arg0: i32, %arg1: i32, %arg2: i32) -> (i32, i32) {
    %c0_i32 = arith.constant 0 : i32
    return %arg0, %arg1 : i32, i32
  }
  func.func @transform_3(%arg0: i32, %arg1: i32, %arg2: i32) -> (i32, i32) {
    %c0_i32 = arith.constant 0 : i32
    return %arg0, %arg1 : i32, i32
  }
  func.func @transform_4(%arg0: i32, %arg1: i32, %arg2: i32) -> (i32, i32) {
    %c0_i32 = arith.constant 0 : i32
    return %arg0, %arg1 : i32, i32
  }
}

module attributes {stable_mosaic.version = 11 : i64} {
  func.func @_bn_lrelu_kernel(%arg0: i32, %arg1: memref<512x128xf32, #tpu.memory_space<vmem>>, %arg2: memref<8x128xf32, #tpu.memory_space<vmem>>, %arg3: memref<8x128xf32, #tpu.memory_space<vmem>>, %arg4: memref<512x128xbf16, #tpu.memory_space<vmem>>) attributes {dimension_semantics = [#tpu.dimension_semantics<parallel>], iteration_bounds = array<i64: 1>, scalar_prefetch = 0 : i64, scratch_operands = 0 : i64, tpu.core_type = #tpu.core_type<tc>, window_params = [{transform_indices = @transform_0, window_bounds = array<i64: 512, 128>}, {pipeline_mode = #tpu.pipeline_mode<synchronous>, transform_indices = @transform_1, window_bounds = array<i64: 8, 128>}, {pipeline_mode = #tpu.pipeline_mode<synchronous>, transform_indices = @transform_2, window_bounds = array<i64: 8, 128>}, {transform_indices = @transform_3, window_bounds = array<i64: 512, 128>}]} {
    %c0 = arith.constant 0 : index
    %c0_0 = arith.constant 0 : index
    %0 = vector.load %arg1[%c0, %c0_0] : memref<512x128xf32, #tpu.memory_space<vmem>>, vector<512x128xf32>
    %c0_1 = arith.constant 0 : index
    %c0_2 = arith.constant 0 : index
    %1 = vector.load %arg2[%c0_1, %c0_2] : memref<8x128xf32, #tpu.memory_space<vmem>>, vector<1x128xf32>
    %2 = vector.broadcast %1 : vector<1x128xf32> to vector<512x128xf32>
    %3 = arith.mulf %0, %2 : vector<512x128xf32>
    %c0_3 = arith.constant 0 : index
    %c0_4 = arith.constant 0 : index
    %4 = vector.load %arg3[%c0_3, %c0_4] : memref<8x128xf32, #tpu.memory_space<vmem>>, vector<1x128xf32>
    %5 = vector.broadcast %4 : vector<1x128xf32> to vector<512x128xf32>
    %6 = arith.addf %3, %5 : vector<512x128xf32>
    %cst = arith.constant 0.000000e+00 : f32
    %7 = vector.broadcast %cst : f32 to vector<512x128xf32>
    %8 = arith.cmpf ogt, %6, %7 : vector<512x128xf32>
    %cst_5 = arith.constant 2.000000e-01 : f32
    %9 = vector.broadcast %cst_5 : f32 to vector<512x128xf32>
    %10 = arith.mulf %9, %6 : vector<512x128xf32>
    %11 = arith.select %8, %6, %10 : vector<512x128xi1>, vector<512x128xf32>
    %12 = arith.truncf %11 : vector<512x128xf32> to vector<512x128xbf16>
    %c0_6 = arith.constant 0 : index
    %c0_7 = arith.constant 0 : index
    %13 = vector.load %arg4[%c0_6, %c0_7] : memref<512x128xbf16, #tpu.memory_space<vmem>>, vector<512x128xbf16>
    tpu.vector_store %arg4[%c0_6, %c0_7], %12 {strides = array<i32>} : memref<512x128xbf16, #tpu.memory_space<vmem>>, vector<512x128xbf16>,
    return
  }
  func.func @transform_0(%arg0: i32) -> (i32, i32) {
    %c0_i32 = arith.constant 0 : i32
    %c0_i32_0 = arith.constant 0 : i32
    return %arg0, %c0_i32 : i32, i32
  }
  func.func @transform_1(%arg0: i32) -> (i32, i32) {
    %c0_i32 = arith.constant 0 : i32
    %c0_i32_0 = arith.constant 0 : i32
    %c0_i32_1 = arith.constant 0 : i32
    return %c0_i32, %c0_i32_0 : i32, i32
  }
  func.func @transform_2(%arg0: i32) -> (i32, i32) {
    %c0_i32 = arith.constant 0 : i32
    %c0_i32_0 = arith.constant 0 : i32
    %c0_i32_1 = arith.constant 0 : i32
    return %c0_i32, %c0_i32_0 : i32, i32
  }
  func.func @transform_3(%arg0: i32) -> (i32, i32) {
    %c0_i32 = arith.constant 0 : i32
    %c0_i32_0 = arith.constant 0 : i32
    return %arg0, %c0_i32 : i32, i32
  }
}

module attributes {stable_mosaic.version = 11 : i64} {
  func.func @_conv_mm_stats_kernel(%arg0: i32, %arg1: i32, %arg2: i32, %arg3: memref<128x256xbf16, #tpu.memory_space<vmem>>, %arg4: memref<256x128xbf16, #tpu.memory_space<vmem>>, %arg5: memref<128x128xf32, #tpu.memory_space<vmem>>, %arg6: memref<8x128xf32, #tpu.memory_space<vmem>>, %arg7: memref<8x128xf32, #tpu.memory_space<vmem>>, %arg8: memref<128x128xf32, #tpu.memory_space<vmem>>) attributes {dimension_semantics = [#tpu.dimension_semantics<parallel>, #tpu.dimension_semantics<parallel>, #tpu.dimension_semantics<arbitrary>], iteration_bounds = array<i64: 1, 1, 1>, scalar_prefetch = 0 : i64, scratch_operands = 1 : i64, tpu.core_type = #tpu.core_type<tc>, window_params = [{transform_indices = @transform_0, window_bounds = array<i64: 128, 256>}, {transform_indices = @transform_1, window_bounds = array<i64: 256, 128>}, {transform_indices = @transform_2, window_bounds = array<i64: 128, 128>}, {transform_indices = @transform_3, window_bounds = array<i64: 8, 128>}, {transform_indices = @transform_4, window_bounds = array<i64: 8, 128>}]} {
    %c0_i32 = arith.constant 0 : i32
    %0 = arith.cmpi eq, %arg2, %c0_i32 : i32
    %1 = arith.extui %0 : i1 to i32
    %c0_i32_0 = arith.constant 0 : i32
    %2 = arith.cmpi ne, %1, %c0_i32_0 : i32
    scf.if %2 {
      %cst_10 = arith.constant 0.000000e+00 : f32
      %12 = vector.broadcast %cst_10 : f32 to vector<128x128xf32>
      %c0_11 = arith.constant 0 : index
      %c0_12 = arith.constant 0 : index
      %13 = vector.load %arg8[%c0_11, %c0_12] : memref<128x128xf32, #tpu.memory_space<vmem>>, vector<128x128xf32>
      tpu.vector_store %arg8[%c0_11, %c0_12], %12 {strides = array<i32>} : memref<128x128xf32, #tpu.memory_space<vmem>>, vector<128x128xf32>,
    } else {
    }
    %c0 = arith.constant 0 : index
    %c0_1 = arith.constant 0 : index
    %3 = vector.load %arg8[%c0, %c0_1] : memref<128x128xf32, #tpu.memory_space<vmem>>, vector<128x128xf32>
    %c0_2 = arith.constant 0 : index
    %c0_3 = arith.constant 0 : index
    %4 = vector.load %arg3[%c0_2, %c0_3] : memref<128x256xbf16, #tpu.memory_space<vmem>>, vector<128x256xbf16>
    %c0_4 = arith.constant 0 : index
    %c0_5 = arith.constant 0 : index
    %5 = vector.load %arg4[%c0_4, %c0_5] : memref<256x128xbf16, #tpu.memory_space<vmem>>, vector<256x128xbf16>
    %cst = arith.constant dense<0.000000e+00> : vector<128x128xf32>
    %6 = tpu.matmul %4, %5, %cst {dimension_numbers = #tpu.dot_dimension_numbers<[1], [0], [0], [1], [0, 0, 1, 1], [], []>} : vector<128x256xbf16>, vector<256x128xbf16>, vector<128x128xf32> -> vector<128x128xf32>
    %7 = arith.addf %3, %6 : vector<128x128xf32>
    %c0_6 = arith.constant 0 : index
    %c0_7 = arith.constant 0 : index
    %8 = vector.load %arg8[%c0_6, %c0_7] : memref<128x128xf32, #tpu.memory_space<vmem>>, vector<128x128xf32>
    tpu.vector_store %arg8[%c0_6, %c0_7], %7 {strides = array<i32>} : memref<128x128xf32, #tpu.memory_space<vmem>>, vector<128x128xf32>,
    %c0_i32_8 = arith.constant 0 : i32
    %9 = arith.cmpi eq, %arg2, %c0_i32_8 : i32
    %10 = arith.extui %9 : i1 to i32
    %c0_i32_9 = arith.constant 0 : i32
    %11 = arith.cmpi ne, %10, %c0_i32_9 : i32
    scf.if %11 {
      %c0_10 = arith.constant 0 : index
      %c0_11 = arith.constant 0 : index
      %12 = vector.load %arg8[%c0_10, %c0_11] : memref<128x128xf32, #tpu.memory_space<vmem>>, vector<128x128xf32>
      %c0_12 = arith.constant 0 : index
      %c0_13 = arith.constant 0 : index
      %13 = vector.load %arg5[%c0_12, %c0_13] : memref<128x128xf32, #tpu.memory_space<vmem>>, vector<128x128xf32>
      tpu.vector_store %arg5[%c0_12, %c0_13], %12 {strides = array<i32>} : memref<128x128xf32, #tpu.memory_space<vmem>>, vector<128x128xf32>,
      %cst_14 = arith.constant dense<0.000000e+00> : vector<128xf32>
      %14 = vector.multi_reduction <add>, %12, %cst_14 [0] : vector<128x128xf32> to vector<128xf32>
      %15 = vector.shape_cast %14 : vector<128xf32> to vector<1x128xf32>
      %16 = arith.mulf %12, %12 : vector<128x128xf32>
      %cst_15 = arith.constant dense<0.000000e+00> : vector<128xf32>
      %17 = vector.multi_reduction <add>, %16, %cst_15 [0] : vector<128x128xf32> to vector<128xf32>
      %18 = vector.shape_cast %17 : vector<128xf32> to vector<1x128xf32>
      %19 = vector.shape_cast %15 : vector<1x128xf32> to vector<1x128xf32>
      %20 = vector.broadcast %19 : vector<1x128xf32> to vector<8x128xf32>
      %c0_16 = arith.constant 0 : index
      %c0_17 = arith.constant 0 : index
      %21 = vector.load %arg6[%c0_16, %c0_17] : memref<8x128xf32, #tpu.memory_space<vmem>>, vector<8x128xf32>
      tpu.vector_store %arg6[%c0_16, %c0_17], %20 {strides = array<i32>} : memref<8x128xf32, #tpu.memory_space<vmem>>, vector<8x128xf32>,
      %22 = vector.shape_cast %18 : vector<1x128xf32> to vector<1x128xf32>
      %23 = vector.broadcast %22 : vector<1x128xf32> to vector<8x128xf32>
      %c0_18 = arith.constant 0 : index
      %c0_19 = arith.constant 0 : index
      %24 = vector.load %arg7[%c0_18, %c0_19] : memref<8x128xf32, #tpu.memory_space<vmem>>, vector<8x128xf32>
      tpu.vector_store %arg7[%c0_18, %c0_19], %23 {strides = array<i32>} : memref<8x128xf32, #tpu.memory_space<vmem>>, vector<8x128xf32>,
    } else {
    }
    return
  }
  func.func @transform_0(%arg0: i32, %arg1: i32, %arg2: i32) -> (i32, i32) {
    %c0_i32 = arith.constant 0 : i32
    return %arg0, %arg2 : i32, i32
  }
  func.func @transform_1(%arg0: i32, %arg1: i32, %arg2: i32) -> (i32, i32) {
    %c0_i32 = arith.constant 0 : i32
    return %arg2, %arg1 : i32, i32
  }
  func.func @transform_2(%arg0: i32, %arg1: i32, %arg2: i32) -> (i32, i32) {
    %c0_i32 = arith.constant 0 : i32
    return %arg0, %arg1 : i32, i32
  }
  func.func @transform_3(%arg0: i32, %arg1: i32, %arg2: i32) -> (i32, i32) {
    %c0_i32 = arith.constant 0 : i32
    return %arg0, %arg1 : i32, i32
  }
  func.func @transform_4(%arg0: i32, %arg1: i32, %arg2: i32) -> (i32, i32) {
    %c0_i32 = arith.constant 0 : i32
    return %arg0, %arg1 : i32, i32
  }
}

module attributes {stable_mosaic.version = 11 : i64} {
  func.func @_bn_lrelu_kernel(%arg0: i32, %arg1: memref<128x128xf32, #tpu.memory_space<vmem>>, %arg2: memref<8x128xf32, #tpu.memory_space<vmem>>, %arg3: memref<8x128xf32, #tpu.memory_space<vmem>>, %arg4: memref<128x128xbf16, #tpu.memory_space<vmem>>) attributes {dimension_semantics = [#tpu.dimension_semantics<parallel>], iteration_bounds = array<i64: 1>, scalar_prefetch = 0 : i64, scratch_operands = 0 : i64, tpu.core_type = #tpu.core_type<tc>, window_params = [{transform_indices = @transform_0, window_bounds = array<i64: 128, 128>}, {pipeline_mode = #tpu.pipeline_mode<synchronous>, transform_indices = @transform_1, window_bounds = array<i64: 8, 128>}, {pipeline_mode = #tpu.pipeline_mode<synchronous>, transform_indices = @transform_2, window_bounds = array<i64: 8, 128>}, {transform_indices = @transform_3, window_bounds = array<i64: 128, 128>}]} {
    %c0 = arith.constant 0 : index
    %c0_0 = arith.constant 0 : index
    %0 = vector.load %arg1[%c0, %c0_0] : memref<128x128xf32, #tpu.memory_space<vmem>>, vector<128x128xf32>
    %c0_1 = arith.constant 0 : index
    %c0_2 = arith.constant 0 : index
    %1 = vector.load %arg2[%c0_1, %c0_2] : memref<8x128xf32, #tpu.memory_space<vmem>>, vector<1x128xf32>
    %2 = vector.broadcast %1 : vector<1x128xf32> to vector<128x128xf32>
    %3 = arith.mulf %0, %2 : vector<128x128xf32>
    %c0_3 = arith.constant 0 : index
    %c0_4 = arith.constant 0 : index
    %4 = vector.load %arg3[%c0_3, %c0_4] : memref<8x128xf32, #tpu.memory_space<vmem>>, vector<1x128xf32>
    %5 = vector.broadcast %4 : vector<1x128xf32> to vector<128x128xf32>
    %6 = arith.addf %3, %5 : vector<128x128xf32>
    %cst = arith.constant 0.000000e+00 : f32
    %7 = vector.broadcast %cst : f32 to vector<128x128xf32>
    %8 = arith.cmpf ogt, %6, %7 : vector<128x128xf32>
    %cst_5 = arith.constant 2.000000e-01 : f32
    %9 = vector.broadcast %cst_5 : f32 to vector<128x128xf32>
    %10 = arith.mulf %9, %6 : vector<128x128xf32>
    %11 = arith.select %8, %6, %10 : vector<128x128xi1>, vector<128x128xf32>
    %12 = arith.truncf %11 : vector<128x128xf32> to vector<128x128xbf16>
    %c0_6 = arith.constant 0 : index
    %c0_7 = arith.constant 0 : index
    %13 = vector.load %arg4[%c0_6, %c0_7] : memref<128x128xbf16, #tpu.memory_space<vmem>>, vector<128x128xbf16>
    tpu.vector_store %arg4[%c0_6, %c0_7], %12 {strides = array<i32>} : memref<128x128xbf16, #tpu.memory_space<vmem>>, vector<128x128xbf16>,
    return
  }
  func.func @transform_0(%arg0: i32) -> (i32, i32) {
    %c0_i32 = arith.constant 0 : i32
    %c0_i32_0 = arith.constant 0 : i32
    return %arg0, %c0_i32 : i32, i32
  }
  func.func @transform_1(%arg0: i32) -> (i32, i32) {
    %c0_i32 = arith.constant 0 : i32
    %c0_i32_0 = arith.constant 0 : i32
    %c0_i32_1 = arith.constant 0 : i32
    return %c0_i32, %c0_i32_0 : i32, i32
  }
  func.func @transform_2(%arg0: i32) -> (i32, i32) {
    %c0_i32 = arith.constant 0 : i32
    %c0_i32_0 = arith.constant 0 : i32
    %c0_i32_1 = arith.constant 0 : i32
    return %c0_i32, %c0_i32_0 : i32, i32
  }
  func.func @transform_3(%arg0: i32) -> (i32, i32) {
    %c0_i32 = arith.constant 0 : i32
    %c0_i32_0 = arith.constant 0 : i32
    return %arg0, %c0_i32 : i32, i32
  }
}

module attributes {stable_mosaic.version = 11 : i64} {
  func.func @_conv_mm_stats_kernel(%arg0: i32, %arg1: i32, %arg2: i32, %arg3: memref<32x512xbf16, #tpu.memory_space<vmem>>, %arg4: memref<512x128xbf16, #tpu.memory_space<vmem>>, %arg5: memref<32x128xf32, #tpu.memory_space<vmem>>, %arg6: memref<8x128xf32, #tpu.memory_space<vmem>>, %arg7: memref<8x128xf32, #tpu.memory_space<vmem>>, %arg8: memref<32x128xf32, #tpu.memory_space<vmem>>) attributes {dimension_semantics = [#tpu.dimension_semantics<parallel>, #tpu.dimension_semantics<parallel>, #tpu.dimension_semantics<arbitrary>], iteration_bounds = array<i64: 1, 1, 1>, scalar_prefetch = 0 : i64, scratch_operands = 1 : i64, tpu.core_type = #tpu.core_type<tc>, window_params = [{transform_indices = @transform_0, window_bounds = array<i64: 32, 512>}, {transform_indices = @transform_1, window_bounds = array<i64: 512, 128>}, {transform_indices = @transform_2, window_bounds = array<i64: 32, 128>}, {transform_indices = @transform_3, window_bounds = array<i64: 8, 128>}, {transform_indices = @transform_4, window_bounds = array<i64: 8, 128>}]} {
    %c0_i32 = arith.constant 0 : i32
    %0 = arith.cmpi eq, %arg2, %c0_i32 : i32
    %1 = arith.extui %0 : i1 to i32
    %c0_i32_0 = arith.constant 0 : i32
    %2 = arith.cmpi ne, %1, %c0_i32_0 : i32
    scf.if %2 {
      %cst_10 = arith.constant 0.000000e+00 : f32
      %12 = vector.broadcast %cst_10 : f32 to vector<32x128xf32>
      %c0_11 = arith.constant 0 : index
      %c0_12 = arith.constant 0 : index
      %13 = vector.load %arg8[%c0_11, %c0_12] : memref<32x128xf32, #tpu.memory_space<vmem>>, vector<32x128xf32>
      tpu.vector_store %arg8[%c0_11, %c0_12], %12 {strides = array<i32>} : memref<32x128xf32, #tpu.memory_space<vmem>>, vector<32x128xf32>,
    } else {
    }
    %c0 = arith.constant 0 : index
    %c0_1 = arith.constant 0 : index
    %3 = vector.load %arg8[%c0, %c0_1] : memref<32x128xf32, #tpu.memory_space<vmem>>, vector<32x128xf32>
    %c0_2 = arith.constant 0 : index
    %c0_3 = arith.constant 0 : index
    %4 = vector.load %arg3[%c0_2, %c0_3] : memref<32x512xbf16, #tpu.memory_space<vmem>>, vector<32x512xbf16>
    %c0_4 = arith.constant 0 : index
    %c0_5 = arith.constant 0 : index
    %5 = vector.load %arg4[%c0_4, %c0_5] : memref<512x128xbf16, #tpu.memory_space<vmem>>, vector<512x128xbf16>
    %cst = arith.constant dense<0.000000e+00> : vector<32x128xf32>
    %6 = tpu.matmul %4, %5, %cst {dimension_numbers = #tpu.dot_dimension_numbers<[1], [0], [0], [1], [0, 0, 1, 1], [], []>} : vector<32x512xbf16>, vector<512x128xbf16>, vector<32x128xf32> -> vector<32x128xf32>
    %7 = arith.addf %3, %6 : vector<32x128xf32>
    %c0_6 = arith.constant 0 : index
    %c0_7 = arith.constant 0 : index
    %8 = vector.load %arg8[%c0_6, %c0_7] : memref<32x128xf32, #tpu.memory_space<vmem>>, vector<32x128xf32>
    tpu.vector_store %arg8[%c0_6, %c0_7], %7 {strides = array<i32>} : memref<32x128xf32, #tpu.memory_space<vmem>>, vector<32x128xf32>,
    %c0_i32_8 = arith.constant 0 : i32
    %9 = arith.cmpi eq, %arg2, %c0_i32_8 : i32
    %10 = arith.extui %9 : i1 to i32
    %c0_i32_9 = arith.constant 0 : i32
    %11 = arith.cmpi ne, %10, %c0_i32_9 : i32
    scf.if %11 {
      %c0_10 = arith.constant 0 : index
      %c0_11 = arith.constant 0 : index
      %12 = vector.load %arg8[%c0_10, %c0_11] : memref<32x128xf32, #tpu.memory_space<vmem>>, vector<32x128xf32>
      %c0_12 = arith.constant 0 : index
      %c0_13 = arith.constant 0 : index
      %13 = vector.load %arg5[%c0_12, %c0_13] : memref<32x128xf32, #tpu.memory_space<vmem>>, vector<32x128xf32>
      tpu.vector_store %arg5[%c0_12, %c0_13], %12 {strides = array<i32>} : memref<32x128xf32, #tpu.memory_space<vmem>>, vector<32x128xf32>,
      %cst_14 = arith.constant dense<0.000000e+00> : vector<128xf32>
      %14 = vector.multi_reduction <add>, %12, %cst_14 [0] : vector<32x128xf32> to vector<128xf32>
      %15 = vector.shape_cast %14 : vector<128xf32> to vector<1x128xf32>
      %16 = arith.mulf %12, %12 : vector<32x128xf32>
      %cst_15 = arith.constant dense<0.000000e+00> : vector<128xf32>
      %17 = vector.multi_reduction <add>, %16, %cst_15 [0] : vector<32x128xf32> to vector<128xf32>
      %18 = vector.shape_cast %17 : vector<128xf32> to vector<1x128xf32>
      %19 = vector.shape_cast %15 : vector<1x128xf32> to vector<1x128xf32>
      %20 = vector.broadcast %19 : vector<1x128xf32> to vector<8x128xf32>
      %c0_16 = arith.constant 0 : index
      %c0_17 = arith.constant 0 : index
      %21 = vector.load %arg6[%c0_16, %c0_17] : memref<8x128xf32, #tpu.memory_space<vmem>>, vector<8x128xf32>
      tpu.vector_store %arg6[%c0_16, %c0_17], %20 {strides = array<i32>} : memref<8x128xf32, #tpu.memory_space<vmem>>, vector<8x128xf32>,
      %22 = vector.shape_cast %18 : vector<1x128xf32> to vector<1x128xf32>
      %23 = vector.broadcast %22 : vector<1x128xf32> to vector<8x128xf32>
      %c0_18 = arith.constant 0 : index
      %c0_19 = arith.constant 0 : index
      %24 = vector.load %arg7[%c0_18, %c0_19] : memref<8x128xf32, #tpu.memory_space<vmem>>, vector<8x128xf32>
      tpu.vector_store %arg7[%c0_18, %c0_19], %23 {strides = array<i32>} : memref<8x128xf32, #tpu.memory_space<vmem>>, vector<8x128xf32>,
    } else {
    }
    return
  }
  func.func @transform_0(%arg0: i32, %arg1: i32, %arg2: i32) -> (i32, i32) {
    %c0_i32 = arith.constant 0 : i32
    return %arg0, %arg2 : i32, i32
  }
  func.func @transform_1(%arg0: i32, %arg1: i32, %arg2: i32) -> (i32, i32) {
    %c0_i32 = arith.constant 0 : i32
    return %arg2, %arg1 : i32, i32
  }
  func.func @transform_2(%arg0: i32, %arg1: i32, %arg2: i32) -> (i32, i32) {
    %c0_i32 = arith.constant 0 : i32
    return %arg0, %arg1 : i32, i32
  }
  func.func @transform_3(%arg0: i32, %arg1: i32, %arg2: i32) -> (i32, i32) {
    %c0_i32 = arith.constant 0 : i32
    return %arg0, %arg1 : i32, i32
  }
  func.func @transform_4(%arg0: i32, %arg1: i32, %arg2: i32) -> (i32, i32) {
    %c0_i32 = arith.constant 0 : i32
    return %arg0, %arg1 : i32, i32
  }
}

module attributes {stable_mosaic.version = 11 : i64} {
  func.func @_bn_lrelu_kernel(%arg0: i32, %arg1: memref<32x128xf32, #tpu.memory_space<vmem>>, %arg2: memref<8x128xf32, #tpu.memory_space<vmem>>, %arg3: memref<8x128xf32, #tpu.memory_space<vmem>>, %arg4: memref<32x128xbf16, #tpu.memory_space<vmem>>) attributes {dimension_semantics = [#tpu.dimension_semantics<parallel>], iteration_bounds = array<i64: 1>, scalar_prefetch = 0 : i64, scratch_operands = 0 : i64, tpu.core_type = #tpu.core_type<tc>, window_params = [{transform_indices = @transform_0, window_bounds = array<i64: 32, 128>}, {pipeline_mode = #tpu.pipeline_mode<synchronous>, transform_indices = @transform_1, window_bounds = array<i64: 8, 128>}, {pipeline_mode = #tpu.pipeline_mode<synchronous>, transform_indices = @transform_2, window_bounds = array<i64: 8, 128>}, {transform_indices = @transform_3, window_bounds = array<i64: 32, 128>}]} {
    %c0 = arith.constant 0 : index
    %c0_0 = arith.constant 0 : index
    %0 = vector.load %arg1[%c0, %c0_0] : memref<32x128xf32, #tpu.memory_space<vmem>>, vector<32x128xf32>
    %c0_1 = arith.constant 0 : index
    %c0_2 = arith.constant 0 : index
    %1 = vector.load %arg2[%c0_1, %c0_2] : memref<8x128xf32, #tpu.memory_space<vmem>>, vector<1x128xf32>
    %2 = vector.broadcast %1 : vector<1x128xf32> to vector<32x128xf32>
    %3 = arith.mulf %0, %2 : vector<32x128xf32>
    %c0_3 = arith.constant 0 : index
    %c0_4 = arith.constant 0 : index
    %4 = vector.load %arg3[%c0_3, %c0_4] : memref<8x128xf32, #tpu.memory_space<vmem>>, vector<1x128xf32>
    %5 = vector.broadcast %4 : vector<1x128xf32> to vector<32x128xf32>
    %6 = arith.addf %3, %5 : vector<32x128xf32>
    %cst = arith.constant 0.000000e+00 : f32
    %7 = vector.broadcast %cst : f32 to vector<32x128xf32>
    %8 = arith.cmpf ogt, %6, %7 : vector<32x128xf32>
    %cst_5 = arith.constant 2.000000e-01 : f32
    %9 = vector.broadcast %cst_5 : f32 to vector<32x128xf32>
    %10 = arith.mulf %9, %6 : vector<32x128xf32>
    %11 = arith.select %8, %6, %10 : vector<32x128xi1>, vector<32x128xf32>
    %12 = arith.truncf %11 : vector<32x128xf32> to vector<32x128xbf16>
    %c0_6 = arith.constant 0 : index
    %c0_7 = arith.constant 0 : index
    %13 = vector.load %arg4[%c0_6, %c0_7] : memref<32x128xbf16, #tpu.memory_space<vmem>>, vector<32x128xbf16>
    tpu.vector_store %arg4[%c0_6, %c0_7], %12 {strides = array<i32>} : memref<32x128xbf16, #tpu.memory_space<vmem>>, vector<32x128xbf16>,
    return
  }
  func.func @transform_0(%arg0: i32) -> (i32, i32) {
    %c0_i32 = arith.constant 0 : i32
    %c0_i32_0 = arith.constant 0 : i32
    return %arg0, %c0_i32 : i32, i32
  }
  func.func @transform_1(%arg0: i32) -> (i32, i32) {
    %c0_i32 = arith.constant 0 : i32
    %c0_i32_0 = arith.constant 0 : i32
    %c0_i32_1 = arith.constant 0 : i32
    return %c0_i32, %c0_i32_0 : i32, i32
  }
  func.func @transform_2(%arg0: i32) -> (i32, i32) {
    %c0_i32 = arith.constant 0 : i32
    %c0_i32_0 = arith.constant 0 : i32
    %c0_i32_1 = arith.constant 0 : i32
    return %c0_i32, %c0_i32_0 : i32, i32
  }
  func.func @transform_3(%arg0: i32) -> (i32, i32) {
    %c0_i32 = arith.constant 0 : i32
    %c0_i32_0 = arith.constant 0 : i32
    return %arg0, %c0_i32 : i32, i32
  }
}

module attributes {stable_mosaic.version = 11 : i64} {
  func.func @_conv_mm_kernel(%arg0: i32, %arg1: i32, %arg2: i32, %arg3: memref<16x512xbf16, #tpu.memory_space<vmem>>, %arg4: memref<512x128xbf16, #tpu.memory_space<vmem>>, %arg5: memref<16x128xf32, #tpu.memory_space<vmem>>, %arg6: memref<16x128xf32, #tpu.memory_space<vmem>>) attributes {dimension_semantics = [#tpu.dimension_semantics<parallel>, #tpu.dimension_semantics<parallel>, #tpu.dimension_semantics<arbitrary>], iteration_bounds = array<i64: 1, 1, 2>, scalar_prefetch = 0 : i64, scratch_operands = 1 : i64, tpu.core_type = #tpu.core_type<tc>, window_params = [{transform_indices = @transform_0, window_bounds = array<i64: 16, 512>}, {transform_indices = @transform_1, window_bounds = array<i64: 512, 128>}, {transform_indices = @transform_2, window_bounds = array<i64: 16, 128>}]} {
    %c0_i32 = arith.constant 0 : i32
    %0 = arith.cmpi eq, %arg2, %c0_i32 : i32
    %1 = arith.extui %0 : i1 to i32
    %c0_i32_0 = arith.constant 0 : i32
    %2 = arith.cmpi ne, %1, %c0_i32_0 : i32
    scf.if %2 {
      %cst_9 = arith.constant 0.000000e+00 : f32
      %12 = vector.broadcast %cst_9 : f32 to vector<16x128xf32>
      %c0_10 = arith.constant 0 : index
      %c0_11 = arith.constant 0 : index
      %13 = vector.load %arg6[%c0_10, %c0_11] : memref<16x128xf32, #tpu.memory_space<vmem>>, vector<16x128xf32>
      tpu.vector_store %arg6[%c0_10, %c0_11], %12 {strides = array<i32>} : memref<16x128xf32, #tpu.memory_space<vmem>>, vector<16x128xf32>,
    } else {
    }
    %c0 = arith.constant 0 : index
    %c0_1 = arith.constant 0 : index
    %3 = vector.load %arg6[%c0, %c0_1] : memref<16x128xf32, #tpu.memory_space<vmem>>, vector<16x128xf32>
    %c0_2 = arith.constant 0 : index
    %c0_3 = arith.constant 0 : index
    %4 = vector.load %arg3[%c0_2, %c0_3] : memref<16x512xbf16, #tpu.memory_space<vmem>>, vector<16x512xbf16>
    %c0_4 = arith.constant 0 : index
    %c0_5 = arith.constant 0 : index
    %5 = vector.load %arg4[%c0_4, %c0_5] : memref<512x128xbf16, #tpu.memory_space<vmem>>, vector<512x128xbf16>
    %cst = arith.constant dense<0.000000e+00> : vector<16x128xf32>
    %6 = tpu.matmul %4, %5, %cst {dimension_numbers = #tpu.dot_dimension_numbers<[1], [0], [0], [1], [0, 0, 1, 1], [], []>} : vector<16x512xbf16>, vector<512x128xbf16>, vector<16x128xf32> -> vector<16x128xf32>
    %7 = arith.addf %3, %6 : vector<16x128xf32>
    %c0_6 = arith.constant 0 : index
    %c0_7 = arith.constant 0 : index
    %8 = vector.load %arg6[%c0_6, %c0_7] : memref<16x128xf32, #tpu.memory_space<vmem>>, vector<16x128xf32>
    tpu.vector_store %arg6[%c0_6, %c0_7], %7 {strides = array<i32>} : memref<16x128xf32, #tpu.memory_space<vmem>>, vector<16x128xf32>,
    %c1_i32 = arith.constant 1 : i32
    %9 = arith.cmpi eq, %arg2, %c1_i32 : i32
    %10 = arith.extui %9 : i1 to i32
    %c0_i32_8 = arith.constant 0 : i32
    %11 = arith.cmpi ne, %10, %c0_i32_8 : i32
    scf.if %11 {
      %c0_9 = arith.constant 0 : index
      %c0_10 = arith.constant 0 : index
      %12 = vector.load %arg6[%c0_9, %c0_10] : memref<16x128xf32, #tpu.memory_space<vmem>>, vector<16x128xf32>
      %13 = arith.negf %12 : vector<16x128xf32>
      %14 = math.exp %13 : vector<16x128xf32>
      %cst_11 = arith.constant 1.000000e+00 : f32
      %15 = vector.broadcast %cst_11 : f32 to vector<16x128xf32>
      %16 = arith.addf %15, %14 : vector<16x128xf32>
      %17 = arith.divf %15, %16 : vector<16x128xf32>
      %c0_12 = arith.constant 0 : index
      %c0_13 = arith.constant 0 : index
      %18 = vector.load %arg5[%c0_12, %c0_13] : memref<16x128xf32, #tpu.memory_space<vmem>>, vector<16x128xf32>
      tpu.vector_store %arg5[%c0_12, %c0_13], %17 {strides = array<i32>} : memref<16x128xf32, #tpu.memory_space<vmem>>, vector<16x128xf32>,
    } else {
    }
    return
  }
  func.func @transform_0(%arg0: i32, %arg1: i32, %arg2: i32) -> (i32, i32) {
    %c0_i32 = arith.constant 0 : i32
    return %arg0, %arg2 : i32, i32
  }
  func.func @transform_1(%arg0: i32, %arg1: i32, %arg2: i32) -> (i32, i32) {
    %c0_i32 = arith.constant 0 : i32
    return %arg2, %arg1 : i32, i32
  }
  func.func @transform_2(%arg0: i32, %arg1: i32, %arg2: i32) -> (i32, i32) {
    %c0_i32 = arith.constant 0 : i32
    return %arg0, %arg1 : i32, i32
  }
}

</mosaic_0001>

<bundles_post_ra>
// kernel: d_forward.8
= control target key start
LH: loop header
LB: loop body
LE: loop exit
PB: predicated region body
PF: predicated region fallthrough
CT: control target
= control target key end

     0   :  { %s2376_s9 = smov 0   ;;  %s2378_s10 = smov 0   ;;  %s2515_s0 = inlined_call_operand.vmem [shape: bf16[2048,128], index: 0, kind: input, shape index: {}]   ;;  %s2516_s1 = inlined_call_operand.vmem [shape: bf16[128,128], index: 1, kind: input, shape index: {}]   ;;  %s2517_s2 = inlined_call_operand.vmem [shape: bf16[2048,128], index: 2, kind: output, shape index: {}]  }
   0x1   :  { %s2380_s11 = smov 0  }
   0x2 LB: > { %s31_s12 = sadd.s32 1, %s2355_s10  ;;  %p1771_p0 = scmp.ge.s32.totalorder %s2359_s11, 1  ;;  %s2359_s11 = sphi %s2380_s11, %s12_s11   ;;  %s2355_s10 = sphi %s2378_s10, %s2519_s10   ;;  %s2351_s9 = sphi %s2376_s9, %s2518_s9  }
   0x3   : > { %p33_p1 = scmp.ge.s32.totalorder %s31_s12, 4  ;;  %p155_p2 = scmp.lt.s32.totalorder %s2359_s11, 5 }
   0x5   : > { %s2521_s12 = smov (%p33_p1, %s31_s12), 0  ;;  %p156_p3 = pnand %p1771_p0, %p155_p2 }
   0x6   : > { %v2297_v0 = vld [vmem:[%s2516_s1] sm:$0xff] (!%p156_p3)   ;;  %s1772_s15 = sshll.u32 (!%p156_p3), %s2351_s9, 6  ;;  %v2298_v1 = vld [vmem:[%s2516_s1 + $0x8] sm:$0xff] (!%p156_p3)   ;;  %v2299_v2 = vld [vmem:[%s2516_s1 + $0x10] sm:$0xff] (!%p156_p3)  }
   0x7   : > { %159 = sbr.rel (%p156_p3) target bundleno = 318 (0x13e), region = 28  ;;  %p192_p4 = scmp.lt.s32.totalorder (!%p156_p3), %s1772_s15, 255  ;;  %2177 = vmatprep.subr.bf16.mxu0 (!%p156_p3), %v2297_v0  ;;  %2257 = vmatprep.subr.bf16.mxu1 (!%p156_p3), %v2297_v0  ;;  %v2300_v3 = vld [vmem:[%s2516_s1 + $0x18] sm:$0xff] (!%p156_p3)   ;;  %v2301_v6 = vld [vmem:[%s2516_s1 + $0x20] sm:$0xff] (!%p156_p3)   ;;  %v2302_v7 = vld [vmem:[%s2516_s1 + $0x28] sm:$0xff] (!%p156_p3)  }
   0x8   : > { %2178 = vmatpush3.bf16.msra.mxu0 (!%p156_p3), %v2297_v0  ;;  %2265 = vmatpush3.bf16.msra.mxu1 (!%p156_p3), %v2297_v0  ;;  %v2303_v8 = vld [vmem:[%s2516_s1 + $0x30] sm:$0xff] (!%p156_p3)   ;;  %v2304_v9 = vld [vmem:[%s2516_s1 + $0x38] sm:$0xff] (!%p156_p3)  }
   0x9   : > { %2179 = vmatprep.subr.bf16.mxu0 (!%p156_p3), %v2298_v1  ;;  %2258 = vmatprep.subr.bf16.mxu1 (!%p156_p3), %v2298_v1 }
   0xc   : > { %2180 = vmatpush3.bf16.msra.mxu0 (!%p156_p3), %v2298_v1  ;;  %2266 = vmatpush3.bf16.msra.mxu1 (!%p156_p3), %v2298_v1 }
   0xd   : > { %2181 = vmatprep.subr.bf16.mxu0 (!%p156_p3), %v2299_v2  ;;  %2259 = vmatprep.subr.bf16.mxu1 (!%p156_p3), %v2299_v2 }
   0xe   : > { %s2523_s15 = smov (!%p192_p4, %s1772_s15), 255 }
   0xf   : > { %s1773_s20 = sshll.u32 %s2523_s15, 2 }
  0x10   : > { %s2411_s23 = scalar_lea.vmem %s2515_s0, %s1773_s20  ;;  %2182 = vmatpush3.bf16.msra.mxu0 %v2299_v2  ;;  %2267 = vmatpush3.bf16.msra.mxu1 %v2299_v2  ;;  %s2465_s8 = scalar_lea.vmem %s2517_s2, %s1773_s20 }
  0x11   : > { %v2305_v4 = vld [vmem:[%s2411_s23] sm:$0xff]   ;;  %2183 = vmatprep.subr.bf16.mxu0 %v2300_v3  ;;  %2260 = vmatprep.subr.bf16.mxu1 %v2300_v3  ;;  %v2307_v10 = vld [vmem:[%s2411_s23 + $0x8] sm:$0xff]   ;;  %v2309_v12 = vld [vmem:[%s2411_s23 + $0x10] sm:$0xff]  }
  0x12   : > { %v2306_v5 = vld [vmem:[%s2411_s23 + $0x80] sm:$0xff]   ;;  %2193 = vmatprep.mubr.bf16.mxu0 %v2305_v4  ;;  %v2308_v11 = vld [vmem:[%s2411_s23 + $0x88] sm:$0xff]   ;;  %v2310_v13 = vld [vmem:[%s2411_s23 + $0x90] sm:$0xff]  }
  0x13   : > { %2225 = vmatprep.mubr.bf16.mxu1 %v2306_v5  ;;  %v2311_v14 = vld [vmem:[%s2411_s23 + $0x18] sm:$0xff]   ;;  %v2313_v16 = vld [vmem:[%s2411_s23 + $0x20] sm:$0xff]   ;;  %v2315_v18 = vld [vmem:[%s2411_s23 + $0x28] sm:$0xff]  }
  0x14   : > { %2184 = vmatpush3.bf16.msra.mxu0 %v2300_v3  ;;  %2268 = vmatpush3.bf16.msra.mxu1 %v2300_v3  ;;  %v2312_v15 = vld [vmem:[%s2411_s23 + $0x98] sm:$0xff]   ;;  %v2314_v17 = vld [vmem:[%s2411_s23 + $0xa0] sm:$0xff]   ;;  %v2316_v19 = vld [vmem:[%s2411_s23 + $0xa8] sm:$0xff]  }
  0x15   : > { %2185 = vmatprep.subr.bf16.mxu0 %v2301_v6  ;;  %2261 = vmatprep.subr.bf16.mxu1 %v2301_v6  ;;  %v2317_v20 = vld [vmem:[%s2411_s23 + $0x30] sm:$0xff]   ;;  %v2319_v22 = vld [vmem:[%s2411_s23 + $0x38] sm:$0xff]   ;;  %v2321_v24 = vld [vmem:[%s2411_s23 + $0x40] sm:$0xff]  }
  0x16   : > { %v2318_v21 = vld [vmem:[%s2411_s23 + $0xb0] sm:$0xff]   ;;  %v2320_v23 = vld [vmem:[%s2411_s23 + $0xb8] sm:$0xff]   ;;  %v2322_v25 = vld [vmem:[%s2411_s23 + $0xc0] sm:$0xff]  }
  0x17   : > { %v2323_v26 = vld [vmem:[%s2411_s23 + $0x48] sm:$0xff]   ;;  %v2325_v28 = vld [vmem:[%s2411_s23 + $0x50] sm:$0xff]   ;;  %v2327_v30 = vld [vmem:[%s2411_s23 + $0x58] sm:$0xff]  }
  0x18   : > { %2186 = vmatpush3.bf16.msra.mxu0 %v2301_v6  ;;  %2269 = vmatpush3.bf16.msra.mxu1 %v2301_v6  ;;  %v2324_v27 = vld [vmem:[%s2411_s23 + $0xc8] sm:$0xff]   ;;  %v2326_v29 = vld [vmem:[%s2411_s23 + $0xd0] sm:$0xff]   ;;  %v2328_v31 = vld [vmem:[%s2411_s23 + $0xd8] sm:$0xff]  }
  0x19   : > { %2187 = vmatprep.subr.bf16.mxu0 %v2302_v7  ;;  %2262 = vmatprep.subr.bf16.mxu1 %v2302_v7  ;;  %v2329_v32 = vld [vmem:[%s2411_s23 + $0x60] sm:$0xff]   ;;  %v2331_v34 = vld [vmem:[%s2411_s23 + $0x68] sm:$0xff]   ;;  %v2333_v36 = vld [vmem:[%s2411_s23 + $0x70] sm:$0xff]  }
  0x1a   : > { %v2330_v33 = vld [vmem:[%s2411_s23 + $0xe0] sm:$0xff]   ;;  %v2332_v35 = vld [vmem:[%s2411_s23 + $0xe8] sm:$0xff]   ;;  %v2334_v37 = vld [vmem:[%s2411_s23 + $0xf0] sm:$0xff]  }
  0x1b   : > { %v2335_v38 = vld [vmem:[%s2411_s23 + $0x78] sm:$0xff]  }
  0x1c   : > { %2188 = vmatpush3.bf16.msra.mxu0 %v2302_v7  ;;  %2270 = vmatpush3.bf16.msra.mxu1 %v2302_v7  ;;  %v2336_v39 = vld [vmem:[%s2411_s23 + $0xf8] sm:$0xff]  }
  0x1d   : > { %2189 = vmatprep.subr.bf16.mxu0 %v2303_v8  ;;  %2263 = vmatprep.subr.bf16.mxu1 %v2303_v8 }
  0x20   : > { %2190 = vmatpush3.bf16.msra.mxu0 %v2303_v8  ;;  %2271 = vmatpush3.bf16.msra.mxu1 %v2303_v8 }
  0x21   : > { %2191 = vmatprep.subr.bf16.mxu0 %v2304_v9  ;;  %2264 = vmatprep.subr.bf16.mxu1 %v2304_v9 }
  0x24   : > { %2192 = vmatpush3.bf16.msra.mxu0 %v2304_v9  ;;  %2272 = vmatpush3.bf16.msra.mxu1 %v2304_v9 }
  0x27   : > { %2194 = vmatmul.mubr.bf16.vlgmr.msra.gmra.mrb[0].mxu0 %v2307_v10  ;;  %2226 = vmatmul.mubr.bf16.vlgmr.msra.gmra.mrb[0].mxu1 %v2308_v11 }
  0x28   : > { %2197 = vmatprep.mubr.bf16.mxu0 %v2309_v12  ;;  %2229 = vmatprep.mubr.bf16.mxu1 %v2310_v13 }
  0x2f   : > { %2198 = vmatmul.mubr.bf16.gmra.mrb[4].mxu0 %v2311_v14  ;;  %2230 = vmatmul.mubr.bf16.gmra.mrb[4].mxu1 %v2312_v15 }
  0x30   : > { %2201 = vmatprep.mubr.bf16.mxu0 %v2313_v16  ;;  %2233 = vmatprep.mubr.bf16.mxu1 %v2314_v17 }
  0x37   : > { %2202 = vmatmul.mubr.bf16.gmra.mrb[8].mxu0 %v2315_v18  ;;  %2234 = vmatmul.mubr.bf16.gmra.mrb[8].mxu1 %v2316_v19 }
  0x38   : > { %2205 = vmatprep.mubr.bf16.mxu0 %v2317_v20  ;;  %2237 = vmatprep.mubr.bf16.mxu1 %v2318_v21 }
  0x3f   : > { %2206 = vmatmul.mubr.bf16.gmra.mrb[12].mxu0 %v2319_v22  ;;  %2238 = vmatmul.mubr.bf16.gmra.mrb[12].mxu1 %v2320_v23 }
  0x40   : > { %2209 = vmatprep.mubr.bf16.mxu0 %v2321_v24  ;;  %2241 = vmatprep.mubr.bf16.mxu1 %v2322_v25 }
  0x47   : > { %2210 = vmatmul.mubr.bf16.gmra.mrb[16].mxu0 %v2323_v26  ;;  %2242 = vmatmul.mubr.bf16.gmra.mrb[16].mxu1 %v2324_v27 }
  0x48   : > { %2213 = vmatprep.mubr.bf16.mxu0 %v2325_v28  ;;  %2245 = vmatprep.mubr.bf16.mxu1 %v2326_v29 }
  0x4f   : > { %2214 = vmatmul.mubr.bf16.gmra.mrb[20].mxu0 %v2327_v30  ;;  %2246 = vmatmul.mubr.bf16.gmra.mrb[20].mxu1 %v2328_v31 }
  0x50   : > { %2217 = vmatprep.mubr.bf16.mxu0 %v2329_v32  ;;  %2249 = vmatprep.mubr.bf16.mxu1 %v2330_v33 }
  0x57   : > { %2218 = vmatmul.mubr.bf16.gmra.mrb[24].mxu0 %v2331_v34  ;;  %2250 = vmatmul.mubr.bf16.gmra.mrb[24].mxu1 %v2332_v35 }
  0x58   : > { %2221 = vmatprep.mubr.bf16.mxu0 %v2333_v36  ;;  %2253 = vmatprep.mubr.bf16.mxu1 %v2334_v37 }
  0x5f   : > { %2222 = vmatmul.mubr.bf16.gmra.mrb[28].mxu0 %v2335_v38  ;;  %2254 = vmatmul.mubr.bf16.gmra.mrb[28].mxu1 %v2336_v39 }
  0xfa   : > { %v2195_v40 = vpop.f32.mrb[0].mxu0  ;;  %v2227_v41 = vpop.f32.mrb[0].mxu1 }
  0xfb   : > { %vm1157_vm0 = vcmp.gt.f32.partialorder %v2195_v40, 0.0  ;;  %v1221_v42 = vmul.f32 0.2, %v2195_v40  ;;  %v1253_v43 = vmul.f32 0.2, %v2227_v41  ;;  %vm1189_vm1 = vcmp.gt.f32.partialorder %v2227_v41, 0.0 }
  0xfc   : > { %v705_v44 = vpop.f32.mrb[1].mxu0  ;;  %v833_v45 = vpop.f32.mrb[1].mxu1 }
  0xfd   : > { %v1219_v46 = vmul.f32 0.2, %v705_v44  ;;  %v2196_v47 = vpop.f32.mrb[2].mxu0  ;;  %v2228_v48 = vpop.f32.mrb[2].mxu1  ;;  %v1285_v49 = vsel %vm1157_vm0, %v2195_v40, %v1221_v42  ;;  %v1251_v50 = vmul.f32 0.2, %v833_v45  ;;  %v1317_v52 = vsel %vm1189_vm1, %v2227_v41, %v1253_v43 }
  0xfe   : > { %vm1158_vm2 = vcmp.gt.f32.partialorder %v2196_v47, 0.0  ;;  %v1222_v51 = vmul.f32 0.2, %v2196_v47  ;;  %vm1155_vm3 = vcmp.gt.f32.partialorder %v705_v44, 0.0  ;;  %vm1190_vm4 = vcmp.gt.f32.partialorder %v2228_v48, 0.0  ;;  %v708_v54 = vpop.f32.mrb[3].mxu0 }
  0xff   : > { %v1254_v53 = vmul.f32 0.2, %v2228_v48  ;;  %v836_v55 = vpop.f32.mrb[3].mxu1  ;;  %vm1187_vm5 = vcmp.gt.f32.partialorder %v833_v45, 0.0  ;;  %vm1156_vm6 = vcmp.gt.f32.partialorder %v708_v54, 0.0  ;;  %v1283_v61 = vsel %vm1155_vm3, %v705_v44, %v1219_v46 }
 0x100   : > { %v1286_v56 = vsel %vm1158_vm2, %v2196_v47, %v1222_v51  ;;  %v1220_v57 = vmul.f32 0.2, %v708_v54  ;;  %vm1188_vm7 = vcmp.gt.f32.partialorder %v836_v55, 0.0  ;;  %v1252_v60 = vmul.f32 0.2, %v836_v55 }
 0x101   : > { %v1954_v58 = vpack.c.bf16 %v1286_v56, %v1285_v49  ;;  %v1318_v59 = vsel %vm1190_vm4, %v2228_v48, %v1254_v53  ;;  %v1315_v2 = vsel %vm1187_vm5, %v833_v45, %v1251_v50 }
 0x102   : > { %v2034_v62 = vpack.c.bf16 %v1318_v59, %v1317_v52  ;;  %v1284_v63 = vsel %vm1156_vm6, %v708_v54, %v1220_v57  ;;  %v2199_v0 = vpop.f32.mrb[4].mxu0  ;;  %v2231_v1 = vpop.f32.mrb[4].mxu1  ;;  %v1316_v4 = vsel %vm1188_vm7, %v836_v55, %v1252_v60 }
 0x103   : > { %2106 = vst [vmem:[%s2465_s8 + $0x8] sm:$0xff] %v1954_v58   ;;  %v1949_v3 = vpack.c.bf16 %v1284_v63, %v1283_v61  ;;  %v1225_v5 = vmul.f32 0.2, %v2199_v0  ;;  %v721_v6 = vpop.f32.mrb[5].mxu0  ;;  %v849_v7 = vpop.f32.mrb[5].mxu1  ;;  %v2029_v8 = vpack.c.bf16 %v1316_v4, %v1315_v2  ;;  %vm1161_vm8 = vcmp.gt.f32.partialorder %v2199_v0, 0.0 }
 0x104   : > { %2122 = vst [vmem:[%s2465_s8 + $0x88] sm:$0xff] %v2034_v62   ;;  %v1257_v9 = vmul.f32 0.2, %v2231_v1  ;;  %v2200_v10 = vpop.f32.mrb[6].mxu0  ;;  %v2232_v11 = vpop.f32.mrb[6].mxu1  ;;  %vm1193_vm9 = vcmp.gt.f32.partialorder %v2231_v1, 0.0 }
 0x105   : > { %1950 = vst [vmem:[%s2465_s8] sm:$0xff] %v1949_v3   ;;  %v1223_v12 = vmul.f32 0.2, %v721_v6  ;;  %v1255_v13 = vmul.f32 0.2, %v849_v7  ;;  %v724_v14 = vpop.f32.mrb[7].mxu0  ;;  %2121 = vst [vmem:[%s2465_s8 + $0x80] sm:$0xff] %v2029_v8   ;;  %v1289_v17 = vsel %vm1161_vm8, %v2199_v0, %v1225_v5 }
 0x106   : > { %vm1159_vm10 = vcmp.gt.f32.partialorder %v721_v6, 0.0  ;;  %vm1162_vm11 = vcmp.gt.f32.partialorder %v2200_v10, 0.0  ;;  %v1226_v15 = vmul.f32 0.2, %v2200_v10  ;;  %vm1194_vm12 = vcmp.gt.f32.partialorder %v2232_v11, 0.0  ;;  %v852_v16 = vpop.f32.mrb[7].mxu1 }
 0x107   : > { %vm1191_vm13 = vcmp.gt.f32.partialorder %v849_v7, 0.0  ;;  %v1258_v18 = vmul.f32 0.2, %v2232_v11  ;;  %vm1160_vm14 = vcmp.gt.f32.partialorder %v724_v14, 0.0  ;;  %v1224_v20 = vmul.f32 0.2, %v724_v14 }
 0x108   : > { %v1290_v19 = vsel %vm1162_vm11, %v2200_v10, %v1226_v15  ;;  %vm1192_vm15 = vcmp.gt.f32.partialorder %v852_v16, 0.0  ;;  %v1256_v21 = vmul.f32 0.2, %v852_v16  ;;  %v1321_v22 = vsel %vm1193_vm9, %v2231_v1, %v1257_v9 }
 0x109   : > { %v1287_v23 = vsel %vm1159_vm10, %v721_v6, %v1223_v12  ;;  %v1964_v24 = vpack.c.bf16 %v1290_v19, %v1289_v17  ;;  %v1322_v25 = vsel %vm1194_vm12, %v2232_v11, %v1258_v18  ;;  %v1319_v26 = vsel %vm1191_vm13, %v849_v7, %v1255_v13 }
 0x10a   : > { %v2044_v27 = vpack.c.bf16 %v1322_v25, %v1321_v22  ;;  %v1288_v28 = vsel %vm1160_vm14, %v724_v14, %v1224_v20  ;;  %v1320_v29 = vsel %vm1192_vm15, %v852_v16, %v1256_v21  ;;  %v2203_v30 = vpop.f32.mrb[8].mxu0  ;;  %v2235_v31 = vpop.f32.mrb[8].mxu1 }
 0x10b   : > { %2108 = vst [vmem:[%s2465_s8 + $0x18] sm:$0xff] %v1964_v24   ;;  %v1959_v32 = vpack.c.bf16 %v1288_v28, %v1287_v23  ;;  %v2039_v33 = vpack.c.bf16 %v1320_v29, %v1319_v26  ;;  %vm1165_vm0 = vcmp.gt.f32.partialorder %v2203_v30, 0.0  ;;  %v1229_v34 = vmul.f32 0.2, %v2203_v30  ;;  %v737_v35 = vpop.f32.mrb[9].mxu0  ;;  %v865_v36 = vpop.f32.mrb[9].mxu1 }
 0x10c   : > { %2124 = vst [vmem:[%s2465_s8 + $0x98] sm:$0xff] %v2044_v27   ;;  %vm1197_vm1 = vcmp.gt.f32.partialorder %v2235_v31, 0.0  ;;  %v1261_v37 = vmul.f32 0.2, %v2235_v31  ;;  %v1227_v38 = vmul.f32 0.2, %v737_v35 }
 0x10d   : > { %2107 = vst [vmem:[%s2465_s8 + $0x10] sm:$0xff] %v1959_v32   ;;  %2123 = vst [vmem:[%s2465_s8 + $0x90] sm:$0xff] %v2039_v33   ;;  %v1259_v39 = vmul.f32 0.2, %v865_v36  ;;  %v2204_v40 = vpop.f32.mrb[10].mxu0  ;;  %v2236_v41 = vpop.f32.mrb[10].mxu1  ;;  %v1293_v42 = vsel %vm1165_vm0, %v2203_v30, %v1229_v34 }
 0x10e   : > { %vm1163_vm2 = vcmp.gt.f32.partialorder %v737_v35, 0.0  ;;  %vm1166_vm3 = vcmp.gt.f32.partialorder %v2204_v40, 0.0  ;;  %v1230_v43 = vmul.f32 0.2, %v2204_v40  ;;  %v740_v44 = vpop.f32.mrb[11].mxu0  ;;  %v868_v45 = vpop.f32.mrb[11].mxu1  ;;  %v1325_v50 = vsel %vm1197_vm1, %v2235_v31, %v1261_v37 }
 0x10f   : > { %vm1195_vm4 = vcmp.gt.f32.partialorder %v865_v36, 0.0  ;;  %vm1198_vm5 = vcmp.gt.f32.partialorder %v2236_v41, 0.0  ;;  %v1262_v46 = vmul.f32 0.2, %v2236_v41  ;;  %vm1164_vm6 = vcmp.gt.f32.partialorder %v740_v44, 0.0 }
 0x110   : > { %v1294_v47 = vsel %vm1166_vm3, %v2204_v40, %v1230_v43  ;;  %v1228_v48 = vmul.f32 0.2, %v740_v44  ;;  %vm1196_vm7 = vcmp.gt.f32.partialorder %v868_v45, 0.0  ;;  %v1260_v49 = vmul.f32 0.2, %v868_v45 }
 0x111   : > { %v1291_v51 = vsel %vm1163_vm2, %v737_v35, %v1227_v38  ;;  %v1974_v52 = vpack.c.bf16 %v1294_v47, %v1293_v42  ;;  %v1326_v53 = vsel %vm1198_vm5, %v2236_v41, %v1262_v46  ;;  %v1323_v54 = vsel %vm1195_vm4, %v865_v36, %v1259_v39 }
 0x112   : > { %v2054_v55 = vpack.c.bf16 %v1326_v53, %v1325_v50  ;;  %v1292_v56 = vsel %vm1164_vm6, %v740_v44, %v1228_v48  ;;  %v1324_v57 = vsel %vm1196_vm7, %v868_v45, %v1260_v49  ;;  %v2207_v58 = vpop.f32.mrb[12].mxu0  ;;  %v2239_v59 = vpop.f32.mrb[12].mxu1 }
 0x113   : > { %2110 = vst [vmem:[%s2465_s8 + $0x28] sm:$0xff] %v1974_v52   ;;  %v1969_v60 = vpack.c.bf16 %v1292_v56, %v1291_v51  ;;  %v2049_v61 = vpack.c.bf16 %v1324_v57, %v1323_v54  ;;  %vm1169_vm8 = vcmp.gt.f32.partialorder %v2207_v58, 0.0  ;;  %v1233_v62 = vmul.f32 0.2, %v2207_v58  ;;  %v753_v63 = vpop.f32.mrb[13].mxu0  ;;  %v881_v0 = vpop.f32.mrb[13].mxu1 }
 0x114   : > { %2126 = vst [vmem:[%s2465_s8 + $0xa8] sm:$0xff] %v2054_v55   ;;  %vm1201_vm9 = vcmp.gt.f32.partialorder %v2239_v59, 0.0  ;;  %v1265_v1 = vmul.f32 0.2, %v2239_v59  ;;  %v1231_v2 = vmul.f32 0.2, %v753_v63 }
 0x115   : > { %2109 = vst [vmem:[%s2465_s8 + $0x20] sm:$0xff] %v1969_v60   ;;  %2125 = vst [vmem:[%s2465_s8 + $0xa0] sm:$0xff] %v2049_v61   ;;  %v1263_v3 = vmul.f32 0.2, %v881_v0  ;;  %v2208_v4 = vpop.f32.mrb[14].mxu0  ;;  %v2240_v5 = vpop.f32.mrb[14].mxu1  ;;  %v1297_v6 = vsel %vm1169_vm8, %v2207_v58, %v1233_v62 }
 0x116   : > { %vm1167_vm10 = vcmp.gt.f32.partialorder %v753_v63, 0.0  ;;  %vm1170_vm11 = vcmp.gt.f32.partialorder %v2208_v4, 0.0  ;;  %v1234_v7 = vmul.f32 0.2, %v2208_v4  ;;  %v756_v8 = vpop.f32.mrb[15].mxu0  ;;  %v884_v9 = vpop.f32.mrb[15].mxu1  ;;  %v1329_v14 = vsel %vm1201_vm9, %v2239_v59, %v1265_v1 }
 0x117   : > { %vm1199_vm12 = vcmp.gt.f32.partialorder %v881_v0, 0.0  ;;  %vm1202_vm13 = vcmp.gt.f32.partialorder %v2240_v5, 0.0  ;;  %v1266_v10 = vmul.f32 0.2, %v2240_v5  ;;  %vm1168_vm14 = vcmp.gt.f32.partialorder %v756_v8, 0.0 }
 0x118   : > { %v1298_v11 = vsel %vm1170_vm11, %v2208_v4, %v1234_v7  ;;  %v1232_v12 = vmul.f32 0.2, %v756_v8  ;;  %vm1200_vm15 = vcmp.gt.f32.partialorder %v884_v9, 0.0  ;;  %v1264_v13 = vmul.f32 0.2, %v884_v9 }
 0x119   : > { %v1295_v15 = vsel %vm1167_vm10, %v753_v63, %v1231_v2  ;;  %v1984_v16 = vpack.c.bf16 %v1298_v11, %v1297_v6  ;;  %v1330_v17 = vsel %vm1202_vm13, %v2240_v5, %v1266_v10  ;;  %v1327_v18 = vsel %vm1199_vm12, %v881_v0, %v1263_v3 }
 0x11a   : > { %v2064_v19 = vpack.c.bf16 %v1330_v17, %v1329_v14  ;;  %v1296_v20 = vsel %vm1168_vm14, %v756_v8, %v1232_v12  ;;  %v1328_v21 = vsel %vm1200_vm15, %v884_v9, %v1264_v13  ;;  %v2211_v22 = vpop.f32.mrb[16].mxu0  ;;  %v2243_v23 = vpop.f32.mrb[16].mxu1 }
 0x11b   : > { %2112 = vst [vmem:[%s2465_s8 + $0x38] sm:$0xff] %v1984_v16   ;;  %v1979_v24 = vpack.c.bf16 %v1296_v20, %v1295_v15  ;;  %v2059_v25 = vpack.c.bf16 %v1328_v21, %v1327_v18  ;;  %vm1173_vm0 = vcmp.gt.f32.partialorder %v2211_v22, 0.0  ;;  %v1237_v26 = vmul.f32 0.2, %v2211_v22  ;;  %v769_v27 = vpop.f32.mrb[17].mxu0  ;;  %v897_v28 = vpop.f32.mrb[17].mxu1 }
 0x11c   : > { %2128 = vst [vmem:[%s2465_s8 + $0xb8] sm:$0xff] %v2064_v19   ;;  %vm1205_vm1 = vcmp.gt.f32.partialorder %v2243_v23, 0.0  ;;  %v1269_v29 = vmul.f32 0.2, %v2243_v23  ;;  %v1235_v30 = vmul.f32 0.2, %v769_v27 }
 0x11d   : > { %2111 = vst [vmem:[%s2465_s8 + $0x30] sm:$0xff] %v1979_v24   ;;  %2127 = vst [vmem:[%s2465_s8 + $0xb0] sm:$0xff] %v2059_v25   ;;  %v1267_v31 = vmul.f32 0.2, %v897_v28  ;;  %v2212_v32 = vpop.f32.mrb[18].mxu0  ;;  %v2244_v33 = vpop.f32.mrb[18].mxu1  ;;  %v1301_v34 = vsel %vm1173_vm0, %v2211_v22, %v1237_v26 }
 0x11e   : > { %vm1171_vm2 = vcmp.gt.f32.partialorder %v769_v27, 0.0  ;;  %vm1174_vm3 = vcmp.gt.f32.partialorder %v2212_v32, 0.0  ;;  %v1238_v35 = vmul.f32 0.2, %v2212_v32  ;;  %v772_v36 = vpop.f32.mrb[19].mxu0  ;;  %v900_v37 = vpop.f32.mrb[19].mxu1  ;;  %v1333_v42 = vsel %vm1205_vm1, %v2243_v23, %v1269_v29 }
 0x11f   : > { %vm1203_vm4 = vcmp.gt.f32.partialorder %v897_v28, 0.0  ;;  %vm1206_vm5 = vcmp.gt.f32.partialorder %v2244_v33, 0.0  ;;  %v1270_v38 = vmul.f32 0.2, %v2244_v33  ;;  %vm1172_vm6 = vcmp.gt.f32.partialorder %v772_v36, 0.0 }
 0x120   : > { %v1302_v39 = vsel %vm1174_vm3, %v2212_v32, %v1238_v35  ;;  %v1236_v40 = vmul.f32 0.2, %v772_v36  ;;  %vm1204_vm7 = vcmp.gt.f32.partialorder %v900_v37, 0.0  ;;  %v1268_v41 = vmul.f32 0.2, %v900_v37 }
 0x121   : > { %v1299_v43 = vsel %vm1171_vm2, %v769_v27, %v1235_v30  ;;  %v1994_v44 = vpack.c.bf16 %v1302_v39, %v1301_v34  ;;  %v1334_v45 = vsel %vm1206_vm5, %v2244_v33, %v1270_v38  ;;  %v1331_v46 = vsel %vm1203_vm4, %v897_v28, %v1267_v31 }
 0x122   : > { %v2074_v47 = vpack.c.bf16 %v1334_v45, %v1333_v42  ;;  %v1300_v48 = vsel %vm1172_vm6, %v772_v36, %v1236_v40  ;;  %v1332_v49 = vsel %vm1204_vm7, %v900_v37, %v1268_v41  ;;  %v2215_v50 = vpop.f32.mrb[20].mxu0  ;;  %v2247_v51 = vpop.f32.mrb[20].mxu1 }
 0x123   : > { %2114 = vst [vmem:[%s2465_s8 + $0x48] sm:$0xff] %v1994_v44   ;;  %v1989_v52 = vpack.c.bf16 %v1300_v48, %v1299_v43  ;;  %v2069_v53 = vpack.c.bf16 %v1332_v49, %v1331_v46  ;;  %vm1177_vm8 = vcmp.gt.f32.partialorder %v2215_v50, 0.0  ;;  %v1241_v54 = vmul.f32 0.2, %v2215_v50  ;;  %v785_v55 = vpop.f32.mrb[21].mxu0  ;;  %v913_v56 = vpop.f32.mrb[21].mxu1 }
 0x124   : > { %2130 = vst [vmem:[%s2465_s8 + $0xc8] sm:$0xff] %v2074_v47   ;;  %vm1209_vm9 = vcmp.gt.f32.partialorder %v2247_v51, 0.0  ;;  %v1273_v57 = vmul.f32 0.2, %v2247_v51  ;;  %v1239_v58 = vmul.f32 0.2, %v785_v55 }
 0x125   : > { %2113 = vst [vmem:[%s2465_s8 + $0x40] sm:$0xff] %v1989_v52   ;;  %2129 = vst [vmem:[%s2465_s8 + $0xc0] sm:$0xff] %v2069_v53   ;;  %v1271_v59 = vmul.f32 0.2, %v913_v56  ;;  %v2216_v60 = vpop.f32.mrb[22].mxu0  ;;  %v2248_v61 = vpop.f32.mrb[22].mxu1  ;;  %v1305_v62 = vsel %vm1177_vm8, %v2215_v50, %v1241_v54 }
 0x126   : > { %vm1175_vm10 = vcmp.gt.f32.partialorder %v785_v55, 0.0  ;;  %vm1178_vm11 = vcmp.gt.f32.partialorder %v2216_v60, 0.0  ;;  %v1242_v63 = vmul.f32 0.2, %v2216_v60  ;;  %v788_v0 = vpop.f32.mrb[23].mxu0  ;;  %v916_v1 = vpop.f32.mrb[23].mxu1  ;;  %v1337_v6 = vsel %vm1209_vm9, %v2247_v51, %v1273_v57 }
 0x127   : > { %vm1207_vm12 = vcmp.gt.f32.partialorder %v913_v56, 0.0  ;;  %vm1210_vm13 = vcmp.gt.f32.partialorder %v2248_v61, 0.0  ;;  %v1274_v2 = vmul.f32 0.2, %v2248_v61  ;;  %vm1176_vm14 = vcmp.gt.f32.partialorder %v788_v0, 0.0 }
 0x128   : > { %v1306_v3 = vsel %vm1178_vm11, %v2216_v60, %v1242_v63  ;;  %v1240_v4 = vmul.f32 0.2, %v788_v0  ;;  %vm1208_vm15 = vcmp.gt.f32.partialorder %v916_v1, 0.0  ;;  %v1272_v5 = vmul.f32 0.2, %v916_v1 }
 0x129   : > { %v1303_v7 = vsel %vm1175_vm10, %v785_v55, %v1239_v58  ;;  %v2004_v8 = vpack.c.bf16 %v1306_v3, %v1305_v62  ;;  %v1338_v9 = vsel %vm1210_vm13, %v2248_v61, %v1274_v2  ;;  %v1335_v10 = vsel %vm1207_vm12, %v913_v56, %v1271_v59 }
 0x12a   : > { %v2084_v11 = vpack.c.bf16 %v1338_v9, %v1337_v6  ;;  %v1304_v12 = vsel %vm1176_vm14, %v788_v0, %v1240_v4  ;;  %v1336_v13 = vsel %vm1208_vm15, %v916_v1, %v1272_v5  ;;  %v2219_v14 = vpop.f32.mrb[24].mxu0  ;;  %v2251_v15 = vpop.f32.mrb[24].mxu1 }
 0x12b   : > { %2116 = vst [vmem:[%s2465_s8 + $0x58] sm:$0xff] %v2004_v8   ;;  %v1999_v16 = vpack.c.bf16 %v1304_v12, %v1303_v7  ;;  %v2079_v17 = vpack.c.bf16 %v1336_v13, %v1335_v10  ;;  %vm1181_vm0 = vcmp.gt.f32.partialorder %v2219_v14, 0.0  ;;  %v1245_v18 = vmul.f32 0.2, %v2219_v14  ;;  %v801_v19 = vpop.f32.mrb[25].mxu0  ;;  %v929_v20 = vpop.f32.mrb[25].mxu1 }
 0x12c   : > { %2132 = vst [vmem:[%s2465_s8 + $0xd8] sm:$0xff] %v2084_v11   ;;  %vm1213_vm1 = vcmp.gt.f32.partialorder %v2251_v15, 0.0  ;;  %v1277_v21 = vmul.f32 0.2, %v2251_v15  ;;  %v1243_v22 = vmul.f32 0.2, %v801_v19 }
 0x12d   : > { %2115 = vst [vmem:[%s2465_s8 + $0x50] sm:$0xff] %v1999_v16   ;;  %2131 = vst [vmem:[%s2465_s8 + $0xd0] sm:$0xff] %v2079_v17   ;;  %v1275_v23 = vmul.f32 0.2, %v929_v20  ;;  %v2220_v24 = vpop.f32.mrb[26].mxu0  ;;  %v2252_v25 = vpop.f32.mrb[26].mxu1  ;;  %v1309_v26 = vsel %vm1181_vm0, %v2219_v14, %v1245_v18 }
 0x12e   : > { %vm1179_vm2 = vcmp.gt.f32.partialorder %v801_v19, 0.0  ;;  %vm1182_vm3 = vcmp.gt.f32.partialorder %v2220_v24, 0.0  ;;  %v1246_v27 = vmul.f32 0.2, %v2220_v24  ;;  %v804_v28 = vpop.f32.mrb[27].mxu0  ;;  %v932_v29 = vpop.f32.mrb[27].mxu1  ;;  %v1341_v34 = vsel %vm1213_vm1, %v2251_v15, %v1277_v21 }
 0x12f   : > { %vm1211_vm4 = vcmp.gt.f32.partialorder %v929_v20, 0.0  ;;  %vm1214_vm5 = vcmp.gt.f32.partialorder %v2252_v25, 0.0  ;;  %v1278_v30 = vmul.f32 0.2, %v2252_v25  ;;  %vm1180_vm6 = vcmp.gt.f32.partialorder %v804_v28, 0.0 }
 0x130   : > { %v1310_v31 = vsel %vm1182_vm3, %v2220_v24, %v1246_v27  ;;  %v1244_v32 = vmul.f32 0.2, %v804_v28  ;;  %vm1212_vm7 = vcmp.gt.f32.partialorder %v932_v29, 0.0  ;;  %v1276_v33 = vmul.f32 0.2, %v932_v29 }
 0x131   : > { %v1307_v35 = vsel %vm1179_vm2, %v801_v19, %v1243_v22  ;;  %v2014_v36 = vpack.c.bf16 %v1310_v31, %v1309_v26  ;;  %v1342_v37 = vsel %vm1214_vm5, %v2252_v25, %v1278_v30  ;;  %v1339_v38 = vsel %vm1211_vm4, %v929_v20, %v1275_v23 }
 0x132   : > { %v2094_v39 = vpack.c.bf16 %v1342_v37, %v1341_v34  ;;  %v1308_v40 = vsel %vm1180_vm6, %v804_v28, %v1244_v32  ;;  %v1340_v41 = vsel %vm1212_vm7, %v932_v29, %v1276_v33  ;;  %v2223_v42 = vpop.f32.mrb[28].mxu0  ;;  %v2255_v43 = vpop.f32.mrb[28].mxu1 }
 0x133   : > { %2118 = vst [vmem:[%s2465_s8 + $0x68] sm:$0xff] %v2014_v36   ;;  %v2009_v44 = vpack.c.bf16 %v1308_v40, %v1307_v35  ;;  %v2089_v45 = vpack.c.bf16 %v1340_v41, %v1339_v38  ;;  %vm1185_vm8 = vcmp.gt.f32.partialorder %v2223_v42, 0.0  ;;  %v1249_v46 = vmul.f32 0.2, %v2223_v42  ;;  %v817_v47 = vpop.f32.mrb[29].mxu0  ;;  %v945_v48 = vpop.f32.mrb[29].mxu1 }
 0x134   : > { %2134 = vst [vmem:[%s2465_s8 + $0xe8] sm:$0xff] %v2094_v39   ;;  %vm1217_vm9 = vcmp.gt.f32.partialorder %v2255_v43, 0.0  ;;  %v1281_v49 = vmul.f32 0.2, %v2255_v43  ;;  %v1247_v50 = vmul.f32 0.2, %v817_v47 }
 0x135   : > { %2117 = vst [vmem:[%s2465_s8 + $0x60] sm:$0xff] %v2009_v44   ;;  %2133 = vst [vmem:[%s2465_s8 + $0xe0] sm:$0xff] %v2089_v45   ;;  %v1279_v51 = vmul.f32 0.2, %v945_v48  ;;  %v2224_v52 = vpop.f32.mrb[30].mxu0  ;;  %v2256_v53 = vpop.f32.mrb[30].mxu1  ;;  %v1313_v54 = vsel %vm1185_vm8, %v2223_v42, %v1249_v46 }
 0x136   : > { %vm1183_vm10 = vcmp.gt.f32.partialorder %v817_v47, 0.0  ;;  %vm1186_vm11 = vcmp.gt.f32.partialorder %v2224_v52, 0.0  ;;  %v1250_v55 = vmul.f32 0.2, %v2224_v52  ;;  %v820_v56 = vpop.f32.mrb[31].mxu0  ;;  %v948_v57 = vpop.f32.mrb[31].mxu1  ;;  %v1345_v62 = vsel %vm1217_vm9, %v2255_v43, %v1281_v49 }
 0x137   : > { %vm1215_vm12 = vcmp.gt.f32.partialorder %v945_v48, 0.0  ;;  %vm1218_vm13 = vcmp.gt.f32.partialorder %v2256_v53, 0.0  ;;  %v1282_v58 = vmul.f32 0.2, %v2256_v53  ;;  %vm1184_vm14 = vcmp.gt.f32.partialorder %v820_v56, 0.0 }
 0x138   : > { %v1314_v59 = vsel %vm1186_vm11, %v2224_v52, %v1250_v55  ;;  %v1248_v60 = vmul.f32 0.2, %v820_v56  ;;  %vm1216_vm15 = vcmp.gt.f32.partialorder %v948_v57, 0.0  ;;  %v1280_v61 = vmul.f32 0.2, %v948_v57 }
 0x139   : > { %v1311_v63 = vsel %vm1183_vm10, %v817_v47, %v1247_v50  ;;  %v2024_v0 = vpack.c.bf16 %v1314_v59, %v1313_v54  ;;  %v1346_v1 = vsel %vm1218_vm13, %v2256_v53, %v1282_v58  ;;  %v1343_v2 = vsel %vm1215_vm12, %v945_v48, %v1279_v51 }
 0x13a   : > { %v2104_v3 = vpack.c.bf16 %v1346_v1, %v1345_v62  ;;  %v1312_v4 = vsel %vm1184_vm14, %v820_v56, %v1248_v60  ;;  %v1344_v5 = vsel %vm1216_vm15, %v948_v57, %v1280_v61 }
 0x13b   : > { %2120 = vst [vmem:[%s2465_s8 + $0x78] sm:$0xff] %v2024_v0   ;;  %v2019_v6 = vpack.c.bf16 %v1312_v4, %v1311_v63  ;;  %v2099_v7 = vpack.c.bf16 %v1344_v5, %v1343_v2 }
 0x13c   : > { %2136 = vst [vmem:[%s2465_s8 + $0xf8] sm:$0xff] %v2104_v3  }
 0x13d   : > { %2119 = vst [vmem:[%s2465_s8 + $0x70] sm:$0xff] %v2019_v6   ;;  %2135 = vst [vmem:[%s2465_s8 + $0xf0] sm:$0xff] %v2099_v7  }
 0x13e PF: > { %s12_s11 = sadd.s32 1, %s2359_s11   ;;  %s2518_s9 = smov %s2355_s10 }
 0x13f   : > { %p9_p5 = scmp.ge.s32.totalorder %s12_s11, 6   ;;  %s2519_s10 = smov %s2521_s12 }
 0x141   :  { %11 = sbr.rel (!%p9_p5) target bundleno = 2 (0x2), region = 69 }

// kernel: d_forward.10
= control target key start
LH: loop header
LB: loop body
LE: loop exit
PB: predicated region body
PF: predicated region fallthrough
CT: control target
= control target key end

     0   :  { %s1499_s0 = inlined_call_operand.vmem [shape: f32[512,128], index: 0, kind: input, shape index: {}]   ;;  %s1500_s1 = inlined_call_operand.vmem [shape: f32[8,128], index: 1, kind: input, shape index: {}]   ;;  %s1501_s2 = inlined_call_operand.vmem [shape: f32[8,128], index: 2, kind: input, shape index: {}]   ;;  %s1502_s3 = inlined_call_operand.vmem [shape: bf16[512,128], index: 3, kind: output, shape index: {}]  }
   0x1   :  { %v14_v0 = vld [vmem:[%s1499_s0] sm:$0xff]  ;;  %v15_v1 = vld [vmem:[%s1499_s0 + $0x8] sm:$0xff]  ;;  %v16_v6 = vld [vmem:[%s1499_s0 + $0x10] sm:$0xff] }
   0x2   :  { %v1082_v2 = vld [vmem:[%s1500_s1] ss:$0 sm:$0xff]  ;;  %v17_v7 = vld [vmem:[%s1499_s0 + $0x18] sm:$0xff]  ;;  %v19_v11 = vld [vmem:[%s1499_s0 + $0x28] sm:$0xff] }
   0x3   :  { %v83_v3 = vmul.f32 %v1082_v2, %v14_v0  ;;  %v84_v4 = vmul.f32 %v1082_v2, %v15_v1  ;;  %v1089_v5 = vld [vmem:[%s1501_s2] ss:$0 sm:$0xff]  ;;  %v85_v8 = vmul.f32 %v1082_v2, %v16_v6  ;;  %v86_v9 = vmul.f32 %v1082_v2, %v17_v7  ;;  %v20_v12 = vld [vmem:[%s1499_s0 + $0x30] sm:$0xff]  ;;  %v21_v17 = vld [vmem:[%s1499_s0 + $0x38] sm:$0xff] }
   0x4   :  { %v18_v10 = vld [vmem:[%s1499_s0 + $0x20] sm:$0xff]  ;;  %v88_v16 = vmul.f32 %v1082_v2, %v19_v11  ;;  %v89_v20 = vmul.f32 %v1082_v2, %v20_v12  ;;  %v90_v21 = vmul.f32 %v1082_v2, %v21_v17  ;;  %v23_v35 = vld [vmem:[%s1499_s0 + $0x48] sm:$0xff]  ;;  %v24_v36 = vld [vmem:[%s1499_s0 + $0x50] sm:$0xff] }
   0x5   :  { %v152_v13 = vadd.f32 %v1089_v5, %v83_v3  ;;  %v153_v14 = vadd.f32 %v1089_v5, %v84_v4  ;;  %v87_v15 = vmul.f32 %v1082_v2, %v18_v10  ;;  %v154_v18 = vadd.f32 %v1089_v5, %v85_v8  ;;  %v22_v34 = vld [vmem:[%s1499_s0 + $0x40] sm:$0xff]  ;;  %v25_v42 = vld [vmem:[%s1499_s0 + $0x58] sm:$0xff]  ;;  %v27_v48 = vld [vmem:[%s1499_s0 + $0x68] sm:$0xff] }
   0x6   :  { %v155_v19 = vadd.f32 %v1089_v5, %v86_v9  ;;  %v157_v29 = vadd.f32 %v1089_v5, %v88_v16  ;;  %v158_v33 = vadd.f32 %v1089_v5, %v89_v20  ;;  %v159_v40 = vadd.f32 %v1089_v5, %v90_v21  ;;  %v26_v47 = vld [vmem:[%s1499_s0 + $0x60] sm:$0xff]  ;;  %v28_v60 = vld [vmem:[%s1499_s0 + $0x70] sm:$0xff]  ;;  %v29_v7 = vld [vmem:[%s1499_s0 + $0x78] sm:$0xff] }
   0x7   :  { %vm216_vm0 = vcmp.gt.f32.partialorder %v152_v13, 0.0  ;;  %vm217_vm1 = vcmp.gt.f32.partialorder %v153_v14, 0.0  ;;  %v280_v22 = vmul.f32 0.2, %v152_v13  ;;  %v281_v23 = vmul.f32 0.2, %v153_v14 }
   0x8   :  { %vm218_vm2 = vcmp.gt.f32.partialorder %v154_v18, 0.0  ;;  %vm219_vm3 = vcmp.gt.f32.partialorder %v155_v19, 0.0  ;;  %v282_v24 = vmul.f32 0.2, %v154_v18  ;;  %v283_v25 = vmul.f32 0.2, %v155_v19 }
   0x9   :  { %v344_v26 = vsel %vm216_vm0, %v152_v13, %v280_v22  ;;  %v345_v27 = vsel %vm217_vm1, %v153_v14, %v281_v23  ;;  %v156_v28 = vadd.f32 %v1089_v5, %v87_v15  ;;  %vm221_vm5 = vcmp.gt.f32.partialorder %v157_v29, 0.0  ;;  %v30_v12 = vld [vmem:[%s1499_s0 + $0x80] sm:$0xff]  ;;  %v31_v13 = vld [vmem:[%s1499_s0 + $0x88] sm:$0xff]  ;;  %v32_v20 = vld [vmem:[%s1499_s0 + $0x90] sm:$0xff] }
   0xa   :  { %v865_v30 = vpack.c.bf16 %v345_v27, %v344_v26  ;;  %v346_v31 = vsel %vm218_vm2, %v154_v18, %v282_v24  ;;  %v347_v32 = vsel %vm219_vm3, %v155_v19, %v283_v25  ;;  %v285_v39 = vmul.f32 0.2, %v157_v29  ;;  %v33_v25 = vld [vmem:[%s1499_s0 + $0x98] sm:$0xff] }
   0xb   :  { %v870_v37 = vpack.c.bf16 %v347_v32, %v346_v31  ;;  %vm220_vm4 = vcmp.gt.f32.partialorder %v156_v28, 0.0  ;;  %v284_v38 = vmul.f32 0.2, %v156_v28  ;;  %vm222_vm6 = vcmp.gt.f32.partialorder %v158_v33, 0.0 }
   0xc   :  { %866 = vst [vmem:[%s1502_s3] sm:$0xff] %v865_v30   ;;  %v286_v41 = vmul.f32 0.2, %v158_v33  ;;  %v91_v44 = vmul.f32 %v1082_v2, %v22_v34  ;;  %v92_v45 = vmul.f32 %v1082_v2, %v23_v35  ;;  %v93_v46 = vmul.f32 %v1082_v2, %v24_v36 }
   0xd   :  { %1022 = vst [vmem:[%s1502_s3 + $0x8] sm:$0xff] %v870_v37   ;;  %v348_v43 = vsel %vm220_vm4, %v156_v28, %v284_v38  ;;  %v349_v49 = vsel %vm221_vm5, %v157_v29, %v285_v39  ;;  %vm223_vm7 = vcmp.gt.f32.partialorder %v159_v40, 0.0  ;;  %v287_v50 = vmul.f32 0.2, %v159_v40  ;;  %v35_v37 = vld [vmem:[%s1499_s0 + $0xa8] sm:$0xff] }
   0xe   :  { %v350_v51 = vsel %vm222_vm6, %v158_v33, %v286_v41  ;;  %v875_v52 = vpack.c.bf16 %v349_v49, %v348_v43  ;;  %v160_v53 = vadd.f32 %v1089_v5, %v91_v44  ;;  %v161_v54 = vadd.f32 %v1089_v5, %v92_v45  ;;  %v34_v33 = vld [vmem:[%s1499_s0 + $0xa0] sm:$0xff]  ;;  %v36_v44 = vld [vmem:[%s1499_s0 + $0xb0] sm:$0xff]  ;;  %v37_v49 = vld [vmem:[%s1499_s0 + $0xb8] sm:$0xff] }
   0xf   :  { %v94_v55 = vmul.f32 %v1082_v2, %v25_v42  ;;  %v351_v56 = vsel %vm223_vm7, %v159_v40, %v287_v50  ;;  %v162_v57 = vadd.f32 %v1089_v5, %v93_v46  ;;  %v95_v58 = vmul.f32 %v1082_v2, %v26_v47  ;;  %v38_v50 = vld [vmem:[%s1499_s0 + $0xc0] sm:$0xff] }
  0x10   :  { %v96_v59 = vmul.f32 %v1082_v2, %v27_v48  ;;  %1023 = vst [vmem:[%s1502_s3 + $0x10] sm:$0xff] %v875_v52   ;;  %v880_v61 = vpack.c.bf16 %v351_v56, %v350_v51  ;;  %vm224_vm8 = vcmp.gt.f32.partialorder %v160_v53, 0.0  ;;  %vm225_vm9 = vcmp.gt.f32.partialorder %v161_v54, 0.0  ;;  %v39_v51 = vld [vmem:[%s1499_s0 + $0xc8] sm:$0xff] }
  0x11   :  { %v288_v62 = vmul.f32 0.2, %v160_v53  ;;  %v289_v63 = vmul.f32 0.2, %v161_v54  ;;  %v163_v0 = vadd.f32 %v1089_v5, %v94_v55  ;;  %vm226_vm10 = vcmp.gt.f32.partialorder %v162_v57, 0.0 }
  0x12   :  { %v290_v1 = vmul.f32 0.2, %v162_v57  ;;  %1024 = vst [vmem:[%s1502_s3 + $0x18] sm:$0xff] %v880_v61   ;;  %v164_v4 = vadd.f32 %v1089_v5, %v95_v58  ;;  %v165_v6 = vadd.f32 %v1089_v5, %v96_v59  ;;  %v97_v8 = vmul.f32 %v1082_v2, %v28_v60 }
  0x13   :  { %v352_v3 = vsel %vm224_vm8, %v160_v53, %v288_v62  ;;  %v353_v9 = vsel %vm225_vm9, %v161_v54, %v289_v63  ;;  %vm227_vm11 = vcmp.gt.f32.partialorder %v163_v0, 0.0  ;;  %v291_v10 = vmul.f32 0.2, %v163_v0  ;;  %v40_v62 = vld [vmem:[%s1499_s0 + $0xd0] sm:$0xff] }
  0x14   :  { %v354_v11 = vsel %vm226_vm10, %v162_v57, %v290_v1  ;;  %v885_v14 = vpack.c.bf16 %v353_v9, %v352_v3  ;;  %vm228_vm12 = vcmp.gt.f32.partialorder %v164_v4, 0.0  ;;  %vm229_vm13 = vcmp.gt.f32.partialorder %v165_v6, 0.0 }
  0x15   :  { %v292_v15 = vmul.f32 0.2, %v164_v4  ;;  %v355_v16 = vsel %vm227_vm11, %v163_v0, %v291_v10  ;;  %v293_v17 = vmul.f32 0.2, %v165_v6  ;;  %v98_v18 = vmul.f32 %v1082_v2, %v29_v7  ;;  %v41_v10 = vld [vmem:[%s1499_s0 + $0xd8] sm:$0xff] }
  0x16   :  { %v166_v19 = vadd.f32 %v1089_v5, %v97_v8  ;;  %1025 = vst [vmem:[%s1502_s3 + $0x20] sm:$0xff] %v885_v14   ;;  %v890_v21 = vpack.c.bf16 %v355_v16, %v354_v11  ;;  %v99_v23 = vmul.f32 %v1082_v2, %v30_v12  ;;  %v100_v24 = vmul.f32 %v1082_v2, %v31_v13  ;;  %v42_v14 = vld [vmem:[%s1499_s0 + $0xe0] sm:$0xff] }
  0x17   :  { %v356_v22 = vsel %vm228_vm12, %v164_v4, %v292_v15  ;;  %v357_v26 = vsel %vm229_vm13, %v165_v6, %v293_v17  ;;  %v167_v27 = vadd.f32 %v1089_v5, %v98_v18  ;;  %v101_v32 = vmul.f32 %v1082_v2, %v32_v20  ;;  %v43_v15 = vld [vmem:[%s1499_s0 + $0xe8] sm:$0xff] }
  0x18   :  { %vm230_vm14 = vcmp.gt.f32.partialorder %v166_v19, 0.0  ;;  %v294_v28 = vmul.f32 0.2, %v166_v19  ;;  %1026 = vst [vmem:[%s1502_s3 + $0x28] sm:$0xff] %v890_v21   ;;  %v895_v29 = vpack.c.bf16 %v357_v26, %v356_v22  ;;  %v168_v30 = vadd.f32 %v1089_v5, %v99_v23  ;;  %v44_v26 = vld [vmem:[%s1499_s0 + $0xf0] sm:$0xff] }
  0x19   :  { %v169_v31 = vadd.f32 %v1089_v5, %v100_v24  ;;  %vm231_vm15 = vcmp.gt.f32.partialorder %v167_v27, 0.0  ;;  %v295_v34 = vmul.f32 0.2, %v167_v27  ;;  %v102_v36 = vmul.f32 %v1082_v2, %v33_v25 }
  0x1a   :  { %v358_v35 = vsel %vm230_vm14, %v166_v19, %v294_v28  ;;  %1027 = vst [vmem:[%s1502_s3 + $0x30] sm:$0xff] %v895_v29   ;;  %vm232_vm0 = vcmp.gt.f32.partialorder %v168_v30, 0.0  ;;  %v296_v38 = vmul.f32 0.2, %v168_v30  ;;  %v170_v41 = vadd.f32 %v1089_v5, %v101_v32 }
  0x1b   :  { %vm233_vm1 = vcmp.gt.f32.partialorder %v169_v31, 0.0  ;;  %v297_v39 = vmul.f32 0.2, %v169_v31  ;;  %v359_v40 = vsel %vm231_vm15, %v167_v27, %v295_v34  ;;  %v171_v42 = vadd.f32 %v1089_v5, %v102_v36 }
  0x1c   :  { %v103_v43 = vmul.f32 %v1082_v2, %v34_v33  ;;  %v900_v45 = vpack.c.bf16 %v359_v40, %v358_v35  ;;  %v360_v46 = vsel %vm232_vm0, %v168_v30, %v296_v38  ;;  %v104_v48 = vmul.f32 %v1082_v2, %v35_v37  ;;  %v46_v38 = vld [vmem:[%s1499_s0 + $0x100] sm:$0xff] }
  0x1d   :  { %v361_v47 = vsel %vm233_vm1, %v169_v31, %v297_v39  ;;  %vm234_vm2 = vcmp.gt.f32.partialorder %v170_v41, 0.0  ;;  %vm235_vm3 = vcmp.gt.f32.partialorder %v171_v42, 0.0  ;;  %v298_v53 = vmul.f32 0.2, %v170_v41  ;;  %v45_v31 = vld [vmem:[%s1499_s0 + $0xf8] sm:$0xff] }
  0x1e   :  { %v905_v52 = vpack.c.bf16 %v361_v47, %v360_v46  ;;  %1028 = vst [vmem:[%s1502_s3 + $0x38] sm:$0xff] %v900_v45   ;;  %v299_v54 = vmul.f32 0.2, %v171_v42  ;;  %v172_v55 = vadd.f32 %v1089_v5, %v103_v43  ;;  %v173_v56 = vadd.f32 %v1089_v5, %v104_v48 }
  0x1f   :  { %v105_v57 = vmul.f32 %v1082_v2, %v36_v44  ;;  %v362_v58 = vsel %vm234_vm2, %v170_v41, %v298_v53  ;;  %v106_v59 = vmul.f32 %v1082_v2, %v37_v49  ;;  %v107_v60 = vmul.f32 %v1082_v2, %v38_v50  ;;  %v48_v50 = vld [vmem:[%s1499_s0 + $0x110] sm:$0xff] }
  0x20   :  { %1029 = vst [vmem:[%s1502_s3 + $0x40] sm:$0xff] %v905_v52   ;;  %v108_v61 = vmul.f32 %v1082_v2, %v39_v51  ;;  %v363_v63 = vsel %vm235_vm3, %v171_v42, %v299_v54  ;;  %vm236_vm4 = vcmp.gt.f32.partialorder %v172_v55, 0.0  ;;  %vm237_vm5 = vcmp.gt.f32.partialorder %v173_v56, 0.0  ;;  %v47_v42 = vld [vmem:[%s1499_s0 + $0x108] sm:$0xff]  ;;  %v49_v51 = vld [vmem:[%s1499_s0 + $0x118] sm:$0xff] }
  0x21   :  { %v300_v0 = vmul.f32 0.2, %v172_v55  ;;  %v910_v1 = vpack.c.bf16 %v363_v63, %v362_v58  ;;  %v301_v3 = vmul.f32 0.2, %v173_v56  ;;  %v174_v4 = vadd.f32 %v1089_v5, %v105_v57  ;;  %v51_v63 = vld [vmem:[%s1499_s0 + $0x128] sm:$0xff] }
  0x22   :  { %v175_v6 = vadd.f32 %v1089_v5, %v106_v59  ;;  %v176_v8 = vadd.f32 %v1089_v5, %v107_v60  ;;  %v177_v9 = vadd.f32 %v1089_v5, %v108_v61  ;;  %v109_v11 = vmul.f32 %v1082_v2, %v40_v62 }
  0x23   :  { %v364_v7 = vsel %vm236_vm4, %v172_v55, %v300_v0  ;;  %1030 = vst [vmem:[%s1502_s3 + $0x48] sm:$0xff] %v910_v1   ;;  %v365_v12 = vsel %vm237_vm5, %v173_v56, %v301_v3  ;;  %vm238_vm6 = vcmp.gt.f32.partialorder %v174_v4, 0.0  ;;  %v302_v13 = vmul.f32 0.2, %v174_v4  ;;  %v50_v55 = vld [vmem:[%s1499_s0 + $0x120] sm:$0xff] }
  0x24   :  { %vm239_vm7 = vcmp.gt.f32.partialorder %v175_v6, 0.0  ;;  %v915_v16 = vpack.c.bf16 %v365_v12, %v364_v7  ;;  %v303_v17 = vmul.f32 0.2, %v175_v6  ;;  %vm240_vm8 = vcmp.gt.f32.partialorder %v176_v8, 0.0 }
  0x25   :  { %vm241_vm9 = vcmp.gt.f32.partialorder %v177_v9, 0.0  ;;  %v366_v18 = vsel %vm238_vm6, %v174_v4, %v302_v13  ;;  %v304_v19 = vmul.f32 0.2, %v176_v8  ;;  %v305_v20 = vmul.f32 0.2, %v177_v9  ;;  %v52_v4 = vld [vmem:[%s1499_s0 + $0x130] sm:$0xff] }
  0x26   :  { %v110_v21 = vmul.f32 %v1082_v2, %v41_v10  ;;  %1031 = vst [vmem:[%s1502_s3 + $0x50] sm:$0xff] %v915_v16   ;;  %v367_v22 = vsel %vm239_vm7, %v175_v6, %v303_v17  ;;  %v178_v23 = vadd.f32 %v1089_v5, %v109_v11  ;;  %v111_v24 = vmul.f32 %v1082_v2, %v42_v14  ;;  %v53_v13 = vld [vmem:[%s1499_s0 + $0x138] sm:$0xff] }
  0x27   :  { %v112_v25 = vmul.f32 %v1082_v2, %v43_v15  ;;  %v920_v27 = vpack.c.bf16 %v367_v22, %v366_v18  ;;  %v368_v28 = vsel %vm240_vm8, %v176_v8, %v304_v19  ;;  %v369_v29 = vsel %vm241_vm9, %v177_v9, %v305_v20  ;;  %v54_v20 = vld [vmem:[%s1499_s0 + $0x140] sm:$0xff] }
  0x28   :  { %v179_v30 = vadd.f32 %v1089_v5, %v110_v21  ;;  %v925_v32 = vpack.c.bf16 %v369_v29, %v368_v28  ;;  %vm242_vm10 = vcmp.gt.f32.partialorder %v178_v23, 0.0  ;;  %v306_v33 = vmul.f32 0.2, %v178_v23 }
  0x29   :  { %v180_v34 = vadd.f32 %v1089_v5, %v111_v24  ;;  %1032 = vst [vmem:[%s1502_s3 + $0x58] sm:$0xff] %v920_v27   ;;  %v181_v36 = vadd.f32 %v1089_v5, %v112_v25  ;;  %v113_v37 = vmul.f32 %v1082_v2, %v44_v26  ;;  %v114_v41 = vmul.f32 %v1082_v2, %v45_v31  ;;  %v55_v24 = vld [vmem:[%s1499_s0 + $0x148] sm:$0xff] }
  0x2a   :  { %vm243_vm11 = vcmp.gt.f32.partialorder %v179_v30, 0.0  ;;  %v307_v35 = vmul.f32 0.2, %v179_v30  ;;  %1033 = vst [vmem:[%s1502_s3 + $0x60] sm:$0xff] %v925_v32   ;;  %v370_v39 = vsel %vm242_vm10, %v178_v23, %v306_v33  ;;  %v115_v49 = vmul.f32 %v1082_v2, %v46_v38  ;;  %v56_v32 = vld [vmem:[%s1499_s0 + $0x150] sm:$0xff]  ;;  %v57_v33 = vld [vmem:[%s1499_s0 + $0x158] sm:$0xff] }
  0x2b   :  { %vm244_vm12 = vcmp.gt.f32.partialorder %v180_v34, 0.0  ;;  %v308_v40 = vmul.f32 0.2, %v180_v34  ;;  %vm245_vm13 = vcmp.gt.f32.partialorder %v181_v36, 0.0  ;;  %v309_v44 = vmul.f32 0.2, %v181_v36 }
  0x2c   :  { %v371_v43 = vsel %vm243_vm11, %v179_v30, %v307_v35  ;;  %v182_v45 = vadd.f32 %v1089_v5, %v113_v37  ;;  %v183_v48 = vadd.f32 %v1089_v5, %v114_v41  ;;  %v116_v54 = vmul.f32 %v1082_v2, %v47_v42  ;;  %v58_v37 = vld [vmem:[%s1499_s0 + $0x160] sm:$0xff] }
  0x2d   :  { %v930_v46 = vpack.c.bf16 %v371_v43, %v370_v39  ;;  %v372_v47 = vsel %vm244_vm12, %v180_v34, %v308_v40  ;;  %v373_v52 = vsel %vm245_vm13, %v181_v36, %v309_v44  ;;  %v184_v58 = vadd.f32 %v1089_v5, %v115_v49  ;;  %v60_v49 = vld [vmem:[%s1499_s0 + $0x170] sm:$0xff] }
  0x2e   :  { %vm246_vm14 = vcmp.gt.f32.partialorder %v182_v45, 0.0  ;;  %v310_v53 = vmul.f32 0.2, %v182_v45  ;;  %v935_v56 = vpack.c.bf16 %v373_v52, %v372_v47  ;;  %vm247_vm15 = vcmp.gt.f32.partialorder %v183_v48, 0.0 }
  0x2f   :  { %1034 = vst [vmem:[%s1502_s3 + $0x68] sm:$0xff] %v930_v46   ;;  %v311_v57 = vmul.f32 0.2, %v183_v48  ;;  %v185_v60 = vadd.f32 %v1089_v5, %v116_v54  ;;  %v117_v61 = vmul.f32 %v1082_v2, %v48_v50  ;;  %v118_v62 = vmul.f32 %v1082_v2, %v49_v51 }
  0x30   :  { %v374_v59 = vsel %vm246_vm14, %v182_v45, %v310_v53  ;;  %1035 = vst [vmem:[%s1502_s3 + $0x70] sm:$0xff] %v935_v56   ;;  %vm248_vm0 = vcmp.gt.f32.partialorder %v184_v58, 0.0  ;;  %v312_v1 = vmul.f32 0.2, %v184_v58  ;;  %v119_v3 = vmul.f32 %v1082_v2, %v50_v55  ;;  %v59_v45 = vld [vmem:[%s1499_s0 + $0x168] sm:$0xff] }
  0x31   :  { %v375_v0 = vsel %vm247_vm15, %v183_v48, %v311_v57  ;;  %vm249_vm1 = vcmp.gt.f32.partialorder %v185_v60, 0.0  ;;  %v313_v7 = vmul.f32 0.2, %v185_v60  ;;  %v186_v8 = vadd.f32 %v1089_v5, %v117_v61  ;;  %v61_v57 = vld [vmem:[%s1499_s0 + $0x178] sm:$0xff] }
  0x32   :  { %v940_v6 = vpack.c.bf16 %v375_v0, %v374_v59  ;;  %v376_v9 = vsel %vm248_vm0, %v184_v58, %v312_v1  ;;  %v187_v10 = vadd.f32 %v1089_v5, %v118_v62  ;;  %v120_v11 = vmul.f32 %v1082_v2, %v51_v63  ;;  %v62_v0 = vld [vmem:[%s1499_s0 + $0x180] sm:$0xff] }
  0x33   :  { %v188_v12 = vadd.f32 %v1089_v5, %v119_v3  ;;  %v377_v14 = vsel %vm249_vm1, %v185_v60, %v313_v7  ;;  %vm250_vm2 = vcmp.gt.f32.partialorder %v186_v8, 0.0  ;;  %v314_v15 = vmul.f32 0.2, %v186_v8 }
  0x34   :  { %1036 = vst [vmem:[%s1502_s3 + $0x78] sm:$0xff] %v940_v6   ;;  %v121_v16 = vmul.f32 %v1082_v2, %v52_v4  ;;  %v945_v17 = vpack.c.bf16 %v377_v14, %v376_v9  ;;  %vm251_vm3 = vcmp.gt.f32.partialorder %v187_v10, 0.0  ;;  %v315_v18 = vmul.f32 0.2, %v187_v10  ;;  %v63_v6 = vld [vmem:[%s1499_s0 + $0x188] sm:$0xff]  ;;  %v64_v14 = vld [vmem:[%s1499_s0 + $0x190] sm:$0xff] }
  0x35   :  { %v189_v19 = vadd.f32 %v1089_v5, %v120_v11  ;;  %v378_v21 = vsel %vm250_vm2, %v186_v8, %v314_v15  ;;  %vm252_vm4 = vcmp.gt.f32.partialorder %v188_v12, 0.0  ;;  %v316_v22 = vmul.f32 0.2, %v188_v12  ;;  %v65_v15 = vld [vmem:[%s1499_s0 + $0x198] sm:$0xff] }
  0x36   :  { %v122_v23 = vmul.f32 %v1082_v2, %v53_v13  ;;  %1037 = vst [vmem:[%s1502_s3 + $0x80] sm:$0xff] %v945_v17   ;;  %v379_v25 = vsel %vm251_vm3, %v187_v10, %v315_v18  ;;  %v190_v27 = vadd.f32 %v1089_v5, %v121_v16  ;;  %v123_v31 = vmul.f32 %v1082_v2, %v54_v20 }
  0x37   :  { %vm253_vm5 = vcmp.gt.f32.partialorder %v189_v19, 0.0  ;;  %v317_v26 = vmul.f32 0.2, %v189_v19  ;;  %v950_v28 = vpack.c.bf16 %v379_v25, %v378_v21  ;;  %v380_v29 = vsel %vm252_vm4, %v188_v12, %v316_v22 }
  0x38   :  { %v191_v30 = vadd.f32 %v1089_v5, %v122_v23  ;;  %vm254_vm6 = vcmp.gt.f32.partialorder %v190_v27, 0.0  ;;  %v318_v35 = vmul.f32 0.2, %v190_v27  ;;  %v124_v36 = vmul.f32 %v1082_v2, %v55_v24 }
  0x39   :  { %v381_v34 = vsel %vm253_vm5, %v189_v19, %v317_v26  ;;  %1038 = vst [vmem:[%s1502_s3 + $0x88] sm:$0xff] %v950_v28   ;;  %v192_v40 = vadd.f32 %v1089_v5, %v123_v31  ;;  %v125_v43 = vmul.f32 %v1082_v2, %v56_v32  ;;  %v126_v44 = vmul.f32 %v1082_v2, %v57_v33  ;;  %v66_v19 = vld [vmem:[%s1499_s0 + $0x1a0] sm:$0xff]  ;;  %v68_v31 = vld [vmem:[%s1499_s0 + $0x1b0] sm:$0xff] }
  0x3a   :  { %v955_v38 = vpack.c.bf16 %v381_v34, %v380_v29  ;;  %vm255_vm7 = vcmp.gt.f32.partialorder %v191_v30, 0.0  ;;  %v319_v39 = vmul.f32 0.2, %v191_v30  ;;  %v382_v41 = vsel %vm254_vm6, %v190_v27, %v318_v35  ;;  %v67_v27 = vld [vmem:[%s1499_s0 + $0x1a8] sm:$0xff] }
  0x3b   :  { %v193_v42 = vadd.f32 %v1089_v5, %v124_v36  ;;  %vm256_vm8 = vcmp.gt.f32.partialorder %v192_v40, 0.0  ;;  %v320_v47 = vmul.f32 0.2, %v192_v40  ;;  %v127_v48 = vmul.f32 %v1082_v2, %v58_v37 }
  0x3c   :  { %1039 = vst [vmem:[%s1502_s3 + $0x90] sm:$0xff] %v955_v38   ;;  %v383_v46 = vsel %vm255_vm7, %v191_v30, %v319_v39  ;;  %v194_v52 = vadd.f32 %v1089_v5, %v125_v43  ;;  %v195_v54 = vadd.f32 %v1089_v5, %v126_v44  ;;  %v128_v55 = vmul.f32 %v1082_v2, %v59_v45  ;;  %v69_v39 = vld [vmem:[%s1499_s0 + $0x1b8] sm:$0xff] }
  0x3d   :  { %v960_v50 = vpack.c.bf16 %v383_v46, %v382_v41  ;;  %vm257_vm9 = vcmp.gt.f32.partialorder %v193_v42, 0.0  ;;  %v321_v51 = vmul.f32 0.2, %v193_v42  ;;  %v384_v53 = vsel %vm256_vm8, %v192_v40, %v320_v47  ;;  %v70_v46 = vld [vmem:[%s1499_s0 + $0x1c0] sm:$0xff] }
  0x3e   :  { %v196_v56 = vadd.f32 %v1089_v5, %v127_v48  ;;  %vm258_vm10 = vcmp.gt.f32.partialorder %v194_v52, 0.0  ;;  %v322_v59 = vmul.f32 0.2, %v194_v52  ;;  %v129_v60 = vmul.f32 %v1082_v2, %v60_v49 }
  0x3f   :  { %1040 = vst [vmem:[%s1502_s3 + $0x98] sm:$0xff] %v960_v50   ;;  %v385_v58 = vsel %vm257_vm9, %v193_v42, %v321_v51  ;;  %vm259_vm11 = vcmp.gt.f32.partialorder %v195_v54, 0.0  ;;  %v323_v62 = vmul.f32 0.2, %v195_v54  ;;  %v197_v63 = vadd.f32 %v1089_v5, %v128_v55  ;;  %v71_v50 = vld [vmem:[%s1499_s0 + $0x1c8] sm:$0xff] }
  0x40   :  { %v965_v61 = vpack.c.bf16 %v385_v58, %v384_v53  ;;  %v386_v1 = vsel %vm258_vm10, %v194_v52, %v322_v59  ;;  %vm260_vm12 = vcmp.gt.f32.partialorder %v196_v56, 0.0  ;;  %v324_v3 = vmul.f32 0.2, %v196_v56  ;;  %v72_v58 = vld [vmem:[%s1499_s0 + $0x1d0] sm:$0xff]  ;;  %v73_v59 = vld [vmem:[%s1499_s0 + $0x1d8] sm:$0xff] }
  0x41   :  { %v130_v4 = vmul.f32 %v1082_v2, %v61_v57  ;;  %v387_v7 = vsel %vm259_vm11, %v195_v54, %v323_v62  ;;  %vm261_vm13 = vcmp.gt.f32.partialorder %v197_v63, 0.0  ;;  %v325_v8 = vmul.f32 0.2, %v197_v63 }
  0x42   :  { %1041 = vst [vmem:[%s1502_s3 + $0xa0] sm:$0xff] %v965_v61   ;;  %v198_v9 = vadd.f32 %v1089_v5, %v129_v60  ;;  %v970_v10 = vpack.c.bf16 %v387_v7, %v386_v1  ;;  %v388_v11 = vsel %vm260_vm12, %v196_v56, %v324_v3  ;;  %v131_v13 = vmul.f32 %v1082_v2, %v62_v0 }
  0x43   :  { %v199_v12 = vadd.f32 %v1089_v5, %v130_v4  ;;  %v389_v16 = vsel %vm261_vm13, %v197_v63, %v325_v8  ;;  %v132_v18 = vmul.f32 %v1082_v2, %v63_v6  ;;  %v133_v25 = vmul.f32 %v1082_v2, %v64_v14  ;;  %v74_v63 = vld [vmem:[%s1499_s0 + $0x1e0] sm:$0xff] }
  0x44   :  { %vm262_vm14 = vcmp.gt.f32.partialorder %v198_v9, 0.0  ;;  %v326_v17 = vmul.f32 0.2, %v198_v9  ;;  %1042 = vst [vmem:[%s1502_s3 + $0xa8] sm:$0xff] %v970_v10   ;;  %v975_v20 = vpack.c.bf16 %v389_v16, %v388_v11  ;;  %v200_v22 = vadd.f32 %v1089_v5, %v131_v13  ;;  %v76_v13 = vld [vmem:[%s1499_s0 + $0x1f0] sm:$0xff] }
  0x45   :  { %vm263_vm15 = vcmp.gt.f32.partialorder %v199_v12, 0.0  ;;  %v327_v21 = vmul.f32 0.2, %v199_v12  ;;  %v201_v24 = vadd.f32 %v1089_v5, %v132_v18  ;;  %v134_v26 = vmul.f32 %v1082_v2, %v65_v15 }
  0x46   :  { %v390_v23 = vsel %vm262_vm14, %v198_v9, %v326_v17  ;;  %1043 = vst [vmem:[%s1502_s3 + $0xb0] sm:$0xff] %v975_v20   ;;  %vm264_vm0 = vcmp.gt.f32.partialorder %v200_v22, 0.0  ;;  %v328_v29 = vmul.f32 0.2, %v200_v22  ;;  %v135_v30 = vmul.f32 %v1082_v2, %v66_v19  ;;  %v75_v9 = vld [vmem:[%s1499_s0 + $0x1e8] sm:$0xff] }
  0x47   :  { %v391_v28 = vsel %vm263_vm15, %v199_v12, %v327_v21  ;;  %vm265_vm1 = vcmp.gt.f32.partialorder %v201_v24, 0.0  ;;  %v329_v33 = vmul.f32 0.2, %v201_v24  ;;  %v202_v34 = vadd.f32 %v1089_v5, %v133_v25  ;;  %v77_v21 = vld [vmem:[%s1499_s0 + $0x1f8] sm:$0xff] }
  0x48   :  { %v980_v32 = vpack.c.bf16 %v391_v28, %v390_v23  ;;  %v392_v35 = vsel %vm264_vm0, %v200_v22, %v328_v29  ;;  %v203_v36 = vadd.f32 %v1089_v5, %v134_v26  ;;  %v136_v37 = vmul.f32 %v1082_v2, %v67_v27 }
  0x49   :  { %v204_v38 = vadd.f32 %v1089_v5, %v135_v30  ;;  %v393_v40 = vsel %vm265_vm1, %v201_v24, %v329_v33  ;;  %vm266_vm2 = vcmp.gt.f32.partialorder %v202_v34, 0.0  ;;  %v330_v41 = vmul.f32 0.2, %v202_v34 }
  0x4a   :  { %1044 = vst [vmem:[%s1502_s3 + $0xb8] sm:$0xff] %v980_v32   ;;  %v137_v42 = vmul.f32 %v1082_v2, %v68_v31  ;;  %v985_v43 = vpack.c.bf16 %v393_v40, %v392_v35  ;;  %vm267_vm3 = vcmp.gt.f32.partialorder %v203_v36, 0.0  ;;  %v331_v44 = vmul.f32 0.2, %v203_v36 }
  0x4b   :  { %v205_v45 = vadd.f32 %v1089_v5, %v136_v37  ;;  %v394_v47 = vsel %vm266_vm2, %v202_v34, %v330_v41  ;;  %vm268_vm4 = vcmp.gt.f32.partialorder %v204_v38, 0.0  ;;  %v332_v48 = vmul.f32 0.2, %v204_v38 }
  0x4c   :  { %v138_v49 = vmul.f32 %v1082_v2, %v69_v39  ;;  %1045 = vst [vmem:[%s1502_s3 + $0xc0] sm:$0xff] %v985_v43   ;;  %v395_v51 = vsel %vm267_vm3, %v203_v36, %v331_v44  ;;  %v206_v53 = vadd.f32 %v1089_v5, %v137_v42  ;;  %v139_v57 = vmul.f32 %v1082_v2, %v70_v46 }
  0x4d   :  { %vm269_vm5 = vcmp.gt.f32.partialorder %v205_v45, 0.0  ;;  %v333_v52 = vmul.f32 0.2, %v205_v45  ;;  %v990_v54 = vpack.c.bf16 %v395_v51, %v394_v47  ;;  %v396_v55 = vsel %vm268_vm4, %v204_v38, %v332_v48 }
  0x4e   :  { %v207_v56 = vadd.f32 %v1089_v5, %v138_v49  ;;  %vm270_vm6 = vcmp.gt.f32.partialorder %v206_v53, 0.0  ;;  %v334_v61 = vmul.f32 0.2, %v206_v53  ;;  %v140_v62 = vmul.f32 %v1082_v2, %v71_v50 }
  0x4f   :  { %v397_v60 = vsel %vm269_vm5, %v205_v45, %v333_v52  ;;  %1046 = vst [vmem:[%s1502_s3 + $0xc8] sm:$0xff] %v990_v54   ;;  %v208_v3 = vadd.f32 %v1089_v5, %v139_v57  ;;  %v141_v7 = vmul.f32 %v1082_v2, %v72_v58  ;;  %v142_v8 = vmul.f32 %v1082_v2, %v73_v59 }
  0x50   :  { %v995_v0 = vpack.c.bf16 %v397_v60, %v396_v55  ;;  %vm271_vm7 = vcmp.gt.f32.partialorder %v207_v56, 0.0  ;;  %v335_v1 = vmul.f32 0.2, %v207_v56  ;;  %v398_v4 = vsel %vm270_vm6, %v206_v53, %v334_v61 }
  0x51   :  { %v209_v6 = vadd.f32 %v1089_v5, %v140_v62  ;;  %vm272_vm8 = vcmp.gt.f32.partialorder %v208_v3, 0.0  ;;  %v336_v11 = vmul.f32 0.2, %v208_v3  ;;  %v143_v12 = vmul.f32 %v1082_v2, %v74_v63 }
  0x52   :  { %1047 = vst [vmem:[%s1502_s3 + $0xd0] sm:$0xff] %v995_v0   ;;  %v399_v10 = vsel %vm271_vm7, %v207_v56, %v335_v1  ;;  %v210_v16 = vadd.f32 %v1089_v5, %v141_v7  ;;  %v211_v18 = vadd.f32 %v1089_v5, %v142_v8  ;;  %v144_v19 = vmul.f32 %v1082_v2, %v75_v9 }
  0x53   :  { %v1000_v14 = vpack.c.bf16 %v399_v10, %v398_v4  ;;  %vm273_vm9 = vcmp.gt.f32.partialorder %v209_v6, 0.0  ;;  %v337_v15 = vmul.f32 0.2, %v209_v6  ;;  %v400_v17 = vsel %vm272_vm8, %v208_v3, %v336_v11 }
  0x54   :  { %v212_v20 = vadd.f32 %v1089_v5, %v143_v12  ;;  %vm274_vm10 = vcmp.gt.f32.partialorder %v210_v16, 0.0  ;;  %v338_v23 = vmul.f32 0.2, %v210_v16  ;;  %v145_v24 = vmul.f32 %v1082_v2, %v76_v13 }
  0x55   :  { %1048 = vst [vmem:[%s1502_s3 + $0xd8] sm:$0xff] %v1000_v14   ;;  %v401_v22 = vsel %vm273_vm9, %v209_v6, %v337_v15  ;;  %vm275_vm11 = vcmp.gt.f32.partialorder %v211_v18, 0.0  ;;  %v339_v26 = vmul.f32 0.2, %v211_v18  ;;  %v213_v27 = vadd.f32 %v1089_v5, %v144_v19 }
  0x56   :  { %v1005_v25 = vpack.c.bf16 %v401_v22, %v400_v17  ;;  %v402_v28 = vsel %vm274_vm10, %v210_v16, %v338_v23  ;;  %vm276_vm12 = vcmp.gt.f32.partialorder %v212_v20, 0.0  ;;  %v340_v29 = vmul.f32 0.2, %v212_v20 }
  0x57   :  { %v146_v30 = vmul.f32 %v1082_v2, %v77_v21  ;;  %v403_v31 = vsel %vm275_vm11, %v211_v18, %v339_v26  ;;  %vm277_vm13 = vcmp.gt.f32.partialorder %v213_v27, 0.0  ;;  %v341_v32 = vmul.f32 0.2, %v213_v27 }
  0x58   :  { %1049 = vst [vmem:[%s1502_s3 + $0xe0] sm:$0xff] %v1005_v25   ;;  %v214_v33 = vadd.f32 %v1089_v5, %v145_v24  ;;  %v1010_v34 = vpack.c.bf16 %v403_v31, %v402_v28  ;;  %v404_v35 = vsel %vm276_vm12, %v212_v20, %v340_v29 }
  0x59   :  { %v215_v36 = vadd.f32 %v1089_v5, %v146_v30  ;;  %v405_v37 = vsel %vm277_vm13, %v213_v27, %v341_v32 }
  0x5a   :  { %vm278_vm14 = vcmp.gt.f32.partialorder %v214_v33, 0.0  ;;  %v342_v38 = vmul.f32 0.2, %v214_v33  ;;  %1050 = vst [vmem:[%s1502_s3 + $0xe8] sm:$0xff] %v1010_v34   ;;  %v1015_v2 = vpack.c.bf16 %v405_v37, %v404_v35 }
  0x5b   :  { %vm279_vm15 = vcmp.gt.f32.partialorder %v215_v36, 0.0  ;;  %v343_v39 = vmul.f32 0.2, %v215_v36 }
  0x5c   :  { %v406_v40 = vsel %vm278_vm14, %v214_v33, %v342_v38  ;;  %1051 = vst [vmem:[%s1502_s3 + $0xf0] sm:$0xff] %v1015_v2  }
  0x5d   :  { %v407_v41 = vsel %vm279_vm15, %v215_v36, %v343_v39 }
  0x5e   :  { %v1020_v42 = vpack.c.bf16 %v407_v41, %v406_v40 }
  0x60   :  { %1052 = vst [vmem:[%s1502_s3 + $0xf8] sm:$0xff] %v1020_v42  }

// kernel: d_forward.9
= control target key start
LH: loop header
LB: loop body
LE: loop exit
PB: predicated region body
PF: predicated region fallthrough
CT: control target
= control target key end

     0   :  { %s1982_s1 = inlined_call_operand.vmem [shape: bf16[128,128], index: 1, kind: input, shape index: {}]   ;;  %s1983_s0 = inlined_call_operand.vmem [shape: bf16[512,128], index: 0, kind: input, shape index: {}]   ;;  %s1984_s2 = inlined_call_operand.vmem [shape: f32[512,128], index: 2, kind: output, shape index: {0}]   ;;  %s1985_s3 = inlined_call_operand.vmem [shape: f32[8,128], index: 3, kind: output, shape index: {1}]   ;;  %s1986_s4 = inlined_call_operand.vmem [shape: f32[8,128], index: 4, kind: output, shape index: {2}]  }
   0x1   :  { %v1407_v0 = vld [vmem:[%s1982_s1] sm:$0xff]   ;;  %v1408_v1 = vld [vmem:[%s1982_s1 + $0x8] sm:$0xff]   ;;  %v1409_v2 = vld [vmem:[%s1982_s1 + $0x10] sm:$0xff]  }
   0x2   :  { %1311 = vmatprep.subr.bf16.mxu0 %v1407_v0  ;;  %1391 = vmatprep.subr.bf16.mxu1 %v1407_v0  ;;  %v1410_v3 = vld [vmem:[%s1982_s1 + $0x18] sm:$0xff]   ;;  %v1415_v4 = vld [vmem:[%s1983_s0] sm:$0xff]   ;;  %v1412_v6 = vld [vmem:[%s1982_s1 + $0x28] sm:$0xff]  }
   0x3   :  { %1312 = vmatpush3.bf16.msra.mxu0 %v1407_v0  ;;  %1399 = vmatpush3.bf16.msra.mxu1 %v1407_v0  ;;  %v1411_v5 = vld [vmem:[%s1982_s1 + $0x20] sm:$0xff]   ;;  %v1413_v7 = vld [vmem:[%s1982_s1 + $0x30] sm:$0xff]   ;;  %v1414_v8 = vld [vmem:[%s1982_s1 + $0x38] sm:$0xff]  }
   0x4   :  { %1313 = vmatprep.subr.bf16.mxu0 %v1408_v1  ;;  %1392 = vmatprep.subr.bf16.mxu1 %v1408_v1  ;;  %v1431_v9 = vld [vmem:[%s1983_s0 + $0x80] sm:$0xff]   ;;  %v1416_v10 = vld [vmem:[%s1983_s0 + $0x8] sm:$0xff]   ;;  %v1417_v11 = vld [vmem:[%s1983_s0 + $0x10] sm:$0xff]  }
   0x5   :  { %1327 = vmatprep.mubr.bf16.mxu0 %v1415_v4  ;;  %1359 = vmatprep.mubr.bf16.mxu1 %v1431_v9  ;;  %v1432_v12 = vld [vmem:[%s1983_s0 + $0x88] sm:$0xff]   ;;  %v1433_v13 = vld [vmem:[%s1983_s0 + $0x90] sm:$0xff]   ;;  %v1418_v14 = vld [vmem:[%s1983_s0 + $0x18] sm:$0xff]  }
   0x6   :  { %v1419_v15 = vld [vmem:[%s1983_s0 + $0x20] sm:$0xff]   ;;  %v1434_v16 = vld [vmem:[%s1983_s0 + $0x98] sm:$0xff]   ;;  %v1420_v18 = vld [vmem:[%s1983_s0 + $0x28] sm:$0xff]  }
   0x7   :  { %1314 = vmatpush3.bf16.msra.mxu0 %v1408_v1  ;;  %1400 = vmatpush3.bf16.msra.mxu1 %v1408_v1  ;;  %v1435_v17 = vld [vmem:[%s1983_s0 + $0xa0] sm:$0xff]   ;;  %v1436_v19 = vld [vmem:[%s1983_s0 + $0xa8] sm:$0xff]   ;;  %v1421_v20 = vld [vmem:[%s1983_s0 + $0x30] sm:$0xff]  }
   0x8   :  { %1315 = vmatprep.subr.bf16.mxu0 %v1409_v2  ;;  %1393 = vmatprep.subr.bf16.mxu1 %v1409_v2  ;;  %v1437_v21 = vld [vmem:[%s1983_s0 + $0xb0] sm:$0xff]   ;;  %v1422_v22 = vld [vmem:[%s1983_s0 + $0x38] sm:$0xff]   ;;  %v1423_v24 = vld [vmem:[%s1983_s0 + $0x40] sm:$0xff]  }
   0x9   :  { %v1438_v23 = vld [vmem:[%s1983_s0 + $0xb8] sm:$0xff]   ;;  %v1439_v25 = vld [vmem:[%s1983_s0 + $0xc0] sm:$0xff]   ;;  %v1424_v26 = vld [vmem:[%s1983_s0 + $0x48] sm:$0xff]  }
   0xa   :  { %v1440_v27 = vld [vmem:[%s1983_s0 + $0xc8] sm:$0xff]   ;;  %v1425_v28 = vld [vmem:[%s1983_s0 + $0x50] sm:$0xff]   ;;  %v1426_v30 = vld [vmem:[%s1983_s0 + $0x58] sm:$0xff]  }
   0xb   :  { %1316 = vmatpush3.bf16.msra.mxu0 %v1409_v2  ;;  %1401 = vmatpush3.bf16.msra.mxu1 %v1409_v2  ;;  %v1441_v29 = vld [vmem:[%s1983_s0 + $0xd0] sm:$0xff]   ;;  %v1442_v31 = vld [vmem:[%s1983_s0 + $0xd8] sm:$0xff]   ;;  %v1427_v32 = vld [vmem:[%s1983_s0 + $0x60] sm:$0xff]  }
   0xc   :  { %1317 = vmatprep.subr.bf16.mxu0 %v1410_v3  ;;  %1394 = vmatprep.subr.bf16.mxu1 %v1410_v3  ;;  %v1443_v33 = vld [vmem:[%s1983_s0 + $0xe0] sm:$0xff]   ;;  %v1428_v34 = vld [vmem:[%s1983_s0 + $0x68] sm:$0xff]   ;;  %v1429_v36 = vld [vmem:[%s1983_s0 + $0x70] sm:$0xff]  }
   0xd   :  { %v1444_v35 = vld [vmem:[%s1983_s0 + $0xe8] sm:$0xff]   ;;  %v1445_v37 = vld [vmem:[%s1983_s0 + $0xf0] sm:$0xff]   ;;  %v1430_v38 = vld [vmem:[%s1983_s0 + $0x78] sm:$0xff]  }
   0xe   :  { %v1446_v39 = vld [vmem:[%s1983_s0 + $0xf8] sm:$0xff]  }
   0xf   :  { %1318 = vmatpush3.bf16.msra.mxu0 %v1410_v3  ;;  %1402 = vmatpush3.bf16.msra.mxu1 %v1410_v3 }
  0x10   :  { %1319 = vmatprep.subr.bf16.mxu0 %v1411_v5  ;;  %1395 = vmatprep.subr.bf16.mxu1 %v1411_v5 }
  0x13   :  { %1320 = vmatpush3.bf16.msra.mxu0 %v1411_v5  ;;  %1403 = vmatpush3.bf16.msra.mxu1 %v1411_v5 }
  0x14   :  { %1321 = vmatprep.subr.bf16.mxu0 %v1412_v6  ;;  %1396 = vmatprep.subr.bf16.mxu1 %v1412_v6 }
  0x17   :  { %1322 = vmatpush3.bf16.msra.mxu0 %v1412_v6  ;;  %1404 = vmatpush3.bf16.msra.mxu1 %v1412_v6 }
  0x18   :  { %1323 = vmatprep.subr.bf16.mxu0 %v1413_v7  ;;  %1397 = vmatprep.subr.bf16.mxu1 %v1413_v7 }
  0x1b   :  { %1324 = vmatpush3.bf16.msra.mxu0 %v1413_v7  ;;  %1405 = vmatpush3.bf16.msra.mxu1 %v1413_v7 }
  0x1c   :  { %1325 = vmatprep.subr.bf16.mxu0 %v1414_v8  ;;  %1398 = vmatprep.subr.bf16.mxu1 %v1414_v8 }
  0x1f   :  { %1326 = vmatpush3.bf16.msra.mxu0 %v1414_v8  ;;  %1406 = vmatpush3.bf16.msra.mxu1 %v1414_v8 }
  0x22   :  { %1328 = vmatmul.mubr.bf16.vlgmr.msra.gmra.mrb[0].mxu0 %v1416_v10  ;;  %1360 = vmatmul.mubr.bf16.vlgmr.msra.gmra.mrb[0].mxu1 %v1432_v12 }
  0x23   :  { %1331 = vmatprep.mubr.bf16.mxu0 %v1417_v11  ;;  %1363 = vmatprep.mubr.bf16.mxu1 %v1433_v13 }
  0x2a   :  { %1332 = vmatmul.mubr.bf16.gmra.mrb[4].mxu0 %v1418_v14  ;;  %1364 = vmatmul.mubr.bf16.gmra.mrb[4].mxu1 %v1434_v16 }
  0x2b   :  { %1335 = vmatprep.mubr.bf16.mxu0 %v1419_v15  ;;  %1367 = vmatprep.mubr.bf16.mxu1 %v1435_v17 }
  0x32   :  { %1336 = vmatmul.mubr.bf16.gmra.mrb[8].mxu0 %v1420_v18  ;;  %1368 = vmatmul.mubr.bf16.gmra.mrb[8].mxu1 %v1436_v19 }
  0x33   :  { %1339 = vmatprep.mubr.bf16.mxu0 %v1421_v20  ;;  %1371 = vmatprep.mubr.bf16.mxu1 %v1437_v21 }
  0x3a   :  { %1340 = vmatmul.mubr.bf16.gmra.mrb[12].mxu0 %v1422_v22  ;;  %1372 = vmatmul.mubr.bf16.gmra.mrb[12].mxu1 %v1438_v23 }
  0x3b   :  { %1343 = vmatprep.mubr.bf16.mxu0 %v1423_v24  ;;  %1375 = vmatprep.mubr.bf16.mxu1 %v1439_v25 }
  0x42   :  { %1344 = vmatmul.mubr.bf16.gmra.mrb[16].mxu0 %v1424_v26  ;;  %1376 = vmatmul.mubr.bf16.gmra.mrb[16].mxu1 %v1440_v27 }
  0x43   :  { %1347 = vmatprep.mubr.bf16.mxu0 %v1425_v28  ;;  %1379 = vmatprep.mubr.bf16.mxu1 %v1441_v29 }
  0x4a   :  { %1348 = vmatmul.mubr.bf16.gmra.mrb[20].mxu0 %v1426_v30  ;;  %1380 = vmatmul.mubr.bf16.gmra.mrb[20].mxu1 %v1442_v31 }
  0x4b   :  { %1351 = vmatprep.mubr.bf16.mxu0 %v1427_v32  ;;  %1383 = vmatprep.mubr.bf16.mxu1 %v1443_v33 }
  0x52   :  { %1352 = vmatmul.mubr.bf16.gmra.mrb[24].mxu0 %v1428_v34  ;;  %1384 = vmatmul.mubr.bf16.gmra.mrb[24].mxu1 %v1444_v35 }
  0x53   :  { %1355 = vmatprep.mubr.bf16.mxu0 %v1429_v36  ;;  %1387 = vmatprep.mubr.bf16.mxu1 %v1445_v37 }
  0x5a   :  { %1356 = vmatmul.mubr.bf16.gmra.mrb[28].mxu0 %v1430_v38  ;;  %1388 = vmatmul.mubr.bf16.gmra.mrb[28].mxu1 %v1446_v39 }
  0xf5   :  { %v1329_v40 = vpop.f32.mrb[0].mxu0  ;;  %v1592_v41 = vpop.f32.mrb[0].mxu1 }
  0xf6   :  { %953 = vst [vmem:[%s1984_s2 + $0x10] sm:$0xff] %v1329_v40  ;;  %v501_v42 = vpop.f32.mrb[1].mxu0  ;;  %985 = vst [vmem:[%s1984_s2 + $0x110] sm:$0xff] %v1592_v41  ;;  %v1601_v43 = vpop.f32.mrb[1].mxu1  ;;  %v1086_v51 = vmul.f32 %v1329_v40, %v1329_v40 }
  0xf7   :  { %951 = vst [vmem:[%s1984_s2] sm:$0xff] %v501_v42  ;;  %v1330_v44 = vpop.f32.mrb[2].mxu0  ;;  %983 = vst [vmem:[%s1984_s2 + $0x100] sm:$0xff] %v1601_v43  ;;  %v1610_v45 = vpop.f32.mrb[2].mxu1  ;;  %v1084_v48 = vmul.f32 %v501_v42, %v501_v42 }
  0xf8   :  { %954 = vst [vmem:[%s1984_s2 + $0x18] sm:$0xff] %v1330_v44  ;;  %v504_v46 = vpop.f32.mrb[3].mxu0  ;;  %986 = vst [vmem:[%s1984_s2 + $0x118] sm:$0xff] %v1610_v45  ;;  %v1619_v47 = vpop.f32.mrb[3].mxu1  ;;  %v1087_v54 = vmul.f32 %v1330_v44, %v1330_v44 }
  0xf9   :  { %952 = vst [vmem:[%s1984_s2 + $0x8] sm:$0xff] %v504_v46  ;;  %v1015_v49 = vadd.f32 %v504_v46, %v501_v42  ;;  %v1085_v50 = vmul.f32 %v504_v46, %v504_v46  ;;  %984 = vst [vmem:[%s1984_s2 + $0x108] sm:$0xff] %v1619_v47 }
  0xfb   :  { %v1016_v52 = vadd.f32 %v1329_v40, %v1015_v49  ;;  %v1148_v53 = vadd.f32 %v1085_v50, %v1084_v48 }
  0xfd   :  { %v1149_v55 = vadd.f32 %v1148_v53, %v1086_v51  ;;  %v1333_v56 = vpop.f32.mrb[4].mxu0  ;;  %v1017_v57 = vadd.f32 %v1330_v44, %v1016_v52  ;;  %v1628_v58 = vpop.f32.mrb[4].mxu1 }
  0xfe   :  { %957 = vst [vmem:[%s1984_s2 + $0x30] sm:$0xff] %v1333_v56  ;;  %v517_v59 = vpop.f32.mrb[5].mxu0  ;;  %989 = vst [vmem:[%s1984_s2 + $0x130] sm:$0xff] %v1628_v58  ;;  %v1637_v60 = vpop.f32.mrb[5].mxu1  ;;  %v1090_v7 = vmul.f32 %v1333_v56, %v1333_v56 }
  0xff   :  { %955 = vst [vmem:[%s1984_s2 + $0x20] sm:$0xff] %v517_v59  ;;  %v1018_v61 = vadd.f32 %v1017_v57, %v517_v59  ;;  %v1088_v62 = vmul.f32 %v517_v59, %v517_v59  ;;  %v1150_v63 = vadd.f32 %v1149_v55, %v1087_v54  ;;  %v1334_v0 = vpop.f32.mrb[6].mxu0  ;;  %987 = vst [vmem:[%s1984_s2 + $0x120] sm:$0xff] %v1637_v60  ;;  %v1646_v1 = vpop.f32.mrb[6].mxu1 }
 0x100   :  { %958 = vst [vmem:[%s1984_s2 + $0x38] sm:$0xff] %v1334_v0  ;;  %v520_v2 = vpop.f32.mrb[7].mxu0  ;;  %990 = vst [vmem:[%s1984_s2 + $0x138] sm:$0xff] %v1646_v1  ;;  %v1655_v3 = vpop.f32.mrb[7].mxu1  ;;  %v1091_v10 = vmul.f32 %v1334_v0, %v1334_v0 }
 0x101   :  { %v1151_v4 = vadd.f32 %v1150_v63, %v1088_v62  ;;  %956 = vst [vmem:[%s1984_s2 + $0x28] sm:$0xff] %v520_v2  ;;  %v1019_v5 = vadd.f32 %v1018_v61, %v520_v2  ;;  %v1089_v6 = vmul.f32 %v520_v2, %v520_v2  ;;  %988 = vst [vmem:[%s1984_s2 + $0x128] sm:$0xff] %v1655_v3 }
 0x103   :  { %v1020_v8 = vadd.f32 %v1333_v56, %v1019_v5  ;;  %v1152_v9 = vadd.f32 %v1151_v4, %v1089_v6 }
 0x105   :  { %v1153_v11 = vadd.f32 %v1152_v9, %v1090_v7  ;;  %v1337_v12 = vpop.f32.mrb[8].mxu0  ;;  %v1021_v13 = vadd.f32 %v1334_v0, %v1020_v8  ;;  %v1664_v14 = vpop.f32.mrb[8].mxu1 }
 0x106   :  { %961 = vst [vmem:[%s1984_s2 + $0x50] sm:$0xff] %v1337_v12  ;;  %v533_v15 = vpop.f32.mrb[9].mxu0  ;;  %993 = vst [vmem:[%s1984_s2 + $0x150] sm:$0xff] %v1664_v14  ;;  %v1673_v16 = vpop.f32.mrb[9].mxu1  ;;  %v1094_v27 = vmul.f32 %v1337_v12, %v1337_v12 }
 0x107   :  { %959 = vst [vmem:[%s1984_s2 + $0x40] sm:$0xff] %v533_v15  ;;  %v1022_v17 = vadd.f32 %v1021_v13, %v533_v15  ;;  %v1092_v18 = vmul.f32 %v533_v15, %v533_v15  ;;  %v1154_v19 = vadd.f32 %v1153_v11, %v1091_v10  ;;  %v1338_v20 = vpop.f32.mrb[10].mxu0  ;;  %991 = vst [vmem:[%s1984_s2 + $0x140] sm:$0xff] %v1673_v16  ;;  %v1682_v21 = vpop.f32.mrb[10].mxu1 }
 0x108   :  { %962 = vst [vmem:[%s1984_s2 + $0x58] sm:$0xff] %v1338_v20  ;;  %v536_v22 = vpop.f32.mrb[11].mxu0  ;;  %994 = vst [vmem:[%s1984_s2 + $0x158] sm:$0xff] %v1682_v21  ;;  %v1691_v23 = vpop.f32.mrb[11].mxu1  ;;  %v1095_v30 = vmul.f32 %v1338_v20, %v1338_v20 }
 0x109   :  { %v1155_v24 = vadd.f32 %v1154_v19, %v1092_v18  ;;  %960 = vst [vmem:[%s1984_s2 + $0x48] sm:$0xff] %v536_v22  ;;  %v1023_v25 = vadd.f32 %v1022_v17, %v536_v22  ;;  %v1093_v26 = vmul.f32 %v536_v22, %v536_v22  ;;  %992 = vst [vmem:[%s1984_s2 + $0x148] sm:$0xff] %v1691_v23 }
 0x10b   :  { %v1024_v28 = vadd.f32 %v1337_v12, %v1023_v25  ;;  %v1156_v29 = vadd.f32 %v1155_v24, %v1093_v26 }
 0x10d   :  { %v1157_v31 = vadd.f32 %v1156_v29, %v1094_v27  ;;  %v1341_v32 = vpop.f32.mrb[12].mxu0  ;;  %v1025_v33 = vadd.f32 %v1338_v20, %v1024_v28  ;;  %v1700_v34 = vpop.f32.mrb[12].mxu1 }
 0x10e   :  { %965 = vst [vmem:[%s1984_s2 + $0x70] sm:$0xff] %v1341_v32  ;;  %v549_v35 = vpop.f32.mrb[13].mxu0  ;;  %997 = vst [vmem:[%s1984_s2 + $0x170] sm:$0xff] %v1700_v34  ;;  %v1709_v36 = vpop.f32.mrb[13].mxu1  ;;  %v1098_v51 = vmul.f32 %v1341_v32, %v1341_v32 }
 0x10f   :  { %963 = vst [vmem:[%s1984_s2 + $0x60] sm:$0xff] %v549_v35  ;;  %v1026_v37 = vadd.f32 %v1025_v33, %v549_v35  ;;  %v1096_v38 = vmul.f32 %v549_v35, %v549_v35  ;;  %v1158_v39 = vadd.f32 %v1157_v31, %v1095_v30  ;;  %v1342_v40 = vpop.f32.mrb[14].mxu0  ;;  %995 = vst [vmem:[%s1984_s2 + $0x160] sm:$0xff] %v1709_v36  ;;  %v1718_v42 = vpop.f32.mrb[14].mxu1 }
 0x110   :  { %966 = vst [vmem:[%s1984_s2 + $0x78] sm:$0xff] %v1342_v40  ;;  %v552_v44 = vpop.f32.mrb[15].mxu0  ;;  %998 = vst [vmem:[%s1984_s2 + $0x178] sm:$0xff] %v1718_v42  ;;  %v1727_v46 = vpop.f32.mrb[15].mxu1  ;;  %v1099_v54 = vmul.f32 %v1342_v40, %v1342_v40 }
 0x111   :  { %v1159_v48 = vadd.f32 %v1158_v39, %v1096_v38  ;;  %964 = vst [vmem:[%s1984_s2 + $0x68] sm:$0xff] %v552_v44  ;;  %v1027_v49 = vadd.f32 %v1026_v37, %v552_v44  ;;  %v1097_v50 = vmul.f32 %v552_v44, %v552_v44  ;;  %996 = vst [vmem:[%s1984_s2 + $0x168] sm:$0xff] %v1727_v46 }
 0x113   :  { %v1028_v52 = vadd.f32 %v1341_v32, %v1027_v49  ;;  %v1160_v53 = vadd.f32 %v1159_v48, %v1097_v50 }
 0x115   :  { %v1161_v55 = vadd.f32 %v1160_v53, %v1098_v51  ;;  %v1345_v56 = vpop.f32.mrb[16].mxu0  ;;  %v1029_v57 = vadd.f32 %v1342_v40, %v1028_v52  ;;  %v1736_v59 = vpop.f32.mrb[16].mxu1 }
 0x116   :  { %969 = vst [vmem:[%s1984_s2 + $0x90] sm:$0xff] %v1345_v56  ;;  %v565_v61 = vpop.f32.mrb[17].mxu0  ;;  %1001 = vst [vmem:[%s1984_s2 + $0x190] sm:$0xff] %v1736_v59  ;;  %v1745_v62 = vpop.f32.mrb[17].mxu1  ;;  %v1102_v11 = vmul.f32 %v1345_v56, %v1345_v56 }
 0x117   :  { %967 = vst [vmem:[%s1984_s2 + $0x80] sm:$0xff] %v565_v61  ;;  %v1030_v63 = vadd.f32 %v1029_v57, %v565_v61  ;;  %v1100_v0 = vmul.f32 %v565_v61, %v565_v61  ;;  %v1162_v2 = vadd.f32 %v1161_v55, %v1099_v54  ;;  %v1346_v4 = vpop.f32.mrb[18].mxu0  ;;  %999 = vst [vmem:[%s1984_s2 + $0x180] sm:$0xff] %v1745_v62  ;;  %v1754_v5 = vpop.f32.mrb[18].mxu1 }
 0x118   :  { %970 = vst [vmem:[%s1984_s2 + $0x98] sm:$0xff] %v1346_v4  ;;  %v568_v6 = vpop.f32.mrb[19].mxu0  ;;  %1002 = vst [vmem:[%s1984_s2 + $0x198] sm:$0xff] %v1754_v5  ;;  %v1763_v7 = vpop.f32.mrb[19].mxu1  ;;  %v1103_v15 = vmul.f32 %v1346_v4, %v1346_v4 }
 0x119   :  { %v1163_v8 = vadd.f32 %v1162_v2, %v1100_v0  ;;  %968 = vst [vmem:[%s1984_s2 + $0x88] sm:$0xff] %v568_v6  ;;  %v1031_v9 = vadd.f32 %v1030_v63, %v568_v6  ;;  %v1101_v10 = vmul.f32 %v568_v6, %v568_v6  ;;  %1000 = vst [vmem:[%s1984_s2 + $0x188] sm:$0xff] %v1763_v7 }
 0x11b   :  { %v1032_v12 = vadd.f32 %v1345_v56, %v1031_v9  ;;  %v1164_v13 = vadd.f32 %v1163_v8, %v1101_v10 }
 0x11d   :  { %v1165_v17 = vadd.f32 %v1164_v13, %v1102_v11  ;;  %v1349_v18 = vpop.f32.mrb[20].mxu0  ;;  %v1033_v19 = vadd.f32 %v1346_v4, %v1032_v12  ;;  %v1772_v20 = vpop.f32.mrb[20].mxu1 }
 0x11e   :  { %973 = vst [vmem:[%s1984_s2 + $0xb0] sm:$0xff] %v1349_v18  ;;  %v581_v22 = vpop.f32.mrb[21].mxu0  ;;  %1005 = vst [vmem:[%s1984_s2 + $0x1b0] sm:$0xff] %v1772_v20  ;;  %v1781_v24 = vpop.f32.mrb[21].mxu1  ;;  %v1106_v37 = vmul.f32 %v1349_v18, %v1349_v18 }
 0x11f   :  { %971 = vst [vmem:[%s1984_s2 + $0xa0] sm:$0xff] %v581_v22  ;;  %v1034_v25 = vadd.f32 %v1033_v19, %v581_v22  ;;  %v1104_v26 = vmul.f32 %v581_v22, %v581_v22  ;;  %v1166_v27 = vadd.f32 %v1165_v17, %v1103_v15  ;;  %v1350_v28 = vpop.f32.mrb[22].mxu0  ;;  %1003 = vst [vmem:[%s1984_s2 + $0x1a0] sm:$0xff] %v1781_v24  ;;  %v1790_v29 = vpop.f32.mrb[22].mxu1 }
 0x120   :  { %974 = vst [vmem:[%s1984_s2 + $0xb8] sm:$0xff] %v1350_v28  ;;  %v584_v30 = vpop.f32.mrb[23].mxu0  ;;  %1006 = vst [vmem:[%s1984_s2 + $0x1b8] sm:$0xff] %v1790_v29  ;;  %v1799_v31 = vpop.f32.mrb[23].mxu1  ;;  %v1107_v40 = vmul.f32 %v1350_v28, %v1350_v28 }
 0x121   :  { %v1167_v32 = vadd.f32 %v1166_v27, %v1104_v26  ;;  %972 = vst [vmem:[%s1984_s2 + $0xa8] sm:$0xff] %v584_v30  ;;  %v1035_v33 = vadd.f32 %v1034_v25, %v584_v30  ;;  %v1105_v35 = vmul.f32 %v584_v30, %v584_v30  ;;  %1004 = vst [vmem:[%s1984_s2 + $0x1a8] sm:$0xff] %v1799_v31 }
 0x123   :  { %v1036_v38 = vadd.f32 %v1349_v18, %v1035_v33  ;;  %v1168_v39 = vadd.f32 %v1167_v32, %v1105_v35 }
 0x125   :  { %v1169_v44 = vadd.f32 %v1168_v39, %v1106_v37  ;;  %v1353_v48 = vpop.f32.mrb[24].mxu0  ;;  %v1037_v49 = vadd.f32 %v1350_v28, %v1036_v38  ;;  %v1808_v50 = vpop.f32.mrb[24].mxu1 }
 0x126   :  { %977 = vst [vmem:[%s1984_s2 + $0xd0] sm:$0xff] %v1353_v48  ;;  %v597_v51 = vpop.f32.mrb[25].mxu0  ;;  %1009 = vst [vmem:[%s1984_s2 + $0x1d0] sm:$0xff] %v1808_v50  ;;  %v1817_v52 = vpop.f32.mrb[25].mxu1  ;;  %v1110_v6 = vmul.f32 %v1353_v48, %v1353_v48 }
 0x127   :  { %975 = vst [vmem:[%s1984_s2 + $0xc0] sm:$0xff] %v597_v51  ;;  %v1038_v53 = vadd.f32 %v1037_v49, %v597_v51  ;;  %v1108_v54 = vmul.f32 %v597_v51, %v597_v51  ;;  %v1170_v55 = vadd.f32 %v1169_v44, %v1107_v40  ;;  %v1354_v56 = vpop.f32.mrb[26].mxu0  ;;  %1007 = vst [vmem:[%s1984_s2 + $0x1c0] sm:$0xff] %v1817_v52  ;;  %v1826_v57 = vpop.f32.mrb[26].mxu1 }
 0x128   :  { %978 = vst [vmem:[%s1984_s2 + $0xd8] sm:$0xff] %v1354_v56  ;;  %v600_v61 = vpop.f32.mrb[27].mxu0  ;;  %1010 = vst [vmem:[%s1984_s2 + $0x1d8] sm:$0xff] %v1826_v57  ;;  %v1835_v63 = vpop.f32.mrb[27].mxu1  ;;  %v1111_v10 = vmul.f32 %v1354_v56, %v1354_v56  ;;  %v1116_v49 = vmul.f32 %v1601_v43, %v1601_v43 }
 0x129   :  { %v1171_v0 = vadd.f32 %v1170_v55, %v1108_v54  ;;  %976 = vst [vmem:[%s1984_s2 + $0xc8] sm:$0xff] %v600_v61  ;;  %v1039_v2 = vadd.f32 %v1038_v53, %v600_v61  ;;  %v1109_v4 = vmul.f32 %v600_v61, %v600_v61  ;;  %1008 = vst [vmem:[%s1984_s2 + $0x1c8] sm:$0xff] %v1835_v63 }
 0x12a   :  { %v1118_v61 = vmul.f32 %v1592_v41, %v1592_v41 }
 0x12b   :  { %v1040_v8 = vadd.f32 %v1353_v48, %v1039_v2  ;;  %v1172_v9 = vadd.f32 %v1171_v0, %v1109_v4  ;;  %v1119_v4 = vmul.f32 %v1610_v45, %v1610_v45 }
 0x12d   :  { %v1173_v11 = vadd.f32 %v1172_v9, %v1110_v6  ;;  %v1357_v12 = vpop.f32.mrb[28].mxu0  ;;  %v1041_v13 = vadd.f32 %v1354_v56, %v1040_v8  ;;  %v1844_v15 = vpop.f32.mrb[28].mxu1  ;;  %v1117_v56 = vmul.f32 %v1619_v47, %v1619_v47 }
 0x12e   :  { %981 = vst [vmem:[%s1984_s2 + $0xf0] sm:$0xff] %v1357_v12  ;;  %v613_v17 = vpop.f32.mrb[29].mxu0  ;;  %1013 = vst [vmem:[%s1984_s2 + $0x1f0] sm:$0xff] %v1844_v15  ;;  %v1853_v18 = vpop.f32.mrb[29].mxu1  ;;  %v1114_v37 = vmul.f32 %v1357_v12, %v1357_v12 }
 0x12f   :  { %979 = vst [vmem:[%s1984_s2 + $0xe0] sm:$0xff] %v613_v17  ;;  %v1042_v19 = vadd.f32 %v1041_v13, %v613_v17  ;;  %v1112_v22 = vmul.f32 %v613_v17, %v613_v17  ;;  %v1174_v25 = vadd.f32 %v1173_v11, %v1111_v10  ;;  %v1358_v26 = vpop.f32.mrb[30].mxu0  ;;  %1011 = vst [vmem:[%s1984_s2 + $0x1e0] sm:$0xff] %v1853_v18  ;;  %v1862_v27 = vpop.f32.mrb[30].mxu1 }
 0x130   :  { %982 = vst [vmem:[%s1984_s2 + $0xf8] sm:$0xff] %v1358_v26  ;;  %v616_v28 = vpop.f32.mrb[31].mxu0  ;;  %1014 = vst [vmem:[%s1984_s2 + $0x1f8] sm:$0xff] %v1862_v27  ;;  %v1871_v30 = vpop.f32.mrb[31].mxu1  ;;  %v1115_v40 = vmul.f32 %v1358_v26, %v1358_v26 }
 0x131   :  { %v1175_v32 = vadd.f32 %v1174_v25, %v1112_v22  ;;  %980 = vst [vmem:[%s1984_s2 + $0xe8] sm:$0xff] %v616_v28  ;;  %v1043_v33 = vadd.f32 %v1042_v19, %v616_v28  ;;  %v1113_v35 = vmul.f32 %v616_v28, %v616_v28  ;;  %1012 = vst [vmem:[%s1984_s2 + $0x1e8] sm:$0xff] %v1871_v30 }
 0x133   :  { %v1044_v38 = vadd.f32 %v1357_v12, %v1043_v33  ;;  %v1176_v39 = vadd.f32 %v1175_v32, %v1113_v35  ;;  %v1121_v12 = vmul.f32 %v1655_v3, %v1655_v3  ;;  %v1125_v32 = vmul.f32 %v1691_v23, %v1691_v23 }
 0x135   :  { %v1177_v44 = vadd.f32 %v1176_v39, %v1114_v37  ;;  %v1045_v48 = vadd.f32 %v1358_v26, %v1044_v38 }
 0x137   :  { %v1046_v51 = vadd.f32 %v1045_v48, %v1601_v43  ;;  %v1178_v53 = vadd.f32 %v1177_v44, %v1115_v40  ;;  %v1120_v43 = vmul.f32 %v1637_v60, %v1637_v60  ;;  %v1129_v48 = vmul.f32 %v1727_v46, %v1727_v46 }
 0x139   :  { %v1179_v54 = vadd.f32 %v1178_v53, %v1116_v49  ;;  %v1047_v55 = vadd.f32 %v1046_v51, %v1619_v47 }
 0x13b   :  { %v1048_v0 = vadd.f32 %v1592_v41, %v1047_v55  ;;  %v1180_v2 = vadd.f32 %v1179_v54, %v1117_v56  ;;  %v1122_v41 = vmul.f32 %v1628_v58, %v1628_v58 }
 0x13d   :  { %v1181_v6 = vadd.f32 %v1180_v2, %v1118_v61  ;;  %v1049_v8 = vadd.f32 %v1610_v45, %v1048_v0  ;;  %v1123_v45 = vmul.f32 %v1646_v1, %v1646_v1  ;;  %v1133_v0 = vmul.f32 %v1763_v7, %v1763_v7 }
 0x13f   :  { %v1050_v9 = vadd.f32 %v1049_v8, %v1637_v60  ;;  %v1182_v10 = vadd.f32 %v1181_v6, %v1119_v4  ;;  %v1124_v60 = vmul.f32 %v1673_v16, %v1673_v16 }
 0x141   :  { %v1183_v11 = vadd.f32 %v1182_v10, %v1120_v43  ;;  %v1051_v47 = vadd.f32 %v1050_v9, %v1655_v3 }
 0x143   :  { %v1052_v13 = vadd.f32 %v1628_v58, %v1051_v47  ;;  %v1184_v17 = vadd.f32 %v1183_v11, %v1121_v12  ;;  %v1126_v58 = vmul.f32 %v1664_v14, %v1664_v14  ;;  %v1137_v11 = vmul.f32 %v1799_v31, %v1799_v31 }
 0x145   :  { %v1185_v19 = vadd.f32 %v1184_v17, %v1122_v41  ;;  %v1053_v22 = vadd.f32 %v1646_v1, %v1052_v13  ;;  %v1127_v1 = vmul.f32 %v1682_v21, %v1682_v21 }
 0x147   :  { %v1054_v25 = vadd.f32 %v1053_v22, %v1673_v16  ;;  %v1186_v26 = vadd.f32 %v1185_v19, %v1123_v45  ;;  %v1128_v16 = vmul.f32 %v1709_v36, %v1709_v36  ;;  %v1141_v22 = vmul.f32 %v1835_v63, %v1835_v63 }
 0x149   :  { %v1187_v28 = vadd.f32 %v1186_v26, %v1124_v60  ;;  %v1055_v3 = vadd.f32 %v1054_v25, %v1691_v23 }
 0x14b   :  { %v1056_v33 = vadd.f32 %v1664_v14, %v1055_v3  ;;  %v1188_v35 = vadd.f32 %v1187_v28, %v1125_v32  ;;  %v1130_v14 = vmul.f32 %v1700_v34, %v1700_v34 }
 0x14d   :  { %v1189_v37 = vadd.f32 %v1188_v35, %v1126_v58  ;;  %v1057_v38 = vadd.f32 %v1682_v21, %v1056_v33  ;;  %v1131_v21 = vmul.f32 %v1718_v42, %v1718_v42  ;;  %v1145_v33 = vmul.f32 %v1871_v30, %v1871_v30 }
 0x14f   :  { %v1058_v39 = vadd.f32 %v1057_v38, %v1709_v36  ;;  %v1190_v40 = vadd.f32 %v1189_v37, %v1127_v1  ;;  %v1132_v36 = vmul.f32 %v1745_v62, %v1745_v62 }
 0x151   :  { %v1191_v44 = vadd.f32 %v1190_v40, %v1128_v16  ;;  %v1059_v23 = vadd.f32 %v1058_v39, %v1727_v46 }
 0x153   :  { %v1060_v49 = vadd.f32 %v1700_v34, %v1059_v23  ;;  %v1192_v51 = vadd.f32 %v1191_v44, %v1129_v48  ;;  %v1134_v34 = vmul.f32 %v1736_v59, %v1736_v59 }
 0x155   :  { %v1193_v53 = vadd.f32 %v1192_v51, %v1130_v14  ;;  %v1061_v54 = vadd.f32 %v1718_v42, %v1060_v49  ;;  %v1135_v42 = vmul.f32 %v1754_v5, %v1754_v5 }
 0x157   :  { %v1062_v55 = vadd.f32 %v1061_v54, %v1745_v62  ;;  %v1194_v56 = vadd.f32 %v1193_v53, %v1131_v21  ;;  %v1136_v62 = vmul.f32 %v1781_v24, %v1781_v24 }
 0x159   :  { %v1195_v61 = vadd.f32 %v1194_v56, %v1132_v36  ;;  %v1063_v46 = vadd.f32 %v1062_v55, %v1763_v7 }
 0x15b   :  { %v1064_v2 = vadd.f32 %v1736_v59, %v1063_v46  ;;  %v1196_v4 = vadd.f32 %v1195_v61, %v1133_v0  ;;  %v1138_v59 = vmul.f32 %v1772_v20, %v1772_v20 }
 0x15d   :  { %v1197_v6 = vadd.f32 %v1196_v4, %v1134_v34  ;;  %v1065_v8 = vadd.f32 %v1754_v5, %v1064_v2  ;;  %v1139_v5 = vmul.f32 %v1790_v29, %v1790_v29 }
 0x15f   :  { %v1066_v43 = vadd.f32 %v1065_v8, %v1781_v24  ;;  %v1198_v9 = vadd.f32 %v1197_v6, %v1135_v42  ;;  %v1140_v24 = vmul.f32 %v1817_v52, %v1817_v52 }
 0x161   :  { %v1199_v10 = vadd.f32 %v1198_v9, %v1136_v62  ;;  %v1067_v7 = vadd.f32 %v1066_v43, %v1799_v31 }
 0x163   :  { %v1068_v47 = vadd.f32 %v1772_v20, %v1067_v7  ;;  %v1200_v12 = vadd.f32 %v1199_v10, %v1137_v11  ;;  %v1142_v20 = vmul.f32 %v1808_v50, %v1808_v50 }
 0x165   :  { %v1201_v41 = vadd.f32 %v1200_v12, %v1138_v59  ;;  %v1069_v13 = vadd.f32 %v1790_v29, %v1068_v47  ;;  %v1143_v29 = vmul.f32 %v1826_v57, %v1826_v57 }
 0x167   :  { %v1070_v17 = vadd.f32 %v1069_v13, %v1817_v52  ;;  %v1202_v45 = vadd.f32 %v1201_v41, %v1139_v5  ;;  %v1144_v52 = vmul.f32 %v1853_v18, %v1853_v18 }
 0x169   :  { %v1203_v19 = vadd.f32 %v1202_v45, %v1140_v24  ;;  %v1071_v31 = vadd.f32 %v1070_v17, %v1835_v63 }
 0x16b   :  { %v1072_v60 = vadd.f32 %v1808_v50, %v1071_v31  ;;  %v1204_v25 = vadd.f32 %v1203_v19, %v1141_v22  ;;  %v1146_v50 = vmul.f32 %v1844_v15, %v1844_v15 }
 0x16d   :  { %v1205_v26 = vadd.f32 %v1204_v25, %v1142_v20  ;;  %v1073_v28 = vadd.f32 %v1826_v57, %v1072_v60  ;;  %v1147_v57 = vmul.f32 %v1862_v27, %v1862_v27 }
 0x16f   :  { %v1074_v3 = vadd.f32 %v1073_v28, %v1853_v18  ;;  %v1206_v32 = vadd.f32 %v1205_v26, %v1143_v29 }
 0x171   :  { %v1207_v58 = vadd.f32 %v1206_v32, %v1144_v52  ;;  %v1075_v63 = vadd.f32 %v1074_v3, %v1871_v30 }
 0x173   :  { %v1076_v35 = vadd.f32 %v1844_v15, %v1075_v63  ;;  %v1208_v1 = vadd.f32 %v1207_v58, %v1145_v33 }
 0x175   :  { %v1077_v37 = vadd.f32 %v1862_v27, %v1076_v35  ;;  %v1209_v38 = vadd.f32 %v1208_v1, %v1146_v50 }
 0x177   :  { %v1078_v18 = vrot.slane %v1077_v37, 4  ;;  %v1210_v16 = vadd.f32 %v1209_v38, %v1147_v57 }
 0x179   :  { %v1079_v39 = vadd.f32 %v1078_v18, %v1077_v37  ;;  %v1211_v40 = vrot.slane %v1210_v16, 4 }
 0x17b   :  { %v1080_v44 = vrot.slane %v1079_v39, 2  ;;  %v1212_v23 = vadd.f32 %v1211_v40, %v1210_v16 }
 0x17d   :  { %v1081_v48 = vadd.f32 %v1080_v44, %v1079_v39  ;;  %v1213_v30 = vrot.slane %v1212_v23, 2 }
 0x17f   :  { %v1082_v14 = vrot.slane %v1081_v48, 1  ;;  %v1214_v49 = vadd.f32 %v1213_v30, %v1212_v23 }
 0x181   :  { %v1083_v51 = vadd.f32 %v1082_v14, %v1081_v48  ;;  %v1215_v21 = vrot.slane %v1214_v49, 1 }
 0x183   :  { %v1216_v15 = vadd.f32 %v1215_v21, %v1214_v49  ;;  %1217 = vst [vmem:[%s1985_s3] sm:$0xff] %v1083_v51 }
 0x185   :  { %1218 = vst [vmem:[%s1986_s4] sm:$0xff] %v1216_v15 }

// kernel: d_forward.12
= control target key start
LH: loop header
LB: loop body
LE: loop exit
PB: predicated region body
PF: predicated region fallthrough
CT: control target
= control target key end

     0   :  { %s419_s0 = inlined_call_operand.vmem [shape: f32[128,128], index: 0, kind: input, shape index: {}]   ;;  %s420_s1 = inlined_call_operand.vmem [shape: f32[8,128], index: 1, kind: input, shape index: {}]   ;;  %s421_s2 = inlined_call_operand.vmem [shape: f32[8,128], index: 2, kind: input, shape index: {}]   ;;  %s422_s3 = inlined_call_operand.vmem [shape: bf16[128,128], index: 3, kind: output, shape index: {}]  }
   0x1   :  { %v14_v0 = vld [vmem:[%s419_s0] sm:$0xff]  ;;  %v15_v1 = vld [vmem:[%s419_s0 + $0x8] sm:$0xff]  ;;  %v16_v6 = vld [vmem:[%s419_s0 + $0x10] sm:$0xff] }
   0x2   :  { %v314_v2 = vld [vmem:[%s420_s1] ss:$0 sm:$0xff]  ;;  %v17_v7 = vld [vmem:[%s419_s0 + $0x18] sm:$0xff]  ;;  %v19_v11 = vld [vmem:[%s419_s0 + $0x28] sm:$0xff] }
   0x3   :  { %v35_v3 = vmul.f32 %v314_v2, %v14_v0  ;;  %v36_v4 = vmul.f32 %v314_v2, %v15_v1  ;;  %v321_v5 = vld [vmem:[%s421_s2] ss:$0 sm:$0xff]  ;;  %v37_v8 = vmul.f32 %v314_v2, %v16_v6  ;;  %v38_v9 = vmul.f32 %v314_v2, %v17_v7  ;;  %v20_v12 = vld [vmem:[%s419_s0 + $0x30] sm:$0xff]  ;;  %v21_v17 = vld [vmem:[%s419_s0 + $0x38] sm:$0xff] }
   0x4   :  { %v18_v10 = vld [vmem:[%s419_s0 + $0x20] sm:$0xff]  ;;  %v40_v16 = vmul.f32 %v314_v2, %v19_v11  ;;  %v41_v20 = vmul.f32 %v314_v2, %v20_v12  ;;  %v42_v21 = vmul.f32 %v314_v2, %v21_v17  ;;  %v23_v35 = vld [vmem:[%s419_s0 + $0x48] sm:$0xff]  ;;  %v24_v36 = vld [vmem:[%s419_s0 + $0x50] sm:$0xff] }
   0x5   :  { %v56_v13 = vadd.f32 %v321_v5, %v35_v3  ;;  %v57_v14 = vadd.f32 %v321_v5, %v36_v4  ;;  %v39_v15 = vmul.f32 %v314_v2, %v18_v10  ;;  %v58_v18 = vadd.f32 %v321_v5, %v37_v8  ;;  %v22_v34 = vld [vmem:[%s419_s0 + $0x40] sm:$0xff]  ;;  %v25_v42 = vld [vmem:[%s419_s0 + $0x58] sm:$0xff]  ;;  %v27_v48 = vld [vmem:[%s419_s0 + $0x68] sm:$0xff] }
   0x6   :  { %v59_v19 = vadd.f32 %v321_v5, %v38_v9  ;;  %v61_v29 = vadd.f32 %v321_v5, %v40_v16  ;;  %v62_v33 = vadd.f32 %v321_v5, %v41_v20  ;;  %v63_v40 = vadd.f32 %v321_v5, %v42_v21  ;;  %v26_v47 = vld [vmem:[%s419_s0 + $0x60] sm:$0xff]  ;;  %v28_v60 = vld [vmem:[%s419_s0 + $0x70] sm:$0xff]  ;;  %v29_v7 = vld [vmem:[%s419_s0 + $0x78] sm:$0xff] }
   0x7   :  { %vm72_vm0 = vcmp.gt.f32.partialorder %v56_v13, 0.0  ;;  %vm73_vm1 = vcmp.gt.f32.partialorder %v57_v14, 0.0  ;;  %v88_v22 = vmul.f32 0.2, %v56_v13  ;;  %v89_v23 = vmul.f32 0.2, %v57_v14 }
   0x8   :  { %vm74_vm2 = vcmp.gt.f32.partialorder %v58_v18, 0.0  ;;  %vm75_vm3 = vcmp.gt.f32.partialorder %v59_v19, 0.0  ;;  %v90_v24 = vmul.f32 0.2, %v58_v18  ;;  %v91_v25 = vmul.f32 0.2, %v59_v19 }
   0x9   :  { %v104_v26 = vsel %vm72_vm0, %v56_v13, %v88_v22  ;;  %v105_v27 = vsel %vm73_vm1, %v57_v14, %v89_v23  ;;  %v60_v28 = vadd.f32 %v321_v5, %v39_v15  ;;  %vm77_vm5 = vcmp.gt.f32.partialorder %v61_v29, 0.0 }
   0xa   :  { %v241_v30 = vpack.c.bf16 %v105_v27, %v104_v26  ;;  %v106_v31 = vsel %vm74_vm2, %v58_v18, %v90_v24  ;;  %v107_v32 = vsel %vm75_vm3, %v59_v19, %v91_v25  ;;  %v93_v39 = vmul.f32 0.2, %v61_v29 }
   0xb   :  { %v246_v37 = vpack.c.bf16 %v107_v32, %v106_v31  ;;  %vm76_vm4 = vcmp.gt.f32.partialorder %v60_v28, 0.0  ;;  %v92_v38 = vmul.f32 0.2, %v60_v28  ;;  %vm78_vm6 = vcmp.gt.f32.partialorder %v62_v33, 0.0 }
   0xc   :  { %242 = vst [vmem:[%s422_s3] sm:$0xff] %v241_v30   ;;  %v94_v41 = vmul.f32 0.2, %v62_v33  ;;  %v43_v44 = vmul.f32 %v314_v2, %v22_v34  ;;  %v44_v45 = vmul.f32 %v314_v2, %v23_v35  ;;  %v45_v46 = vmul.f32 %v314_v2, %v24_v36 }
   0xd   :  { %278 = vst [vmem:[%s422_s3 + $0x8] sm:$0xff] %v246_v37   ;;  %v108_v43 = vsel %vm76_vm4, %v60_v28, %v92_v38  ;;  %v109_v49 = vsel %vm77_vm5, %v61_v29, %v93_v39  ;;  %vm79_vm7 = vcmp.gt.f32.partialorder %v63_v40, 0.0  ;;  %v95_v50 = vmul.f32 0.2, %v63_v40 }
   0xe   :  { %v110_v51 = vsel %vm78_vm6, %v62_v33, %v94_v41  ;;  %v251_v52 = vpack.c.bf16 %v109_v49, %v108_v43  ;;  %v64_v53 = vadd.f32 %v321_v5, %v43_v44  ;;  %v65_v54 = vadd.f32 %v321_v5, %v44_v45 }
   0xf   :  { %v46_v55 = vmul.f32 %v314_v2, %v25_v42  ;;  %v111_v56 = vsel %vm79_vm7, %v63_v40, %v95_v50  ;;  %v66_v57 = vadd.f32 %v321_v5, %v45_v46  ;;  %v47_v58 = vmul.f32 %v314_v2, %v26_v47 }
  0x10   :  { %v48_v59 = vmul.f32 %v314_v2, %v27_v48  ;;  %279 = vst [vmem:[%s422_s3 + $0x10] sm:$0xff] %v251_v52   ;;  %v256_v61 = vpack.c.bf16 %v111_v56, %v110_v51  ;;  %vm80_vm8 = vcmp.gt.f32.partialorder %v64_v53, 0.0  ;;  %vm81_vm9 = vcmp.gt.f32.partialorder %v65_v54, 0.0 }
  0x11   :  { %v96_v62 = vmul.f32 0.2, %v64_v53  ;;  %v97_v63 = vmul.f32 0.2, %v65_v54  ;;  %v67_v0 = vadd.f32 %v321_v5, %v46_v55  ;;  %vm82_vm10 = vcmp.gt.f32.partialorder %v66_v57, 0.0 }
  0x12   :  { %v98_v1 = vmul.f32 0.2, %v66_v57  ;;  %280 = vst [vmem:[%s422_s3 + $0x18] sm:$0xff] %v256_v61   ;;  %v68_v4 = vadd.f32 %v321_v5, %v47_v58  ;;  %v69_v6 = vadd.f32 %v321_v5, %v48_v59  ;;  %v49_v8 = vmul.f32 %v314_v2, %v28_v60 }
  0x13   :  { %v112_v3 = vsel %vm80_vm8, %v64_v53, %v96_v62  ;;  %v113_v9 = vsel %vm81_vm9, %v65_v54, %v97_v63  ;;  %vm83_vm11 = vcmp.gt.f32.partialorder %v67_v0, 0.0  ;;  %v99_v10 = vmul.f32 0.2, %v67_v0 }
  0x14   :  { %v114_v11 = vsel %vm82_vm10, %v66_v57, %v98_v1  ;;  %v261_v12 = vpack.c.bf16 %v113_v9, %v112_v3  ;;  %vm84_vm12 = vcmp.gt.f32.partialorder %v68_v4, 0.0  ;;  %vm85_vm13 = vcmp.gt.f32.partialorder %v69_v6, 0.0 }
  0x15   :  { %v100_v13 = vmul.f32 0.2, %v68_v4  ;;  %v115_v14 = vsel %vm83_vm11, %v67_v0, %v99_v10  ;;  %v101_v15 = vmul.f32 0.2, %v69_v6  ;;  %v50_v16 = vmul.f32 %v314_v2, %v29_v7 }
  0x16   :  { %v70_v17 = vadd.f32 %v321_v5, %v49_v8  ;;  %281 = vst [vmem:[%s422_s3 + $0x20] sm:$0xff] %v261_v12   ;;  %v266_v18 = vpack.c.bf16 %v115_v14, %v114_v11 }
  0x17   :  { %v116_v19 = vsel %vm84_vm12, %v68_v4, %v100_v13  ;;  %v117_v20 = vsel %vm85_vm13, %v69_v6, %v101_v15  ;;  %v71_v21 = vadd.f32 %v321_v5, %v50_v16 }
  0x18   :  { %vm86_vm14 = vcmp.gt.f32.partialorder %v70_v17, 0.0  ;;  %v102_v22 = vmul.f32 0.2, %v70_v17  ;;  %282 = vst [vmem:[%s422_s3 + $0x28] sm:$0xff] %v266_v18   ;;  %v271_v23 = vpack.c.bf16 %v117_v20, %v116_v19 }
  0x19   :  { %vm87_vm15 = vcmp.gt.f32.partialorder %v71_v21, 0.0  ;;  %v103_v2 = vmul.f32 0.2, %v71_v21 }
  0x1a   :  { %v118_v24 = vsel %vm86_vm14, %v70_v17, %v102_v22  ;;  %283 = vst [vmem:[%s422_s3 + $0x30] sm:$0xff] %v271_v23  }
  0x1b   :  { %v119_v25 = vsel %vm87_vm15, %v71_v21, %v103_v2 }
  0x1c   :  { %v276_v26 = vpack.c.bf16 %v119_v25, %v118_v24 }
  0x1e   :  { %284 = vst [vmem:[%s422_s3 + $0x38] sm:$0xff] %v276_v26  }

// kernel: d_forward.11
= control target key start
LH: loop header
LB: loop body
LE: loop exit
PB: predicated region body
PF: predicated region fallthrough
CT: control target
= control target key end

     0   :  { %s856_s1 = inlined_call_operand.vmem [shape: bf16[256,128], index: 1, kind: input, shape index: {}]   ;;  %s857_s0 = inlined_call_operand.vmem [shape: bf16[128,256], index: 0, kind: input, shape index: {}]   ;;  %s858_s2 = inlined_call_operand.vmem [shape: f32[128,128], index: 2, kind: output, shape index: {0}]   ;;  %s859_s3 = inlined_call_operand.vmem [shape: f32[8,128], index: 3, kind: output, shape index: {1}]   ;;  %s860_s4 = inlined_call_operand.vmem [shape: f32[8,128], index: 4, kind: output, shape index: {2}]  }
   0x1   :  { %v623_v0 = vld [vmem:[%s856_s1 + $0x40] sm:$0xff]   ;;  %v625_v2 = vld [vmem:[%s856_s1 + $0x48] sm:$0xff]   ;;  %v627_v4 = vld [vmem:[%s856_s1 + $0x50] sm:$0xff]  }
   0x2   :  { %v624_v1 = vld [vmem:[%s856_s1] sm:$0xff]   ;;  %543 = vmatprep.subr.bf16.mxu0 %v623_v0  ;;  %607 = vmatprep.subr.bf16.mxu1 %v623_v0  ;;  %v626_v3 = vld [vmem:[%s856_s1 + $0x8] sm:$0xff]   ;;  %v628_v5 = vld [vmem:[%s856_s1 + $0x10] sm:$0xff]  }
   0x3   :  { %544 = vmatpush3.bf16.msra.mxu0 %v624_v1  ;;  %615 = vmatpush3.bf16.msra.mxu1 %v624_v1  ;;  %v629_v6 = vld [vmem:[%s856_s1 + $0x58] sm:$0xff]   ;;  %v631_v8 = vld [vmem:[%s856_s1 + $0x60] sm:$0xff]   ;;  %v633_v10 = vld [vmem:[%s856_s1 + $0x68] sm:$0xff]  }
   0x4   :  { %545 = vmatprep.subr.bf16.mxu0 %v625_v2  ;;  %608 = vmatprep.subr.bf16.mxu1 %v625_v2  ;;  %v630_v7 = vld [vmem:[%s856_s1 + $0x18] sm:$0xff]   ;;  %v632_v9 = vld [vmem:[%s856_s1 + $0x20] sm:$0xff]   ;;  %v634_v12 = vld [vmem:[%s856_s1 + $0x28] sm:$0xff]  }
   0x5   :  { %v641_v11 = vld [vmem:[%s857_s0 + $0x4] ss:$8 sps:$4 sm:$0xff]   ;;  %v635_v14 = vld [vmem:[%s856_s1 + $0x70] sm:$0xff]   ;;  %v637_v16 = vld [vmem:[%s856_s1 + $0x78] sm:$0xff]  }
   0x6   :  { %v647_v13 = vld [vmem:[%s857_s0 + $0x44] ss:$8 sps:$4 sm:$0xff]   ;;  %307 = vmatprep.mubr.bf16.mxu0 %v641_v11  ;;  %v636_v15 = vld [vmem:[%s856_s1 + $0x30] sm:$0xff]   ;;  %v638_v17 = vld [vmem:[%s856_s1 + $0x38] sm:$0xff]  }
   0x7   :  { %546 = vmatpush3.bf16.msra.mxu0 %v626_v3  ;;  %616 = vmatpush3.bf16.msra.mxu1 %v626_v3  ;;  %v639_v18 = vld [vmem:[%s857_s0] ss:$8 sps:$4 sm:$0xff]   ;;  %v642_v20 = vld [vmem:[%s857_s0 + $0x14] ss:$8 sps:$4 sm:$0xff]   ;;  %v644_v22 = vld [vmem:[%s857_s0 + $0x10] ss:$8 sps:$4 sm:$0xff]  }
   0x8   :  { %547 = vmatprep.subr.bf16.mxu0 %v627_v4  ;;  %609 = vmatprep.subr.bf16.mxu1 %v627_v4  ;;  %v645_v19 = vld [vmem:[%s857_s0 + $0x40] ss:$8 sps:$4 sm:$0xff]   ;;  %v651_v21 = vld [vmem:[%s857_s0 + $0x54] ss:$8 sps:$4 sm:$0xff]   ;;  %v653_v23 = vld [vmem:[%s857_s0 + $0x50] ss:$8 sps:$4 sm:$0xff]  }
   0x9   :  { %339 = vmatprep.mubr.bf16.mxu1 %v647_v13  ;;  %v648_v24 = vld [vmem:[%s857_s0 + $0x24] ss:$8 sps:$4 sm:$0xff]   ;;  %v650_v26 = vld [vmem:[%s857_s0 + $0x20] ss:$8 sps:$4 sm:$0xff]   ;;  %v654_v28 = vld [vmem:[%s857_s0 + $0x34] ss:$8 sps:$4 sm:$0xff]  }
   0xa   :  { %v657_v25 = vld [vmem:[%s857_s0 + $0x64] ss:$8 sps:$4 sm:$0xff]   ;;  %v659_v27 = vld [vmem:[%s857_s0 + $0x60] ss:$8 sps:$4 sm:$0xff]   ;;  %v660_v29 = vld [vmem:[%s857_s0 + $0x74] ss:$8 sps:$4 sm:$0xff]  }
   0xb   :  { %548 = vmatpush3.bf16.msra.mxu0 %v628_v5  ;;  %617 = vmatpush3.bf16.msra.mxu1 %v628_v5  ;;  %v656_v30 = vld [vmem:[%s857_s0 + $0x30] ss:$8 sps:$4 sm:$0xff]  }
   0xc   :  { %549 = vmatprep.subr.bf16.mxu0 %v629_v6  ;;  %610 = vmatprep.subr.bf16.mxu1 %v629_v6  ;;  %v662_v31 = vld [vmem:[%s857_s0 + $0x70] ss:$8 sps:$4 sm:$0xff]  }
   0xf   :  { %550 = vmatpush3.bf16.msra.mxu0 %v630_v7  ;;  %618 = vmatpush3.bf16.msra.mxu1 %v630_v7 }
  0x10   :  { %551 = vmatprep.subr.bf16.mxu0 %v631_v8  ;;  %611 = vmatprep.subr.bf16.mxu1 %v631_v8 }
  0x13   :  { %552 = vmatpush3.bf16.msra.mxu0 %v632_v9  ;;  %619 = vmatpush3.bf16.msra.mxu1 %v632_v9 }
  0x14   :  { %553 = vmatprep.subr.bf16.mxu0 %v633_v10  ;;  %612 = vmatprep.subr.bf16.mxu1 %v633_v10 }
  0x17   :  { %554 = vmatpush3.bf16.msra.mxu0 %v634_v12  ;;  %620 = vmatpush3.bf16.msra.mxu1 %v634_v12 }
  0x18   :  { %555 = vmatprep.subr.bf16.mxu0 %v635_v14  ;;  %613 = vmatprep.subr.bf16.mxu1 %v635_v14 }
  0x1b   :  { %556 = vmatpush3.bf16.msra.mxu0 %v636_v15  ;;  %621 = vmatpush3.bf16.msra.mxu1 %v636_v15 }
  0x1c   :  { %557 = vmatprep.subr.bf16.mxu0 %v637_v16  ;;  %614 = vmatprep.subr.bf16.mxu1 %v637_v16 }
  0x1f   :  { %558 = vmatpush3.bf16.msra.mxu0 %v638_v17  ;;  %622 = vmatpush3.bf16.msra.mxu1 %v638_v17 }
  0x22   :  { %308 = vmatmul.mubr.bf16.vlgmr.msra.gmra.mrb[0].mxu0 %v639_v18  ;;  %340 = vmatmul.mubr.bf16.vlgmr.msra.gmra.mrb[0].mxu1 %v645_v19 }
  0x23   :  { %315 = vmatprep.mubr.bf16.mxu0 %v642_v20  ;;  %347 = vmatprep.mubr.bf16.mxu1 %v651_v21 }
  0x2a   :  { %316 = vmatmul.mubr.bf16.gmra.mrb[4].mxu0 %v644_v22  ;;  %348 = vmatmul.mubr.bf16.gmra.mrb[4].mxu1 %v653_v23 }
  0x2b   :  { %323 = vmatprep.mubr.bf16.mxu0 %v648_v24  ;;  %355 = vmatprep.mubr.bf16.mxu1 %v657_v25 }
  0x32   :  { %324 = vmatmul.mubr.bf16.gmra.mrb[8].mxu0 %v650_v26  ;;  %356 = vmatmul.mubr.bf16.gmra.mrb[8].mxu1 %v659_v27 }
  0x33   :  { %331 = vmatprep.mubr.bf16.mxu0 %v654_v28  ;;  %363 = vmatprep.mubr.bf16.mxu1 %v660_v29 }
  0x3a   :  { %332 = vmatmul.mubr.bf16.gmra.mrb[12].mxu0 %v656_v30  ;;  %364 = vmatmul.mubr.bf16.gmra.mrb[12].mxu1 %v662_v31 }
  0xf5   :  { %v559_v32 = vpop.f32.mrb[0].mxu0  ;;  %v583_v33 = vpop.f32.mrb[0].mxu1 }
  0xf6   :  { %v560_v34 = vpop.f32.mrb[1].mxu0  ;;  %v584_v35 = vpop.f32.mrb[1].mxu1 }
  0xf7   :  { %v561_v36 = vadd.f32 %v560_v34, %v559_v32  ;;  %v562_v37 = vpop.f32.mrb[2].mxu0  ;;  %v784_v38 = vadd.f32 %v584_v35, %v583_v33  ;;  %v586_v39 = vpop.f32.mrb[2].mxu1 }
  0xf8   :  { %v563_v40 = vpop.f32.mrb[3].mxu0  ;;  %v587_v41 = vpop.f32.mrb[3].mxu1 }
  0xf9   :  { %423 = vst [vmem:[%s858_s2] sm:$0xff] %v561_v36  ;;  %v564_v42 = vadd.f32 %v563_v40, %v562_v37  ;;  %431 = vst [vmem:[%s858_s2 + $0x40] sm:$0xff] %v784_v38  ;;  %v793_v43 = vadd.f32 %v587_v41, %v586_v39  ;;  %v460_v44 = vmul.f32 %v561_v36, %v561_v36 }
  0xfa   :  { %v468_v37 = vmul.f32 %v784_v38, %v784_v38 }
  0xfb   :  { %424 = vst [vmem:[%s858_s2 + $0x8] sm:$0xff] %v564_v42  ;;  %v439_v45 = vadd.f32 %v564_v42, %v561_v36  ;;  %v461_v46 = vmul.f32 %v564_v42, %v564_v42  ;;  %432 = vst [vmem:[%s858_s2 + $0x48] sm:$0xff] %v793_v43  ;;  %v469_v41 = vmul.f32 %v793_v43, %v793_v43 }
  0xfd   :  { %v476_v47 = vadd.f32 %v461_v46, %v460_v44  ;;  %v565_v48 = vpop.f32.mrb[4].mxu0  ;;  %v589_v49 = vpop.f32.mrb[4].mxu1 }
  0xfe   :  { %v566_v50 = vpop.f32.mrb[5].mxu0  ;;  %v590_v51 = vpop.f32.mrb[5].mxu1 }
  0xff   :  { %v567_v52 = vadd.f32 %v566_v50, %v565_v48  ;;  %v568_v53 = vpop.f32.mrb[6].mxu0  ;;  %v802_v54 = vadd.f32 %v590_v51, %v589_v49  ;;  %v592_v55 = vpop.f32.mrb[6].mxu1 }
 0x100   :  { %v569_v56 = vpop.f32.mrb[7].mxu0  ;;  %v593_v57 = vpop.f32.mrb[7].mxu1 }
 0x101   :  { %425 = vst [vmem:[%s858_s2 + $0x10] sm:$0xff] %v567_v52  ;;  %v440_v58 = vadd.f32 %v567_v52, %v439_v45  ;;  %v462_v59 = vmul.f32 %v567_v52, %v567_v52  ;;  %v570_v60 = vadd.f32 %v569_v56, %v568_v53  ;;  %433 = vst [vmem:[%s858_s2 + $0x50] sm:$0xff] %v802_v54 }
 0x102   :  { %v594_v61 = vadd.f32 %v593_v57, %v592_v55  ;;  %v470_v45 = vmul.f32 %v802_v54, %v802_v54 }
 0x103   :  { %v477_v62 = vadd.f32 %v476_v47, %v462_v59  ;;  %426 = vst [vmem:[%s858_s2 + $0x18] sm:$0xff] %v570_v60  ;;  %v441_v63 = vadd.f32 %v570_v60, %v440_v58  ;;  %v463_v0 = vmul.f32 %v570_v60, %v570_v60 }
 0x104   :  { %434 = vst [vmem:[%s858_s2 + $0x58] sm:$0xff] %v594_v61  ;;  %v471_v48 = vmul.f32 %v594_v61, %v594_v61 }
 0x105   :  { %v478_v1 = vadd.f32 %v477_v62, %v463_v0  ;;  %v571_v2 = vpop.f32.mrb[8].mxu0  ;;  %v595_v3 = vpop.f32.mrb[8].mxu1 }
 0x106   :  { %v572_v4 = vpop.f32.mrb[9].mxu0  ;;  %v596_v5 = vpop.f32.mrb[9].mxu1 }
 0x107   :  { %v573_v6 = vadd.f32 %v572_v4, %v571_v2  ;;  %v574_v7 = vpop.f32.mrb[10].mxu0  ;;  %v597_v8 = vadd.f32 %v596_v5, %v595_v3  ;;  %v598_v9 = vpop.f32.mrb[10].mxu1 }
 0x108   :  { %v575_v10 = vpop.f32.mrb[11].mxu0  ;;  %v599_v11 = vpop.f32.mrb[11].mxu1 }
 0x109   :  { %427 = vst [vmem:[%s858_s2 + $0x20] sm:$0xff] %v573_v6  ;;  %v442_v12 = vadd.f32 %v573_v6, %v441_v63  ;;  %v464_v13 = vmul.f32 %v573_v6, %v573_v6  ;;  %v576_v14 = vadd.f32 %v575_v10, %v574_v7  ;;  %435 = vst [vmem:[%s858_s2 + $0x60] sm:$0xff] %v597_v8 }
 0x10a   :  { %v600_v15 = vadd.f32 %v599_v11, %v598_v9  ;;  %v472_v52 = vmul.f32 %v597_v8, %v597_v8 }
 0x10b   :  { %v479_v16 = vadd.f32 %v478_v1, %v464_v13  ;;  %428 = vst [vmem:[%s858_s2 + $0x28] sm:$0xff] %v576_v14  ;;  %v443_v17 = vadd.f32 %v576_v14, %v442_v12  ;;  %v465_v18 = vmul.f32 %v576_v14, %v576_v14 }
 0x10c   :  { %436 = vst [vmem:[%s858_s2 + $0x68] sm:$0xff] %v600_v15  ;;  %v473_v56 = vmul.f32 %v600_v15, %v600_v15 }
 0x10d   :  { %v480_v19 = vadd.f32 %v479_v16, %v465_v18  ;;  %v577_v20 = vpop.f32.mrb[12].mxu0  ;;  %v601_v21 = vpop.f32.mrb[12].mxu1 }
 0x10e   :  { %v578_v22 = vpop.f32.mrb[13].mxu0  ;;  %v602_v23 = vpop.f32.mrb[13].mxu1 }
 0x10f   :  { %v579_v24 = vadd.f32 %v578_v22, %v577_v20  ;;  %v580_v25 = vpop.f32.mrb[14].mxu0  ;;  %v603_v26 = vadd.f32 %v602_v23, %v601_v21  ;;  %v604_v27 = vpop.f32.mrb[14].mxu1 }
 0x110   :  { %v581_v28 = vpop.f32.mrb[15].mxu0  ;;  %v605_v29 = vpop.f32.mrb[15].mxu1 }
 0x111   :  { %429 = vst [vmem:[%s858_s2 + $0x30] sm:$0xff] %v579_v24  ;;  %v444_v30 = vadd.f32 %v579_v24, %v443_v17  ;;  %v466_v31 = vmul.f32 %v579_v24, %v579_v24  ;;  %v582_v32 = vadd.f32 %v581_v28, %v580_v25  ;;  %437 = vst [vmem:[%s858_s2 + $0x70] sm:$0xff] %v603_v26 }
 0x112   :  { %v606_v33 = vadd.f32 %v605_v29, %v604_v27  ;;  %v474_v57 = vmul.f32 %v603_v26, %v603_v26 }
 0x113   :  { %v481_v34 = vadd.f32 %v480_v19, %v466_v31  ;;  %430 = vst [vmem:[%s858_s2 + $0x38] sm:$0xff] %v582_v32  ;;  %v445_v35 = vadd.f32 %v582_v32, %v444_v30  ;;  %v467_v36 = vmul.f32 %v582_v32, %v582_v32 }
 0x114   :  { %438 = vst [vmem:[%s858_s2 + $0x78] sm:$0xff] %v606_v33  ;;  %v475_v62 = vmul.f32 %v606_v33, %v606_v33 }
 0x115   :  { %v446_v39 = vadd.f32 %v784_v38, %v445_v35  ;;  %v482_v40 = vadd.f32 %v481_v34, %v467_v36 }
 0x117   :  { %v447_v42 = vadd.f32 %v793_v43, %v446_v39  ;;  %v483_v44 = vadd.f32 %v482_v40, %v468_v37 }
 0x119   :  { %v484_v46 = vadd.f32 %v483_v44, %v469_v41  ;;  %v448_v47 = vadd.f32 %v802_v54, %v447_v42 }
 0x11b   :  { %v449_v49 = vadd.f32 %v594_v61, %v448_v47  ;;  %v485_v50 = vadd.f32 %v484_v46, %v470_v45 }
 0x11d   :  { %v450_v51 = vadd.f32 %v597_v8, %v449_v49  ;;  %v486_v53 = vadd.f32 %v485_v50, %v471_v48 }
 0x11f   :  { %v487_v38 = vadd.f32 %v486_v53, %v472_v52  ;;  %v451_v55 = vadd.f32 %v600_v15, %v450_v51 }
 0x121   :  { %v488_v58 = vadd.f32 %v487_v38, %v473_v56  ;;  %v452_v59 = vadd.f32 %v603_v26, %v451_v55 }
 0x123   :  { %v489_v43 = vadd.f32 %v488_v58, %v474_v57  ;;  %v453_v60 = vadd.f32 %v606_v33, %v452_v59 }
 0x125   :  { %v454_v63 = vrot.slane %v453_v60, 4  ;;  %v490_v0 = vadd.f32 %v489_v43, %v475_v62 }
 0x127   :  { %v455_v1 = vadd.f32 %v454_v63, %v453_v60  ;;  %v491_v2 = vrot.slane %v490_v0, 4 }
 0x129   :  { %v456_v54 = vrot.slane %v455_v1, 2  ;;  %v492_v3 = vadd.f32 %v491_v2, %v490_v0 }
 0x12b   :  { %v457_v61 = vadd.f32 %v456_v54, %v455_v1  ;;  %v493_v4 = vrot.slane %v492_v3, 2 }
 0x12d   :  { %v458_v5 = vrot.slane %v457_v61, 1  ;;  %v494_v6 = vadd.f32 %v493_v4, %v492_v3 }
 0x12f   :  { %v459_v7 = vadd.f32 %v458_v5, %v457_v61  ;;  %v495_v8 = vrot.slane %v494_v6, 1 }
 0x131   :  { %v496_v9 = vadd.f32 %v495_v8, %v494_v6  ;;  %497 = vst [vmem:[%s859_s3] sm:$0xff] %v459_v7 }
 0x133   :  { %498 = vst [vmem:[%s860_s4] sm:$0xff] %v496_v9 }

// kernel: d_forward.13
= control target key start
LH: loop header
LB: loop body
LE: loop exit
PB: predicated region body
PF: predicated region fallthrough
CT: control target
= control target key end

     0   :  { %s787_s1 = inlined_call_operand.vmem [shape: bf16[512,128], index: 1, kind: input, shape index: {}]   ;;  %s788_s0 = inlined_call_operand.vmem [shape: bf16[32,512], index: 0, kind: input, shape index: {}]   ;;  %s789_s2 = inlined_call_operand.vmem [shape: f32[32,128], index: 2, kind: output, shape index: {0}]   ;;  %s790_s3 = inlined_call_operand.vmem [shape: f32[8,128], index: 3, kind: output, shape index: {1}]   ;;  %s791_s4 = inlined_call_operand.vmem [shape: f32[8,128], index: 4, kind: output, shape index: {2}]  }
   0x1   :  { %v580_v0 = vld [vmem:[%s787_s1 + $0x40] sm:$0xff]   ;;  %v584_v4 = vld [vmem:[%s787_s1 + $0x48] sm:$0xff]   ;;  %v588_v8 = vld [vmem:[%s787_s1 + $0x50] sm:$0xff]  }
   0x2   :  { %v581_v1 = vld [vmem:[%s787_s1 + $0xc0] sm:$0xff]   ;;  %524 = vmatprep.subr.bf16.mxu0 %v580_v0  ;;  %v585_v5 = vld [vmem:[%s787_s1 + $0xc8] sm:$0xff]   ;;  %v589_v9 = vld [vmem:[%s787_s1 + $0xd0] sm:$0xff]  }
   0x3   :  { %v582_v2 = vld [vmem:[%s787_s1] sm:$0xff]   ;;  %552 = vmatprep.subr.bf16.mxu1 %v581_v1  ;;  %v586_v6 = vld [vmem:[%s787_s1 + $0x8] sm:$0xff]   ;;  %v590_v10 = vld [vmem:[%s787_s1 + $0x10] sm:$0xff]  }
   0x4   :  { %v583_v3 = vld [vmem:[%s787_s1 + $0x80] sm:$0xff]   ;;  %525 = vmatpush3.bf16.msra.mxu0 %v582_v2  ;;  %v587_v7 = vld [vmem:[%s787_s1 + $0x88] sm:$0xff]   ;;  %v591_v11 = vld [vmem:[%s787_s1 + $0x90] sm:$0xff]  }
   0x5   :  { %553 = vmatpush3.bf16.msra.mxu1 %v583_v3  ;;  %526 = vmatprep.subr.bf16.mxu0 %v584_v4  ;;  %v592_v12 = vld [vmem:[%s787_s1 + $0x58] sm:$0xff]   ;;  %v596_v16 = vld [vmem:[%s787_s1 + $0x60] sm:$0xff]   ;;  %v600_v20 = vld [vmem:[%s787_s1 + $0x68] sm:$0xff]  }
   0x6   :  { %554 = vmatprep.subr.bf16.mxu1 %v585_v5  ;;  %v593_v13 = vld [vmem:[%s787_s1 + $0xd8] sm:$0xff]   ;;  %v597_v17 = vld [vmem:[%s787_s1 + $0xe0] sm:$0xff]   ;;  %v601_v21 = vld [vmem:[%s787_s1 + $0xe8] sm:$0xff]  }
   0x7   :  { %v594_v14 = vld [vmem:[%s787_s1 + $0x18] sm:$0xff]   ;;  %v598_v18 = vld [vmem:[%s787_s1 + $0x20] sm:$0xff]   ;;  %v602_v22 = vld [vmem:[%s787_s1 + $0x28] sm:$0xff]  }
   0x8   :  { %527 = vmatpush3.bf16.msra.mxu0 %v586_v6  ;;  %v595_v15 = vld [vmem:[%s787_s1 + $0x98] sm:$0xff]   ;;  %v599_v19 = vld [vmem:[%s787_s1 + $0xa0] sm:$0xff]   ;;  %v603_v23 = vld [vmem:[%s787_s1 + $0xa8] sm:$0xff]  }
   0x9   :  { %555 = vmatpush3.bf16.msra.mxu1 %v587_v7  ;;  %528 = vmatprep.subr.bf16.mxu0 %v588_v8  ;;  %v604_v24 = vld [vmem:[%s787_s1 + $0x70] sm:$0xff]   ;;  %v608_v28 = vld [vmem:[%s787_s1 + $0x78] sm:$0xff]  }
   0xa   :  { %556 = vmatprep.subr.bf16.mxu1 %v589_v9  ;;  %v605_v25 = vld [vmem:[%s787_s1 + $0xf0] sm:$0xff]   ;;  %v609_v29 = vld [vmem:[%s787_s1 + $0xf8] sm:$0xff]  }
   0xb   :  { %v606_v26 = vld [vmem:[%s787_s1 + $0x30] sm:$0xff]   ;;  %v610_v30 = vld [vmem:[%s787_s1 + $0x38] sm:$0xff]  }
   0xc   :  { %529 = vmatpush3.bf16.msra.mxu0 %v590_v10  ;;  %v607_v27 = vld [vmem:[%s787_s1 + $0xb0] sm:$0xff]   ;;  %v611_v31 = vld [vmem:[%s787_s1 + $0xb8] sm:$0xff]  }
   0xd   :  { %557 = vmatpush3.bf16.msra.mxu1 %v591_v11  ;;  %530 = vmatprep.subr.bf16.mxu0 %v592_v12  ;;  %v612_v32 = vld [vmem:[%s788_s0] ss:$16 sps:$4 sm:$0xff]   ;;  %v614_v33 = vld [vmem:[%s788_s0 + $0x4] ss:$16 sps:$4 sm:$0xff]   ;;  %v615_v34 = vld [vmem:[%s788_s0 + $0x8] ss:$16 sps:$4 sm:$0xff]  }
   0xe   :  { %558 = vmatprep.subr.bf16.mxu1 %v593_v13  ;;  %v617_v35 = vld [vmem:[%s788_s0 + $0xc] ss:$16 sps:$4 sm:$0xff]   ;;  %363 = vmatprep.mubr.bf16.mxu0 %v614_v33  ;;  %v618_v36 = vld [vmem:[%s788_s0 + $0x24] ss:$16 sps:$4 sm:$0xff]   ;;  %v622_v38 = vld [vmem:[%s788_s0 + $0x20] ss:$16 sps:$4 sm:$0xff]  }
   0xf   :  { %412 = vmatprep.mubr.bf16.mxu1 %v617_v35  ;;  %v620_v37 = vld [vmem:[%s788_s0 + $0x2c] ss:$16 sps:$4 sm:$0xff]   ;;  %v623_v39 = vld [vmem:[%s788_s0 + $0x28] ss:$16 sps:$4 sm:$0xff]  }
  0x10   :  { %531 = vmatpush3.bf16.msra.mxu0 %v594_v14 }
  0x11   :  { %559 = vmatpush3.bf16.msra.mxu1 %v595_v15  ;;  %532 = vmatprep.subr.bf16.mxu0 %v596_v16 }
  0x12   :  { %560 = vmatprep.subr.bf16.mxu1 %v597_v17 }
  0x14   :  { %533 = vmatpush3.bf16.msra.mxu0 %v598_v18 }
  0x15   :  { %561 = vmatpush3.bf16.msra.mxu1 %v599_v19  ;;  %534 = vmatprep.subr.bf16.mxu0 %v600_v20 }
  0x16   :  { %562 = vmatprep.subr.bf16.mxu1 %v601_v21 }
  0x18   :  { %535 = vmatpush3.bf16.msra.mxu0 %v602_v22 }
  0x19   :  { %563 = vmatpush3.bf16.msra.mxu1 %v603_v23  ;;  %536 = vmatprep.subr.bf16.mxu0 %v604_v24 }
  0x1a   :  { %564 = vmatprep.subr.bf16.mxu1 %v605_v25 }
  0x1c   :  { %537 = vmatpush3.bf16.msra.mxu0 %v606_v26 }
  0x1d   :  { %565 = vmatpush3.bf16.msra.mxu1 %v607_v27  ;;  %538 = vmatprep.subr.bf16.mxu0 %v608_v28 }
  0x1e   :  { %566 = vmatprep.subr.bf16.mxu1 %v609_v29 }
  0x20   :  { %539 = vmatpush3.bf16.msra.mxu0 %v610_v30 }
  0x21   :  { %567 = vmatpush3.bf16.msra.mxu1 %v611_v31 }
  0x23   :  { %364 = vmatmul.mubr.bf16.vlgmr.msra.gmra.mrb[0].mxu0 %v612_v32 }
  0x24   :  { %413 = vmatmul.mubr.bf16.vlgmr.msra.gmra.mrb[0].mxu1 %v615_v34  ;;  %371 = vmatprep.mubr.bf16.mxu0 %v618_v36 }
  0x25   :  { %420 = vmatprep.mubr.bf16.mxu1 %v620_v37 }
  0x2b   :  { %372 = vmatmul.mubr.bf16.gmra.mrb[4].mxu0 %v622_v38 }
  0x2c   :  { %421 = vmatmul.mubr.bf16.gmra.mrb[4].mxu1 %v623_v39 }
  0xf6   :  { %v540_v40 = vpop.f32.mrb[0].mxu0 }
  0xf7   :  { %v568_v41 = vpop.f32.mrb[0].mxu1  ;;  %v541_v42 = vpop.f32.mrb[1].mxu0 }
  0xf8   :  { %v542_v43 = vadd.f32 %v541_v42, %v540_v40  ;;  %v569_v44 = vpop.f32.mrb[1].mxu1  ;;  %v543_v45 = vpop.f32.mrb[2].mxu0 }
  0xf9   :  { %v570_v46 = vadd.f32 %v569_v44, %v568_v41  ;;  %v571_v47 = vpop.f32.mrb[2].mxu1  ;;  %v544_v48 = vpop.f32.mrb[3].mxu0 }
  0xfa   :  { %v545_v49 = vadd.f32 %v544_v48, %v543_v45  ;;  %v572_v50 = vpop.f32.mrb[3].mxu1 }
  0xfb   :  { %v415_v51 = vadd.f32 %v570_v46, %v542_v43  ;;  %v573_v52 = vadd.f32 %v572_v50, %v571_v47 }
  0xfd   :  { %444 = vst [vmem:[%s789_s2] sm:$0xff] %v415_v51  ;;  %v418_v53 = vadd.f32 %v573_v52, %v545_v49  ;;  %v457_v55 = vmul.f32 %v415_v51, %v415_v51 }
  0xfe   :  { %v546_v54 = vpop.f32.mrb[4].mxu0 }
  0xff   :  { %445 = vst [vmem:[%s789_s2 + $0x8] sm:$0xff] %v418_v53  ;;  %v448_v56 = vadd.f32 %v418_v53, %v415_v51  ;;  %v458_v57 = vmul.f32 %v418_v53, %v418_v53  ;;  %v574_v58 = vpop.f32.mrb[4].mxu1  ;;  %v547_v59 = vpop.f32.mrb[5].mxu0 }
 0x100   :  { %v548_v60 = vadd.f32 %v547_v59, %v546_v54  ;;  %v575_v61 = vpop.f32.mrb[5].mxu1  ;;  %v549_v62 = vpop.f32.mrb[6].mxu0 }
 0x101   :  { %v461_v63 = vadd.f32 %v458_v57, %v457_v55  ;;  %v576_v0 = vadd.f32 %v575_v61, %v574_v58  ;;  %v577_v1 = vpop.f32.mrb[6].mxu1  ;;  %v550_v2 = vpop.f32.mrb[7].mxu0 }
 0x102   :  { %v551_v3 = vadd.f32 %v550_v2, %v549_v62  ;;  %v578_v4 = vpop.f32.mrb[7].mxu1 }
 0x103   :  { %v423_v5 = vadd.f32 %v576_v0, %v548_v60  ;;  %v579_v6 = vadd.f32 %v578_v4, %v577_v1 }
 0x105   :  { %446 = vst [vmem:[%s789_s2 + $0x10] sm:$0xff] %v423_v5  ;;  %v449_v7 = vadd.f32 %v448_v56, %v423_v5  ;;  %v459_v8 = vmul.f32 %v423_v5, %v423_v5  ;;  %v426_v9 = vadd.f32 %v579_v6, %v551_v3 }
 0x107   :  { %v462_v10 = vadd.f32 %v461_v63, %v459_v8  ;;  %447 = vst [vmem:[%s789_s2 + $0x18] sm:$0xff] %v426_v9  ;;  %v450_v11 = vadd.f32 %v449_v7, %v426_v9  ;;  %v460_v12 = vmul.f32 %v426_v9, %v426_v9 }
 0x109   :  { %v451_v13 = vrot.slane %v450_v11, 4  ;;  %v463_v14 = vadd.f32 %v462_v10, %v460_v12 }
 0x10b   :  { %v452_v15 = vadd.f32 %v451_v13, %v450_v11  ;;  %v464_v16 = vrot.slane %v463_v14, 4 }
 0x10d   :  { %v453_v17 = vrot.slane %v452_v15, 2  ;;  %v465_v18 = vadd.f32 %v464_v16, %v463_v14 }
 0x10f   :  { %v454_v19 = vadd.f32 %v453_v17, %v452_v15  ;;  %v466_v20 = vrot.slane %v465_v18, 2 }
 0x111   :  { %v455_v21 = vrot.slane %v454_v19, 1  ;;  %v467_v22 = vadd.f32 %v466_v20, %v465_v18 }
 0x113   :  { %v456_v23 = vadd.f32 %v455_v21, %v454_v19  ;;  %v468_v24 = vrot.slane %v467_v22, 1 }
 0x115   :  { %v469_v25 = vadd.f32 %v468_v24, %v467_v22  ;;  %470 = vst [vmem:[%s790_s3] sm:$0xff] %v456_v23 }
 0x117   :  { %471 = vst [vmem:[%s791_s4] sm:$0xff] %v469_v25 }

// kernel: d_forward.14
= control target key start
LH: loop header
LB: loop body
LE: loop exit
PB: predicated region body
PF: predicated region fallthrough
CT: control target
= control target key end

     0   :  { %s137_s0 = inlined_call_operand.vmem [shape: f32[32,128], index: 0, kind: input, shape index: {}]   ;;  %s138_s1 = inlined_call_operand.vmem [shape: f32[8,128], index: 1, kind: input, shape index: {}]   ;;  %s139_s2 = inlined_call_operand.vmem [shape: f32[8,128], index: 2, kind: input, shape index: {}]   ;;  %s140_s3 = inlined_call_operand.vmem [shape: bf16[32,128], index: 3, kind: output, shape index: {}]  }
   0x1   :  { %v14_v0 = vld [vmem:[%s137_s0] sm:$0xff]  ;;  %v15_v1 = vld [vmem:[%s137_s0 + $0x8] sm:$0xff]  ;;  %v16_v6 = vld [vmem:[%s137_s0 + $0x10] sm:$0xff] }
   0x2   :  { %v72_v2 = vld [vmem:[%s138_s1] ss:$0 sm:$0xff]  ;;  %v17_v7 = vld [vmem:[%s137_s0 + $0x18] sm:$0xff] }
   0x3   :  { %v23_v3 = vmul.f32 %v72_v2, %v14_v0  ;;  %v24_v4 = vmul.f32 %v72_v2, %v15_v1  ;;  %v73_v5 = vld [vmem:[%s139_s2] ss:$0 sm:$0xff]  ;;  %v25_v8 = vmul.f32 %v72_v2, %v16_v6  ;;  %v26_v9 = vmul.f32 %v72_v2, %v17_v7 }
   0x5   :  { %v32_v10 = vadd.f32 %v73_v5, %v23_v3  ;;  %v33_v11 = vadd.f32 %v73_v5, %v24_v4  ;;  %v34_v12 = vadd.f32 %v73_v5, %v25_v8  ;;  %v35_v13 = vadd.f32 %v73_v5, %v26_v9 }
   0x7   :  { %vm36_vm0 = vcmp.gt.f32.partialorder %v32_v10, 0.0  ;;  %vm37_vm1 = vcmp.gt.f32.partialorder %v33_v11, 0.0  ;;  %v40_v14 = vmul.f32 0.2, %v32_v10  ;;  %v41_v15 = vmul.f32 0.2, %v33_v11 }
   0x8   :  { %vm38_vm2 = vcmp.gt.f32.partialorder %v34_v12, 0.0  ;;  %vm39_vm3 = vcmp.gt.f32.partialorder %v35_v13, 0.0  ;;  %v42_v16 = vmul.f32 0.2, %v34_v12  ;;  %v43_v17 = vmul.f32 0.2, %v35_v13 }
   0x9   :  { %v44_v18 = vsel %vm36_vm0, %v32_v10, %v40_v14  ;;  %v45_v19 = vsel %vm37_vm1, %v33_v11, %v41_v15 }
   0xa   :  { %v85_v20 = vpack.c.bf16 %v45_v19, %v44_v18  ;;  %v46_v21 = vsel %vm38_vm2, %v34_v12, %v42_v16  ;;  %v47_v22 = vsel %vm39_vm3, %v35_v13, %v43_v17 }
   0xb   :  { %v90_v23 = vpack.c.bf16 %v47_v22, %v46_v21 }
   0xc   :  { %86 = vst [vmem:[%s140_s3] sm:$0xff] %v85_v20  }
   0xd   :  { %92 = vst [vmem:[%s140_s3 + $0x8] sm:$0xff] %v90_v23  }

// kernel: d_forward.15
= control target key start
LH: loop header
LB: loop body
LE: loop exit
PB: predicated region body
PF: predicated region fallthrough
CT: control target
= control target key end

     0   :  { %s974_s9 = smov 0   ;;  %s976_s10 = smov 0   ;;  %s1087_s0 = inlined_call_operand.vmem [shape: bf16[16,1024], index: 0, kind: input, shape index: {}]   ;;  %s1088_s1 = inlined_call_operand.vmem [shape: bf16[1024,128], index: 1, kind: input, shape index: {}]   ;;  %s1089_s2 = inlined_call_operand.vmem [shape: f32[16,128], index: 2, kind: output, shape index: {}]  }
   0x1   :  { %s978_s11 = smov 0   ;;  %s980_s12 = smov 0  }
   0x2   :  { %s982_s13 = smov 0  }
   0x3 LB: > { %s24_s14 = sadd.s32 1, %s952_s12  ;;  %p47_p1 = scmp.ne.s32.totalorder %s944_s10, %s940_s9  ;;  %s956_s13 = sphi %s982_s13, %s12_s13   ;;  %s952_s12 = sphi %s980_s12, %s1093_s12   ;;  %s948_s11 = sphi %s978_s11, %s1092_s11   ;;  %s944_s10 = sphi %s976_s10, %s1091_s10   ;;  %s940_s9 = sphi %s974_s9, %s1090_s9  }
   0x4   : > { %p25_p0 = scmp.ge.s32.totalorder %s24_s14, 2  ;;  %p48_p2 = scmp.eq.s32.totalorder %s956_s13, 0 }
   0x5   : > { %s40_s16 = sadd.s32 1, %s944_s10  ;;  %p734_p5 = scmp.ge.s32.totalorder %s956_s13, 2 }
   0x6   : > { %s1095_s14 = smov (%p25_p0, %s24_s14), 0  ;;  %p49_p3 = por %p48_p2, %p47_p1 }
   0x7   : > { %s36_s15 = ssub.s32 %s952_s12, %s1095_s14  ;;  %129 = sbr.rel (%p734_p5) target bundleno = 21 (0x15), region = 16 }
   0x8   : > { %p38_p4 = scmp.eq.s32.totalorder %s36_s15, 0 }
   0xa   : > { %s1009_s17 = scalar_select %p38_p4, %s944_s10, %s40_s16  }
   0xe   : > { %132 = sbr.rel (!%p49_p3) target bundleno = 21 (0x15), region = 20  ;;  %s134_s18 = sand.u32 (%p49_p3), 1, %s944_s10  }
   0xf   : > { %s786_s19 = sshll.u32 (%p49_p3), %s952_s12, 4  ;;  %s735_s20 = sshll.u32 (%p49_p3), %s134_s18, 5 }
  0x10   : > { %s142_s23 = scalar_lea.vmem (%p49_p3), %s1087_s0, %s786_s19  ;;  %s136_s24 = scalar_lea.vmem (%p49_p3), [#allocation3], %s735_s20 }
  0x11   : > { %v155_v0 = vld [vmem:[%s142_s23] sm:$0xff] (%p49_p3)  ;;  %v157_v1 = vld [vmem:[%s142_s23 + $0x8] sm:$0xff] (%p49_p3) }
  0x12   : > { %v159_v2 = vld [vmem:[%s142_s23 + $0x20] sm:$0xff] (%p49_p3)  ;;  %156 = vst [vmem:[%s136_s24] sm:$0xff] (%p49_p3), %v155_v0  ;;  %158 = vst [vmem:[%s136_s24 + $0x8] sm:$0xff] (%p49_p3), %v157_v1  ;;  %v161_v3 = vld [vmem:[%s142_s23 + $0x28] sm:$0xff] (%p49_p3) }
  0x13   : > { %160 = vst [vmem:[%s136_s24 + $0x10] sm:$0xff] (%p49_p3), %v159_v2  ;;  %162 = vst [vmem:[%s136_s24 + $0x18] sm:$0xff] (%p49_p3), %v161_v3 }
  0x15 PF: > { %p738_p6 = scmp.ge.s32.totalorder %s956_s13, 1  ;;  %p179_p7 = scmp.lt.s32.totalorder %s956_s13, 3 }
  0x17   : > { %p180_p8 = pnand %p738_p6, %p179_p7 }
  0x18   : > { %s186_s25 = sand.u32 (!%p180_p8), 1, %s940_s9   ;;  %s740_s26 = sshll.u32 (!%p180_p8), %s948_s11, 6 }
  0x19   : > { %183 = sbr.rel (%p180_p8) target bundleno = 330 (0x14a), region = 47  ;;  %s739_s27 = sshll.u32 (!%p180_p8), %s186_s25, 5 }
  0x1a   : > { %p221_p9 = scmp.lt.s32.totalorder (!%p180_p8), %s740_s26, 127  ;;  %s1026_s4 = scalar_lea.vmem (!%p180_p8), [#allocation3], %s739_s27 }
  0x1b   : > { %p742_p10 = scmp.ne.s32.totalorder (!%p180_p8), %s948_s11, 0 }
  0x20   : > { %s1097_s26 = smov (!%p221_p9, %s740_s26), 127  ;;  %242 = sbr.rel (%p742_p10) target bundleno = 39 (0x27), region = 55 }
  0x21   : > { %s741_s28 = sshll.u32 %s1097_s26, 2  ;;  %v958_v4 = vmov (!%p742_p10), 0.0  }
  0x22   : > { %s1024_s3 = scalar_lea.vmem %s1088_s1, %s741_s28  ;;  %243 = vst [vmem:[#allocation2] sm:$0xff] (!%p742_p10), %v958_v4  ;;  %244 = vst [vmem:[#allocation2 + $0x8] sm:$0xff] (!%p742_p10), %v958_v4 }
  0x27 PF: > { %v872_v5 = vld [vmem:[%s1024_s3 + $0x40] sm:$0xff]   ;;  %v876_v9 = vld [vmem:[%s1024_s3 + $0x48] sm:$0xff]   ;;  %v880_v13 = vld [vmem:[%s1024_s3 + $0x50] sm:$0xff]   ;;  %p779_p11 = scmp.ne.s32.totalorder %s948_s11, 1 }
  0x28   : > { %v873_v6 = vld [vmem:[%s1024_s3 + $0xc0] sm:$0xff]   ;;  %787 = vmatprep.subr.bf16.mxu0 %v872_v5  ;;  %v877_v10 = vld [vmem:[%s1024_s3 + $0xc8] sm:$0xff]   ;;  %v881_v14 = vld [vmem:[%s1024_s3 + $0xd0] sm:$0xff]  }
  0x29   : > { %v874_v7 = vld [vmem:[%s1024_s3] sm:$0xff]   ;;  %809 = vmatprep.subr.bf16.mxu1 %v873_v6  ;;  %v878_v11 = vld [vmem:[%s1024_s3 + $0x8] sm:$0xff]   ;;  %v882_v15 = vld [vmem:[%s1024_s3 + $0x10] sm:$0xff]  }
  0x2a   : > { %v875_v8 = vld [vmem:[%s1024_s3 + $0x80] sm:$0xff]   ;;  %788 = vmatpush3.bf16.msra.mxu0 %v874_v7  ;;  %v879_v12 = vld [vmem:[%s1024_s3 + $0x88] sm:$0xff]   ;;  %v883_v16 = vld [vmem:[%s1024_s3 + $0x90] sm:$0xff]  }
  0x2b   : > { %810 = vmatpush3.bf16.msra.mxu1 %v875_v8  ;;  %789 = vmatprep.subr.bf16.mxu0 %v876_v9  ;;  %v884_v17 = vld [vmem:[%s1024_s3 + $0x58] sm:$0xff]   ;;  %v888_v21 = vld [vmem:[%s1024_s3 + $0x60] sm:$0xff]   ;;  %v892_v25 = vld [vmem:[%s1024_s3 + $0x68] sm:$0xff]  }
  0x2c   : > { %811 = vmatprep.subr.bf16.mxu1 %v877_v10  ;;  %v885_v18 = vld [vmem:[%s1024_s3 + $0xd8] sm:$0xff]   ;;  %v889_v22 = vld [vmem:[%s1024_s3 + $0xe0] sm:$0xff]   ;;  %v893_v26 = vld [vmem:[%s1024_s3 + $0xe8] sm:$0xff]  }
  0x2d   : > { %v886_v19 = vld [vmem:[%s1024_s3 + $0x18] sm:$0xff]   ;;  %v890_v23 = vld [vmem:[%s1024_s3 + $0x20] sm:$0xff]   ;;  %v894_v27 = vld [vmem:[%s1024_s3 + $0x28] sm:$0xff]  }
  0x2e   : > { %790 = vmatpush3.bf16.msra.mxu0 %v878_v11  ;;  %v887_v20 = vld [vmem:[%s1024_s3 + $0x98] sm:$0xff]   ;;  %v891_v24 = vld [vmem:[%s1024_s3 + $0xa0] sm:$0xff]   ;;  %v895_v28 = vld [vmem:[%s1024_s3 + $0xa8] sm:$0xff]  }
  0x2f   : > { %812 = vmatpush3.bf16.msra.mxu1 %v879_v12  ;;  %791 = vmatprep.subr.bf16.mxu0 %v880_v13  ;;  %v896_v29 = vld [vmem:[%s1024_s3 + $0x70] sm:$0xff]   ;;  %v900_v33 = vld [vmem:[%s1024_s3 + $0x78] sm:$0xff]   ;;  %v245_v50 = vld [vmem:[#allocation2] sm:$0xff] }
  0x30   : > { %813 = vmatprep.subr.bf16.mxu1 %v881_v14  ;;  %v897_v30 = vld [vmem:[%s1024_s3 + $0xf0] sm:$0xff]   ;;  %v901_v34 = vld [vmem:[%s1024_s3 + $0xf8] sm:$0xff]   ;;  %v246_v55 = vld [vmem:[#allocation2 + $0x8] sm:$0xff] }
  0x31   : > { %v898_v31 = vld [vmem:[%s1024_s3 + $0x30] sm:$0xff]   ;;  %v902_v35 = vld [vmem:[%s1024_s3 + $0x38] sm:$0xff]  }
  0x32   : > { %792 = vmatpush3.bf16.msra.mxu0 %v882_v15  ;;  %v899_v32 = vld [vmem:[%s1024_s3 + $0xb0] sm:$0xff]   ;;  %v903_v36 = vld [vmem:[%s1024_s3 + $0xb8] sm:$0xff]  }
  0x33   : > { %814 = vmatpush3.bf16.msra.mxu1 %v883_v16  ;;  %793 = vmatprep.subr.bf16.mxu0 %v884_v17  ;;  %v904_v37 = vld [vmem:[%s1026_s4] ss:$16 sps:$4 sm:$0xff]   ;;  %v906_v38 = vld [vmem:[%s1026_s4 + $0x4] ss:$16 sps:$4 sm:$0xff]   ;;  %v907_v39 = vld [vmem:[%s1026_s4 + $0x8] ss:$16 sps:$4 sm:$0xff]  }
  0x34   : > { %815 = vmatprep.subr.bf16.mxu1 %v885_v18  ;;  %v909_v40 = vld [vmem:[%s1026_s4 + $0xc] ss:$16 sps:$4 sm:$0xff]   ;;  %559 = vmatprep.mubr.bf16.mxu0 %v906_v38 }
  0x35   : > { %600 = vmatprep.mubr.bf16.mxu1 %v909_v40 }
  0x36   : > { %794 = vmatpush3.bf16.msra.mxu0 %v886_v19 }
  0x37   : > { %816 = vmatpush3.bf16.msra.mxu1 %v887_v20  ;;  %795 = vmatprep.subr.bf16.mxu0 %v888_v21 }
  0x38   : > { %817 = vmatprep.subr.bf16.mxu1 %v889_v22 }
  0x3a   : > { %796 = vmatpush3.bf16.msra.mxu0 %v890_v23 }
  0x3b   : > { %818 = vmatpush3.bf16.msra.mxu1 %v891_v24  ;;  %797 = vmatprep.subr.bf16.mxu0 %v892_v25 }
  0x3c   : > { %819 = vmatprep.subr.bf16.mxu1 %v893_v26 }
  0x3e   : > { %798 = vmatpush3.bf16.msra.mxu0 %v894_v27 }
  0x3f   : > { %820 = vmatpush3.bf16.msra.mxu1 %v895_v28  ;;  %799 = vmatprep.subr.bf16.mxu0 %v896_v29 }
  0x40   : > { %821 = vmatprep.subr.bf16.mxu1 %v897_v30 }
  0x42   : > { %800 = vmatpush3.bf16.msra.mxu0 %v898_v31 }
  0x43   : > { %822 = vmatpush3.bf16.msra.mxu1 %v899_v32  ;;  %801 = vmatprep.subr.bf16.mxu0 %v900_v33 }
  0x44   : > { %823 = vmatprep.subr.bf16.mxu1 %v901_v34 }
  0x46   : > { %802 = vmatpush3.bf16.msra.mxu0 %v902_v35 }
  0x47   : > { %824 = vmatpush3.bf16.msra.mxu1 %v903_v36 }
  0x49   : > { %560 = vmatmul.mubr.bf16.vlgmr.msra.gmra.mrb[0].mxu0 %v904_v37 }
  0x4a   : > { %601 = vmatmul.mubr.bf16.vlgmr.msra.gmra.mrb[0].mxu1 %v907_v39 }
 0x11c   : > { %v803_v41 = vpop.f32.mrb[0].mxu0 }
 0x11d   : > { %v825_v42 = vpop.f32.mrb[0].mxu1  ;;  %v804_v43 = vpop.f32.mrb[1].mxu0 }
 0x11e   : > { %v805_v44 = vadd.f32 %v804_v43, %v803_v41  ;;  %v826_v45 = vpop.f32.mrb[1].mxu1  ;;  %v806_v46 = vpop.f32.mrb[2].mxu0 }
 0x11f   : > { %v827_v47 = vadd.f32 %v826_v45, %v825_v42  ;;  %v828_v48 = vpop.f32.mrb[2].mxu1  ;;  %v807_v49 = vpop.f32.mrb[3].mxu0 }
 0x120   : > { %v808_v51 = vadd.f32 %v807_v49, %v806_v46  ;;  %v829_v52 = vpop.f32.mrb[3].mxu1 }
 0x121   : > { %v603_v53 = vadd.f32 %v827_v47, %v805_v44  ;;  %v830_v54 = vadd.f32 %v829_v52, %v828_v48  ;;  %616 = sbr.rel (%p779_p11) target bundleno = 330 (0x14a), region = 59 }
 0x123   : > { %v609_v56 = vadd.f32 %v603_v53, %v245_v50  ;;  %v606_v57 = vadd.f32 %v830_v54, %v808_v51 }
 0x125   : > { %611 = vst [vmem:[#allocation2] sm:$0xff] %v609_v56  ;;  %v610_v58 = vadd.f32 %v606_v57, %v246_v55 }
 0x127   : > { %612 = vst [vmem:[#allocation2 + $0x8] sm:$0xff] %v610_v58 }
 0x12c   : > { %v617_v59 = vld [vmem:[#allocation2] sm:$0xff] }
 0x12d   : > { %v780_v61 = vmul.f32 -1.442695, %v617_v59 }
 0x12e   : > { %v618_v60 = vld [vmem:[#allocation2 + $0x8] sm:$0xff] }
 0x12f   : > { %v781_v62 = vmul.f32 -1.442695, %v618_v60  ;;  %910 = vpow2.f32 %v780_v61 }
 0x131   : > { %912 = vpow2.f32 %v781_v62 }
 0x139   : > { %v911_v63 = vpop.eup %910 }
 0x13a   : > { %v625_v1 = vadd.f32 1.0, %v911_v63 }
 0x13b   : > { %v913_v0 = vpop.eup %912 }
 0x13c   : > { %v626_v2 = vadd.f32 1.0, %v913_v0  ;;  %914 = vrcp.f32 %v625_v1 }
 0x13e   : > { %916 = vrcp.f32 %v626_v2 }
 0x146   : > { %v915_v3 = vpop.eup %914 }
 0x147   : > { %631 = vst [vmem:[%s1089_s2] sm:$0xff] %v915_v3 }
 0x148   : > { %v917_v4 = vpop.eup %916 }
 0x149   : > { %632 = vst [vmem:[%s1089_s2 + $0x8] sm:$0xff] %v917_v4 }
 0x14a PF: > { %s12_s13 = sadd.s32 1, %s956_s13   ;;  %s1090_s9 = smov %s944_s10 }
 0x14b   : > { %p9_p12 = scmp.ge.s32.totalorder %s12_s13, 4   ;;  %s1091_s10 = smov %s1009_s17 }
 0x14c   : > { %s1092_s11 = smov %s952_s12  ;;  %s1093_s12 = smov %s1095_s14 }
 0x14d   :  { %11 = sbr.rel (!%p9_p12) target bundleno = 3 (0x3), region = 97 }

</bundles_post_ra>
